<compile_context>
chip_gen: v5e
topology: v5e:2x2
jax: 0.10.0
libtpu: 0.0.40
codegen_flags: <defaults>
</compile_context>

<pallas_src>
import functools

import jax
import jax.numpy as jnp
from jax.experimental import pallas as pl
from jax.experimental.pallas import tpu as pltpu


N_CHANNELS = 4
INPUT_SIZE = 16
N_LATENTS = 8
HIDDEN = 256
ENC_FEAT = 32 * 2 * 2   # 3 stride-2 convs: 16 -> 8 -> 4 -> 2, 32 channels


# -----------------------------------------------------------------------------
# Pallas kernels
# -----------------------------------------------------------------------------
def _matmul_cf_kernel(w_ref, x_ref, b_ref, o_ref, *, activation):
    """(Cout, K) @ (K, M_tile) + bias(Cout,1) + optional ReLU, f32 accumulate."""
    acc = jnp.dot(w_ref[...], x_ref[...], preferred_element_type=jnp.float32)
    acc = acc + b_ref[...]                     # (Cout, 1) broadcasts over lanes
    if activation == "relu":
        acc = jnp.maximum(acc, 0.0)
    o_ref[...] = acc.astype(o_ref.dtype)


def matmul_cf(wT, colsT, b_col, activation=None):
    """wT: (N, K) bf16, colsT: (K, M) bf16, b_col: (N, 1) f32 -> (N, M) f32.

    Output is lane-dense (last dim = M). When M is a multiple of 256 we split
    it into a 2-step "parallel" grid so v7x can use both TensorCores.
    """
    N, K = wT.shape
    _, M = colsT.shape
    tile_m = M // 2 if (M % 256 == 0 and M >= 512) else M
    grid = (M // tile_m,)
    kernel = functools.partial(_matmul_cf_kernel, activation=activation)
    return pl.pallas_call(
        kernel,
        out_shape=jax.ShapeDtypeStruct((N, M), jnp.float32),
        grid=grid,
        in_specs=[
            pl.BlockSpec((N, K), lambda i: (0, 0)),
            pl.BlockSpec((K, tile_m), lambda i: (0, i)),
            pl.BlockSpec((N, 1), lambda i: (0, 0)),
        ],
        out_specs=pl.BlockSpec((N, tile_m), lambda i: (0, i)),
        compiler_params=pltpu.CompilerParams(dimension_semantics=("parallel",)),
    )(wT, colsT, b_col)


def _dense_core_kernel(h_ref, w1_ref, b1_ref, wmu_ref, bmu_ref, wlv_ref, blv_ref,
                       eps_ref, wd1_ref, bd1_ref, wd2_ref, bd2_ref,
                       mu_ref, lv_ref, z_ref, d_ref):
    """Fused fc1 -> (mu, logvar) -> reparameterize -> dfc1 -> dfc2."""
    h = jnp.dot(h_ref[...], w1_ref[...], preferred_element_type=jnp.float32) + b1_ref[...]
    h = jnp.maximum(h, 0.0)
    mu = jnp.dot(h, wmu_ref[...], preferred_element_type=jnp.float32) + bmu_ref[...]
    lv = jnp.dot(h, wlv_ref[...], preferred_element_type=jnp.float32) + blv_ref[...]
    z = mu + jnp.exp(0.5 * lv) * eps_ref[...]          # exp -> EUP slot (free)
    d = jnp.dot(z, wd1_ref[...], preferred_element_type=jnp.float32) + bd1_ref[...]
    d = jnp.maximum(d, 0.0)
    d = jnp.dot(d, wd2_ref[...], preferred_element_type=jnp.float32) + bd2_ref[...]
    d = jnp.maximum(d, 0.0)
    mu_ref[...] = mu
    lv_ref[...] = lv
    z_ref[...] = z
    d_ref[...] = d


def dense_core(h, eps, pp):
    """h: (Bt, 128) f32, eps: (Bt, 8) f32 -> (mu, logvar, z, dfc2_out)."""
    Bt = h.shape[0]
    args = (h, pp["fc1_w"], pp["fc1_b"], pp["fc_mu_w"], pp["fc_mu_b"],
            pp["fc_lv_w"], pp["fc_lv_b"], eps, pp["dfc1_w"], pp["dfc1_b"],
            pp["dfc2_w"], pp["dfc2_b"])
    out_shape = (
        jax.ShapeDtypeStruct((Bt, N_LATENTS), jnp.float32),
        jax.ShapeDtypeStruct((Bt, N_LATENTS), jnp.float32),
        jax.ShapeDtypeStruct((Bt, N_LATENTS), jnp.float32),
        jax.ShapeDtypeStruct((Bt, ENC_FEAT), jnp.float32),
    )
    return pl.pallas_call(
        _dense_core_kernel,
        out_shape=out_shape,
        grid=(1,),
        in_specs=[pl.BlockSpec(a.shape, lambda i: (0, 0)) for a in args],
        out_specs=tuple(pl.BlockSpec(s.shape, lambda i: (0, 0)) for s in out_shape),
    )(*args)


# -----------------------------------------------------------------------------
# im2col / conv / deconv glue (channel-first layout, plain-JAX patch extraction)
# -----------------------------------------------------------------------------
def _im2col_cf(x, k, stride, pad):
    """x: (C, B, H, W) -> colsT: (C*k*k, B*Ho*Wo), feature order c*k*k + i*k + j."""
    C, B, H, W = x.shape
    xp = jnp.pad(x, ((0, 0), (0, 0), (pad, pad), (pad, pad)))
    Ho = (H + 2 * pad - k) // stride + 1
    Wo = (W + 2 * pad - k) // stride + 1
    cols = []
    for i in range(k):
        for j in range(k):
            cols.append(xp[:, :, i:i + stride * Ho:stride, j:j + stride * Wo:stride])
    cols = jnp.stack(cols, axis=1)                    # (C, k*k, B, Ho, Wo)
    return cols.reshape(C * k * k, B * Ho * Wo), Ho, Wo


def conv2d_cf(x_cf, wT, b_col, k, stride, pad, activation):
    """x_cf: (Cin, B, H, W) f32; wT: (Cout, Cin*k*k) bf16 -> (Cout, B, Ho, Wo) f32."""
    _, B, _, _ = x_cf.shape
    colsT, Ho, Wo = _im2col_cf(x_cf, k, stride, pad)
    y = matmul_cf(wT, colsT.astype(wT.dtype), b_col, activation)
    return y.reshape(wT.shape[0], B, Ho, Wo)


def deconv2x_cf(x_cf, w3T, b_col, activation):
    """ConvTranspose2d(k=4, s=2, p=1) as 3x3 conv (4*Cout out-chans) + pixel shuffle."""
    _, B, H, W = x_cf.shape
    colsT, _, _ = _im2col_cf(x_cf, 3, 1, 1)
    y = matmul_cf(w3T, colsT.astype(w3T.dtype), b_col, activation)   # (4*Cout, B*H*W)
    Cout = w3T.shape[0] // 4
    t = y.reshape(2, 2, Cout, B, H, W).transpose(2, 3, 4, 0, 5, 1)   # (Cout,B,H,2,W,2)
    return t.reshape(Cout, B, 2 * H, 2 * W)


# -----------------------------------------------------------------------------
# Parameters
# -----------------------------------------------------------------------------
def init_params(key):
    def dense(key, kin, kout, scale=0.05):
        kw, kb = jax.random.split(key)
        return (scale * jax.random.normal(kw, (kin, kout), jnp.float32),
                scale * jax.random.normal(kb, (kout,), jnp.float32))

    def conv(key, cout, cin, k, scale=0.05):
        kw, kb = jax.random.split(key)
        return (scale * jax.random.normal(kw, (cout, cin, k, k), jnp.float32),
                scale * jax.random.normal(kb, (cout,), jnp.float32))

    ks = jax.random.split(key, 12)
    p = {}
    # encoder
    p["conv1_w"], p["conv1_b"] = conv(ks[0], 32, N_CHANNELS, 4)
    p["conv2_w"], p["conv2_b"] = conv(ks[1], 32, 32, 4)
    p["conv3_w"], p["conv3_b"] = conv(ks[2], 32, 32, 4)
    p["fc1_w"], p["fc1_b"] = dense(ks[3], ENC_FEAT, HIDDEN)
    p["fc_mu_w"], p["fc_mu_b"] = dense(ks[4], HIDDEN, N_LATENTS)
    p["fc_lv_w"], p["fc_lv_b"] = dense(ks[5], HIDDEN, N_LATENTS)
    # decoder (deconv weights stored in conv-equivalent layout (Cout, Cin, 4, 4))
    p["dfc1_w"], p["dfc1_b"] = dense(ks[6], N_LATENTS, HIDDEN)
    p["dfc2_w"], p["dfc2_b"] = dense(ks[7], HIDDEN, ENC_FEAT)
    p["deconv1_w"], p["deconv1_b"] = conv(ks[8], 32, 32, 4)
    p["deconv2_w"], p["deconv2_b"] = conv(ks[9], 32, 32, 4)
    p["deconv3_w"], p["deconv3_b"] = conv(ks[10], N_CHANNELS, 32, 4)
    return p


# Sub-pixel decomposition of ConvTranspose2d(k=4, s=2, p=1):
# output phase r in {0,1}: 3x3-conv tap ti -> source 4x4 row index I.
_PHASE_TAP_TO_SRC = {(0, 0): 0, (0, 1): 2, (1, 1): 1, (1, 2): 3}


def _deconv_to_pixelshuffle(w_conv):
    """w_conv: (Cout, Cin, 4, 4) conv-equivalent deconv weight -> (4*Cout, Cin*9)."""
    Cout, Cin = w_conv.shape[:2]
    w3 = jnp.zeros((2, 2, Cout, Cin, 3, 3), w_conv.dtype)
    for (r, ti), ii in _PHASE_TAP_TO_SRC.items():
        for (s, tj), jj in _PHASE_TAP_TO_SRC.items():
            w3 = w3.at[r, s, :, :, ti, tj].set(w_conv[:, :, ii, jj])
    return w3.reshape(4 * Cout, Cin * 9)


def prepare_params(p, matmul_dtype=jnp.bfloat16):
    """One-time layout packing: conv weights flattened/transposed + bf16 cast,
    deconvs converted to pixel-shuffle form, biases reshaped for broadcast."""
    pp = {}
    for name in ("conv1", "conv2", "conv3"):
        w = p[name + "_w"]
        Cout, Cin, k, _ = w.shape
        pp[name + "_wT"] = w.reshape(Cout, Cin * k * k).astype(matmul_dtype)
        pp[name + "_b"] = p[name + "_b"].reshape(Cout, 1).astype(jnp.float32)
    for name in ("deconv1", "deconv2", "deconv3"):
        w = p[name + "_w"]
        Cout = w.shape[0]
        pp[name + "_wT"] = _deconv_to_pixelshuffle(w).astype(matmul_dtype)
        pp[name + "_b"] = jnp.tile(p[name + "_b"], 4).reshape(4 * Cout, 1).astype(jnp.float32)
    for name in ("fc1", "fc_mu", "fc_lv", "dfc1", "dfc2"):
        pp[name + "_w"] = p[name + "_w"].astype(jnp.float32)
        pp[name + "_b"] = p[name + "_b"].reshape(1, -1).astype(jnp.float32)
    return pp


# -----------------------------------------------------------------------------
# AnnealedVAE / Quadruplet forward
# -----------------------------------------------------------------------------
def annealed_vae_forward(pp, x, eps):
    """x: (Bt, C, 16, 16) NCHW f32, eps: (Bt, n_latents) f32."""
    Bt = x.shape[0]
    xc = jnp.transpose(x, (1, 0, 2, 3))                                   # (C, Bt, H, W)
    # --- encoder ---
    h = conv2d_cf(xc, pp["conv1_wT"], pp["conv1_b"], 4, 2, 1, "relu")     # (32, Bt, 8, 8)
    h = conv2d_cf(h, pp["conv2_wT"], pp["conv2_b"], 4, 2, 1, "relu")      # (32, Bt, 4, 4)
    h = conv2d_cf(h, pp["conv3_wT"], pp["conv3_b"], 4, 2, 1, "relu")      # (32, Bt, 2, 2)
    hf = jnp.transpose(h, (1, 0, 2, 3)).reshape(Bt, ENC_FEAT)             # (Bt, 128)
    # --- fused dense core (fc1 -> mu/logvar -> reparam -> dfc1 -> dfc2) ---
    mu, logvar, z, d = dense_core(hf, eps, pp)
    # --- decoder ---
    dc = jnp.transpose(d.reshape(Bt, 32, 2, 2), (1, 0, 2, 3))             # (32, Bt, 2, 2)
    dc = deconv2x_cf(dc, pp["deconv1_wT"], pp["deconv1_b"], "relu")       # (32, Bt, 4, 4)
    dc = deconv2x_cf(dc, pp["deconv2_wT"], pp["deconv2_b"], "relu")       # (32, Bt, 8, 8)
    dc = deconv2x_cf(dc, pp["deconv3_wT"], pp["deconv3_b"], None)         # (C, Bt, 16, 16)
    recon_x = jnp.transpose(dc, (1, 0, 2, 3))                             # (Bt, C, 16, 16)
    return {"x": x, "mu": mu, "logvar": logvar, "z": z, "recon_x": recon_x}


def quadruplet_forward(pp, x_pos_a, x_pos_b, x_neg_a, x_neg_b, eps):
    """QuadrupletNet.forward: the 4 branches are stacked and run once."""
    B = x_pos_a.shape[0]
    x_all = jnp.concatenate([x_pos_a, x_pos_b, x_neg_a, x_neg_b], axis=0)  # (4B, C, H, W)
    eps_all = eps.reshape(4 * B, N_LATENTS)
    o = annealed_vae_forward(pp, x_all, eps_all)
    names = ("x_pos_a_outputs", "x_pos_b_outputs", "x_neg_a_outputs", "x_neg_b_outputs")
    # use_attention == False -> no 'attention' entry.
    return {name: {k: v[i * B:(i + 1) * B] for k, v in o.items()}
            for i, name in enumerate(names)}


# -----------------------------------------------------------------------------
# Plain-JAX reference (original dilated-deconv formulation) for validation
# -----------------------------------------------------------------------------
def _reference_forward(params, x, eps):
    dn = ("NCHW", "OIHW", "NCHW")

    def conv(x, w, b, stride, pad):
        y = jax.lax.conv_general_dilated(x, w, (stride, stride),
                                         [(pad, pad), (pad, pad)],
                                         dimension_numbers=dn)
        return y + b[None, :, None, None]

    def deconv(x, w, b):   # ConvTranspose(k=4,s=2,p=1) via lhs_dilation + pad 2
        y = jax.lax.conv_general_dilated(x, w, (1, 1), [(2, 2), (2, 2)],
                                         lhs_dilation=(2, 2),
                                         dimension_numbers=dn)
        return y + b[None, :, None, None]

    relu = lambda t: jnp.maximum(t, 0.0)
    B = x.shape[0]
    h = relu(conv(x, params["conv1_w"], params["conv1_b"], 2, 1))
    h = relu(conv(h, params["conv2_w"], params["conv2_b"], 2, 1))
    h = relu(conv(h, params["conv3_w"], params["conv3_b"], 2, 1))
    h = h.reshape(B, ENC_FEAT)
    h = relu(h @ params["fc1_w"] + params["fc1_b"])
    mu = h @ params["fc_mu_w"] + params["fc_mu_b"]
    logvar = h @ params["fc_lv_w"] + params["fc_lv_b"]
    z = mu + jnp.exp(0.5 * logvar) * eps
    d = relu(z @ params["dfc1_w"] + params["dfc1_b"])
    d = relu(d @ params["dfc2_w"] + params["dfc2_b"])
    d = d.reshape(B, 32, 2, 2)
    d = relu(deconv(d, params["deconv1_w"], params["deconv1_b"]))
    d = relu(deconv(d, params["deconv2_w"], params["deconv2_b"]))
    recon_x = deconv(d, params["deconv3_w"], params["deconv3_b"])
    return {"mu": mu, "logvar": logvar, "z": z, "recon_x": recon_x}


# -----------------------------------------------------------------------------
# Demo
# -----------------------------------------------------------------------------
if __name__ == "__main__":
    key = jax.random.PRNGKey(0)
    kp, kx, ke = jax.random.split(key, 3)

    params = init_params(kp)
    pp = prepare_params(params)

    B = 2
    xs = jax.random.uniform(kx, (4, B, N_CHANNELS, INPUT_SIZE, INPUT_SIZE), jnp.float32)
    eps = jax.random.normal(ke, (4, B, N_LATENTS), jnp.float32)

    fwd = jax.jit(quadruplet_forward)
    outputs = fwd(pp, xs[0], xs[1], xs[2], xs[3], eps)
    jax.block_until_ready(outputs)

    # shape sanity checks
    assert outputs["x_pos_a_outputs"]["recon_x"].shape == (B, N_CHANNELS, INPUT_SIZE, INPUT_SIZE)
    assert outputs["x_neg_b_outputs"]["z"].shape == (B, N_LATENTS)

    # numerical cross-check vs. plain-JAX reference (loose tol: bf16 matmul inputs)
    ref = _reference_forward(params, xs[0], eps[0])
    got = outputs["x_pos_a_outputs"]
    for name in ("mu", "logvar", "z", "recon_x"):
        assert bool(jnp.allclose(got[name], ref[name], rtol=5e-2, atol=5e-2)), name

    print("KERNEL_OK")
</pallas_src>

<mosaic_0001>
module attributes {stable_mosaic.version = 11 : i64} {
  func.func @_matmul_cf_kernel(%arg0: i32, %arg1: memref<32x64xbf16, #tpu.memory_space<vmem>>, %arg2: memref<64x256xbf16, #tpu.memory_space<vmem>>, %arg3: memref<32x1xf32, #tpu.memory_space<vmem>>, %arg4: memref<32x256xf32, #tpu.memory_space<vmem>>) attributes {dimension_semantics = [#tpu.dimension_semantics<parallel>], iteration_bounds = array<i64: 2>, scalar_prefetch = 0 : i64, scratch_operands = 0 : i64, tpu.core_type = #tpu.core_type<tc>, window_params = [{pipeline_mode = #tpu.pipeline_mode<synchronous>, transform_indices = @transform_0, window_bounds = array<i64: 32, 64>}, {transform_indices = @transform_1, window_bounds = array<i64: 64, 256>}, {pipeline_mode = #tpu.pipeline_mode<synchronous>, transform_indices = @transform_2, window_bounds = array<i64: 32, 1>}, {transform_indices = @transform_3, window_bounds = array<i64: 32, 256>}]} {
    %c0 = arith.constant 0 : index
    %c0_0 = arith.constant 0 : index
    %0 = vector.load %arg1[%c0, %c0_0] : memref<32x64xbf16, #tpu.memory_space<vmem>>, vector<32x64xbf16>
    %c0_1 = arith.constant 0 : index
    %c0_2 = arith.constant 0 : index
    %1 = vector.load %arg2[%c0_1, %c0_2] : memref<64x256xbf16, #tpu.memory_space<vmem>>, vector<64x256xbf16>
    %cst = arith.constant dense<0.000000e+00> : vector<32x256xf32>
    %2 = tpu.matmul %0, %1, %cst {dimension_numbers = #tpu.dot_dimension_numbers<[1], [0], [0], [1], [0, 0, 1, 1], [], []>} : vector<32x64xbf16>, vector<64x256xbf16>, vector<32x256xf32> -> vector<32x256xf32>
    %c0_3 = arith.constant 0 : index
    %c0_4 = arith.constant 0 : index
    %3 = vector.load %arg3[%c0_3, %c0_4] : memref<32x1xf32, #tpu.memory_space<vmem>>, vector<32x1xf32>
    %4 = vector.broadcast %3 : vector<32x1xf32> to vector<32x256xf32>
    %5 = arith.addf %2, %4 : vector<32x256xf32>
    %cst_5 = arith.constant 0.000000e+00 : f32
    %6 = vector.broadcast %cst_5 : f32 to vector<32x256xf32>
    %7 = arith.maximumf %5, %6 : vector<32x256xf32>
    %c0_6 = arith.constant 0 : index
    %c0_7 = arith.constant 0 : index
    %8 = vector.load %arg4[%c0_6, %c0_7] : memref<32x256xf32, #tpu.memory_space<vmem>>, vector<32x256xf32>
    tpu.vector_store %arg4[%c0_6, %c0_7], %7 {strides = array<i32>} : memref<32x256xf32, #tpu.memory_space<vmem>>, vector<32x256xf32>,
    return
  }
  func.func @transform_0(%arg0: i32) -> (i32, i32) {
    %c0_i32 = arith.constant 0 : i32
    %c0_i32_0 = arith.constant 0 : i32
    %c0_i32_1 = arith.constant 0 : i32
    return %c0_i32, %c0_i32_0 : i32, i32
  }
  func.func @transform_1(%arg0: i32) -> (i32, i32) {
    %c0_i32 = arith.constant 0 : i32
    %c0_i32_0 = arith.constant 0 : i32
    return %c0_i32, %arg0 : i32, i32
  }
  func.func @transform_2(%arg0: i32) -> (i32, i32) {
    %c0_i32 = arith.constant 0 : i32
    %c0_i32_0 = arith.constant 0 : i32
    %c0_i32_1 = arith.constant 0 : i32
    return %c0_i32, %c0_i32_0 : i32, i32
  }
  func.func @transform_3(%arg0: i32) -> (i32, i32) {
    %c0_i32 = arith.constant 0 : i32
    %c0_i32_0 = arith.constant 0 : i32
    return %c0_i32, %arg0 : i32, i32
  }
}

module attributes {stable_mosaic.version = 11 : i64} {
  func.func @_matmul_cf_kernel(%arg0: i32, %arg1: memref<32x512xbf16, #tpu.memory_space<vmem>>, %arg2: memref<512x128xbf16, #tpu.memory_space<vmem>>, %arg3: memref<32x1xf32, #tpu.memory_space<vmem>>, %arg4: memref<32x128xf32, #tpu.memory_space<vmem>>) attributes {dimension_semantics = [#tpu.dimension_semantics<parallel>], iteration_bounds = array<i64: 1>, scalar_prefetch = 0 : i64, scratch_operands = 0 : i64, tpu.core_type = #tpu.core_type<tc>, window_params = [{pipeline_mode = #tpu.pipeline_mode<synchronous>, transform_indices = @transform_0, window_bounds = array<i64: 32, 512>}, {transform_indices = @transform_1, window_bounds = array<i64: 512, 128>}, {pipeline_mode = #tpu.pipeline_mode<synchronous>, transform_indices = @transform_2, window_bounds = array<i64: 32, 1>}, {transform_indices = @transform_3, window_bounds = array<i64: 32, 128>}]} {
    %c0 = arith.constant 0 : index
    %c0_0 = arith.constant 0 : index
    %0 = vector.load %arg1[%c0, %c0_0] : memref<32x512xbf16, #tpu.memory_space<vmem>>, vector<32x512xbf16>
    %c0_1 = arith.constant 0 : index
    %c0_2 = arith.constant 0 : index
    %1 = vector.load %arg2[%c0_1, %c0_2] : memref<512x128xbf16, #tpu.memory_space<vmem>>, vector<512x128xbf16>
    %cst = arith.constant dense<0.000000e+00> : vector<32x128xf32>
    %2 = tpu.matmul %0, %1, %cst {dimension_numbers = #tpu.dot_dimension_numbers<[1], [0], [0], [1], [0, 0, 1, 1], [], []>} : vector<32x512xbf16>, vector<512x128xbf16>, vector<32x128xf32> -> vector<32x128xf32>
    %c0_3 = arith.constant 0 : index
    %c0_4 = arith.constant 0 : index
    %3 = vector.load %arg3[%c0_3, %c0_4] : memref<32x1xf32, #tpu.memory_space<vmem>>, vector<32x1xf32>
    %4 = vector.broadcast %3 : vector<32x1xf32> to vector<32x128xf32>
    %5 = arith.addf %2, %4 : vector<32x128xf32>
    %cst_5 = arith.constant 0.000000e+00 : f32
    %6 = vector.broadcast %cst_5 : f32 to vector<32x128xf32>
    %7 = arith.maximumf %5, %6 : vector<32x128xf32>
    %c0_6 = arith.constant 0 : index
    %c0_7 = arith.constant 0 : index
    %8 = vector.load %arg4[%c0_6, %c0_7] : memref<32x128xf32, #tpu.memory_space<vmem>>, vector<32x128xf32>
    tpu.vector_store %arg4[%c0_6, %c0_7], %7 {strides = array<i32>} : memref<32x128xf32, #tpu.memory_space<vmem>>, vector<32x128xf32>,
    return
  }
  func.func @transform_0(%arg0: i32) -> (i32, i32) {
    %c0_i32 = arith.constant 0 : i32
    %c0_i32_0 = arith.constant 0 : i32
    %c0_i32_1 = arith.constant 0 : i32
    return %c0_i32, %c0_i32_0 : i32, i32
  }
  func.func @transform_1(%arg0: i32) -> (i32, i32) {
    %c0_i32 = arith.constant 0 : i32
    %c0_i32_0 = arith.constant 0 : i32
    return %c0_i32, %arg0 : i32, i32
  }
  func.func @transform_2(%arg0: i32) -> (i32, i32) {
    %c0_i32 = arith.constant 0 : i32
    %c0_i32_0 = arith.constant 0 : i32
    %c0_i32_1 = arith.constant 0 : i32
    return %c0_i32, %c0_i32_0 : i32, i32
  }
  func.func @transform_3(%arg0: i32) -> (i32, i32) {
    %c0_i32 = arith.constant 0 : i32
    %c0_i32_0 = arith.constant 0 : i32
    return %c0_i32, %arg0 : i32, i32
  }
}

module attributes {stable_mosaic.version = 11 : i64} {
  func.func @_matmul_cf_kernel(%arg0: i32, %arg1: memref<32x512xbf16, #tpu.memory_space<vmem>>, %arg2: memref<512x32xbf16, #tpu.memory_space<vmem>>, %arg3: memref<32x1xf32, #tpu.memory_space<vmem>>, %arg4: memref<32x32xf32, #tpu.memory_space<vmem>>) attributes {dimension_semantics = [#tpu.dimension_semantics<parallel>], iteration_bounds = array<i64: 1>, scalar_prefetch = 0 : i64, scratch_operands = 0 : i64, tpu.core_type = #tpu.core_type<tc>, window_params = [{pipeline_mode = #tpu.pipeline_mode<synchronous>, transform_indices = @transform_0, window_bounds = array<i64: 32, 512>}, {transform_indices = @transform_1, window_bounds = array<i64: 512, 32>}, {pipeline_mode = #tpu.pipeline_mode<synchronous>, transform_indices = @transform_2, window_bounds = array<i64: 32, 1>}, {transform_indices = @transform_3, window_bounds = array<i64: 32, 32>}]} {
    %c0 = arith.constant 0 : index
    %c0_0 = arith.constant 0 : index
    %0 = vector.load %arg1[%c0, %c0_0] : memref<32x512xbf16, #tpu.memory_space<vmem>>, vector<32x512xbf16>
    %c0_1 = arith.constant 0 : index
    %c0_2 = arith.constant 0 : index
    %1 = vector.load %arg2[%c0_1, %c0_2] : memref<512x32xbf16, #tpu.memory_space<vmem>>, vector<512x32xbf16>
    %cst = arith.constant dense<0.000000e+00> : vector<32x32xf32>
    %2 = tpu.matmul %0, %1, %cst {dimension_numbers = #tpu.dot_dimension_numbers<[1], [0], [0], [1], [0, 0, 1, 1], [], []>} : vector<32x512xbf16>, vector<512x32xbf16>, vector<32x32xf32> -> vector<32x32xf32>
    %c0_3 = arith.constant 0 : index
    %c0_4 = arith.constant 0 : index
    %3 = vector.load %arg3[%c0_3, %c0_4] : memref<32x1xf32, #tpu.memory_space<vmem>>, vector<32x1xf32>
    %4 = vector.broadcast %3 : vector<32x1xf32> to vector<32x32xf32>
    %5 = arith.addf %2, %4 : vector<32x32xf32>
    %cst_5 = arith.constant 0.000000e+00 : f32
    %6 = vector.broadcast %cst_5 : f32 to vector<32x32xf32>
    %7 = arith.maximumf %5, %6 : vector<32x32xf32>
    %c0_6 = arith.constant 0 : index
    %c0_7 = arith.constant 0 : index
    %8 = vector.load %arg4[%c0_6, %c0_7] : memref<32x32xf32, #tpu.memory_space<vmem>>, vector<32x32xf32>
    tpu.vector_store %arg4[%c0_6, %c0_7], %7 {strides = array<i32>} : memref<32x32xf32, #tpu.memory_space<vmem>>, vector<32x32xf32>,
    return
  }
  func.func @transform_0(%arg0: i32) -> (i32, i32) {
    %c0_i32 = arith.constant 0 : i32
    %c0_i32_0 = arith.constant 0 : i32
    %c0_i32_1 = arith.constant 0 : i32
    return %c0_i32, %c0_i32_0 : i32, i32
  }
  func.func @transform_1(%arg0: i32) -> (i32, i32) {
    %c0_i32 = arith.constant 0 : i32
    %c0_i32_0 = arith.constant 0 : i32
    return %c0_i32, %arg0 : i32, i32
  }
  func.func @transform_2(%arg0: i32) -> (i32, i32) {
    %c0_i32 = arith.constant 0 : i32
    %c0_i32_0 = arith.constant 0 : i32
    %c0_i32_1 = arith.constant 0 : i32
    return %c0_i32, %c0_i32_0 : i32, i32
  }
  func.func @transform_3(%arg0: i32) -> (i32, i32) {
    %c0_i32 = arith.constant 0 : i32
    %c0_i32_0 = arith.constant 0 : i32
    return %c0_i32, %arg0 : i32, i32
  }
}

module attributes {stable_mosaic.version = 11 : i64} {
  func.func @_dense_core_kernel(%arg0: i32, %arg1: memref<8x128xf32, #tpu.memory_space<vmem>>, %arg2: memref<128x256xf32, #tpu.memory_space<vmem>>, %arg3: memref<1x256xf32, #tpu.memory_space<vmem>>, %arg4: memref<256x8xf32, #tpu.memory_space<vmem>>, %arg5: memref<1x8xf32, #tpu.memory_space<vmem>>, %arg6: memref<256x8xf32, #tpu.memory_space<vmem>>, %arg7: memref<1x8xf32, #tpu.memory_space<vmem>>, %arg8: memref<8x8xf32, #tpu.memory_space<vmem>>, %arg9: memref<8x256xf32, #tpu.memory_space<vmem>>, %arg10: memref<1x256xf32, #tpu.memory_space<vmem>>, %arg11: memref<256x128xf32, #tpu.memory_space<vmem>>, %arg12: memref<1x128xf32, #tpu.memory_space<vmem>>, %arg13: memref<8x8xf32, #tpu.memory_space<vmem>>, %arg14: memref<8x8xf32, #tpu.memory_space<vmem>>, %arg15: memref<8x8xf32, #tpu.memory_space<vmem>>, %arg16: memref<8x128xf32, #tpu.memory_space<vmem>>) attributes {dimension_semantics = [#tpu.dimension_semantics<arbitrary>], iteration_bounds = array<i64: 1>, scalar_prefetch = 0 : i64, scratch_operands = 0 : i64, tpu.core_type = #tpu.core_type<tc>, window_params = [{pipeline_mode = #tpu.pipeline_mode<synchronous>, transform_indices = @transform_0, window_bounds = array<i64: 8, 128>}, {pipeline_mode = #tpu.pipeline_mode<synchronous>, transform_indices = @transform_1, window_bounds = array<i64: 128, 256>}, {pipeline_mode = #tpu.pipeline_mode<synchronous>, transform_indices = @transform_2, window_bounds = array<i64: 1, 256>}, {pipeline_mode = #tpu.pipeline_mode<synchronous>, transform_indices = @transform_3, window_bounds = array<i64: 256, 8>}, {pipeline_mode = #tpu.pipeline_mode<synchronous>, transform_indices = @transform_4, window_bounds = array<i64: 1, 8>}, {pipeline_mode = #tpu.pipeline_mode<synchronous>, transform_indices = @transform_5, window_bounds = array<i64: 256, 8>}, {pipeline_mode = #tpu.pipeline_mode<synchronous>, transform_indices = @transform_6, window_bounds = array<i64: 1, 8>}, {pipeline_mode = #tpu.pipeline_mode<synchronous>, transform_indices = @transform_7, window_bounds = array<i64: 8, 8>}, {pipeline_mode = #tpu.pipeline_mode<synchronous>, transform_indices = @transform_8, window_bounds = array<i64: 8, 256>}, {pipeline_mode = #tpu.pipeline_mode<synchronous>, transform_indices = @transform_9, window_bounds = array<i64: 1, 256>}, {pipeline_mode = #tpu.pipeline_mode<synchronous>, transform_indices = @transform_10, window_bounds = array<i64: 256, 128>}, {pipeline_mode = #tpu.pipeline_mode<synchronous>, transform_indices = @transform_11, window_bounds = array<i64: 1, 128>}, {pipeline_mode = #tpu.pipeline_mode<synchronous>, transform_indices = @transform_12, window_bounds = array<i64: 8, 8>}, {pipeline_mode = #tpu.pipeline_mode<synchronous>, transform_indices = @transform_13, window_bounds = array<i64: 8, 8>}, {pipeline_mode = #tpu.pipeline_mode<synchronous>, transform_indices = @transform_14, window_bounds = array<i64: 8, 8>}, {pipeline_mode = #tpu.pipeline_mode<synchronous>, transform_indices = @transform_15, window_bounds = array<i64: 8, 128>}]} {
    %c0 = arith.constant 0 : index
    %c0_0 = arith.constant 0 : index
    %0 = vector.load %arg1[%c0, %c0_0] : memref<8x128xf32, #tpu.memory_space<vmem>>, vector<8x128xf32>
    %c0_1 = arith.constant 0 : index
    %c0_2 = arith.constant 0 : index
    %1 = vector.load %arg2[%c0_1, %c0_2] : memref<128x256xf32, #tpu.memory_space<vmem>>, vector<128x256xf32>
    %cst = arith.constant dense<0.000000e+00> : vector<8x256xf32>
    %2 = tpu.matmul %0, %1, %cst {dimension_numbers = #tpu.dot_dimension_numbers<[1], [0], [0], [1], [0, 0, 1, 1], [], []>} : vector<8x128xf32>, vector<128x256xf32>, vector<8x256xf32> -> vector<8x256xf32>
    %c0_3 = arith.constant 0 : index
    %c0_4 = arith.constant 0 : index
    %3 = vector.load %arg3[%c0_3, %c0_4] : memref<1x256xf32, #tpu.memory_space<vmem>>, vector<1x256xf32>
    %4 = vector.broadcast %3 : vector<1x256xf32> to vector<8x256xf32>
    %5 = arith.addf %2, %4 : vector<8x256xf32>
    %cst_5 = arith.constant 0.000000e+00 : f32
    %6 = vector.broadcast %cst_5 : f32 to vector<8x256xf32>
    %7 = arith.maximumf %5, %6 : vector<8x256xf32>
    %c0_6 = arith.constant 0 : index
    %c0_7 = arith.constant 0 : index
    %8 = vector.load %arg4[%c0_6, %c0_7] : memref<256x8xf32, #tpu.memory_space<vmem>>, vector<256x8xf32>
    %cst_8 = arith.constant dense<0.000000e+00> : vector<8x8xf32>
    %9 = tpu.matmul %7, %8, %cst_8 {dimension_numbers = #tpu.dot_dimension_numbers<[1], [0], [0], [1], [0, 0, 1, 1], [], []>} : vector<8x256xf32>, vector<256x8xf32>, vector<8x8xf32> -> vector<8x8xf32>
    %c0_9 = arith.constant 0 : index
    %c0_10 = arith.constant 0 : index
    %10 = vector.load %arg5[%c0_9, %c0_10] : memref<1x8xf32, #tpu.memory_space<vmem>>, vector<1x8xf32>
    %11 = vector.broadcast %10 : vector<1x8xf32> to vector<8x8xf32>
    %12 = arith.addf %9, %11 : vector<8x8xf32>
    %c0_11 = arith.constant 0 : index
    %c0_12 = arith.constant 0 : index
    %13 = vector.load %arg6[%c0_11, %c0_12] : memref<256x8xf32, #tpu.memory_space<vmem>>, vector<256x8xf32>
    %cst_13 = arith.constant dense<0.000000e+00> : vector<8x8xf32>
    %14 = tpu.matmul %7, %13, %cst_13 {dimension_numbers = #tpu.dot_dimension_numbers<[1], [0], [0], [1], [0, 0, 1, 1], [], []>} : vector<8x256xf32>, vector<256x8xf32>, vector<8x8xf32> -> vector<8x8xf32>
    %c0_14 = arith.constant 0 : index
    %c0_15 = arith.constant 0 : index
    %15 = vector.load %arg7[%c0_14, %c0_15] : memref<1x8xf32, #tpu.memory_space<vmem>>, vector<1x8xf32>
    %16 = vector.broadcast %15 : vector<1x8xf32> to vector<8x8xf32>
    %17 = arith.addf %14, %16 : vector<8x8xf32>
    %cst_16 = arith.constant 5.000000e-01 : f32
    %18 = vector.broadcast %cst_16 : f32 to vector<8x8xf32>
    %19 = arith.mulf %18, %17 : vector<8x8xf32>
    %20 = math.exp %19 : vector<8x8xf32>
    %c0_17 = arith.constant 0 : index
    %c0_18 = arith.constant 0 : index
    %21 = vector.load %arg8[%c0_17, %c0_18] : memref<8x8xf32, #tpu.memory_space<vmem>>, vector<8x8xf32>
    %22 = arith.mulf %20, %21 : vector<8x8xf32>
    %23 = arith.addf %12, %22 : vector<8x8xf32>
    %c0_19 = arith.constant 0 : index
    %c0_20 = arith.constant 0 : index
    %24 = vector.load %arg9[%c0_19, %c0_20] : memref<8x256xf32, #tpu.memory_space<vmem>>, vector<8x256xf32>
    %cst_21 = arith.constant dense<0.000000e+00> : vector<8x256xf32>
    %25 = tpu.matmul %23, %24, %cst_21 {dimension_numbers = #tpu.dot_dimension_numbers<[1], [0], [0], [1], [0, 0, 1, 1], [], []>} : vector<8x8xf32>, vector<8x256xf32>, vector<8x256xf32> -> vector<8x256xf32>
    %c0_22 = arith.constant 0 : index
    %c0_23 = arith.constant 0 : index
    %26 = vector.load %arg10[%c0_22, %c0_23] : memref<1x256xf32, #tpu.memory_space<vmem>>, vector<1x256xf32>
    %27 = vector.broadcast %26 : vector<1x256xf32> to vector<8x256xf32>
    %28 = arith.addf %25, %27 : vector<8x256xf32>
    %cst_24 = arith.constant 0.000000e+00 : f32
    %29 = vector.broadcast %cst_24 : f32 to vector<8x256xf32>
    %30 = arith.maximumf %28, %29 : vector<8x256xf32>
    %c0_25 = arith.constant 0 : index
    %c0_26 = arith.constant 0 : index
    %31 = vector.load %arg11[%c0_25, %c0_26] : memref<256x128xf32, #tpu.memory_space<vmem>>, vector<256x128xf32>
    %cst_27 = arith.constant dense<0.000000e+00> : vector<8x128xf32>
    %32 = tpu.matmul %30, %31, %cst_27 {dimension_numbers = #tpu.dot_dimension_numbers<[1], [0], [0], [1], [0, 0, 1, 1], [], []>} : vector<8x256xf32>, vector<256x128xf32>, vector<8x128xf32> -> vector<8x128xf32>
    %c0_28 = arith.constant 0 : index
    %c0_29 = arith.constant 0 : index
    %33 = vector.load %arg12[%c0_28, %c0_29] : memref<1x128xf32, #tpu.memory_space<vmem>>, vector<1x128xf32>
    %34 = vector.broadcast %33 : vector<1x128xf32> to vector<8x128xf32>
    %35 = arith.addf %32, %34 : vector<8x128xf32>
    %cst_30 = arith.constant 0.000000e+00 : f32
    %36 = vector.broadcast %cst_30 : f32 to vector<8x128xf32>
    %37 = arith.maximumf %35, %36 : vector<8x128xf32>
    %c0_31 = arith.constant 0 : index
    %c0_32 = arith.constant 0 : index
    %38 = vector.load %arg13[%c0_31, %c0_32] : memref<8x8xf32, #tpu.memory_space<vmem>>, vector<8x8xf32>
    tpu.vector_store %arg13[%c0_31, %c0_32], %12 {strides = array<i32>} : memref<8x8xf32, #tpu.memory_space<vmem>>, vector<8x8xf32>,
    %c0_33 = arith.constant 0 : index
    %c0_34 = arith.constant 0 : index
    %39 = vector.load %arg14[%c0_33, %c0_34] : memref<8x8xf32, #tpu.memory_space<vmem>>, vector<8x8xf32>
    tpu.vector_store %arg14[%c0_33, %c0_34], %17 {strides = array<i32>} : memref<8x8xf32, #tpu.memory_space<vmem>>, vector<8x8xf32>,
    %c0_35 = arith.constant 0 : index
    %c0_36 = arith.constant 0 : index
    %40 = vector.load %arg15[%c0_35, %c0_36] : memref<8x8xf32, #tpu.memory_space<vmem>>, vector<8x8xf32>
    tpu.vector_store %arg15[%c0_35, %c0_36], %23 {strides = array<i32>} : memref<8x8xf32, #tpu.memory_space<vmem>>, vector<8x8xf32>,
    %c0_37 = arith.constant 0 : index
    %c0_38 = arith.constant 0 : index
    %41 = vector.load %arg16[%c0_37, %c0_38] : memref<8x128xf32, #tpu.memory_space<vmem>>, vector<8x128xf32>
    tpu.vector_store %arg16[%c0_37, %c0_38], %37 {strides = array<i32>} : memref<8x128xf32, #tpu.memory_space<vmem>>, vector<8x128xf32>,
    return
  }
  func.func @transform_0(%arg0: i32) -> (i32, i32) {
    %c0_i32 = arith.constant 0 : i32
    %c0_i32_0 = arith.constant 0 : i32
    %c0_i32_1 = arith.constant 0 : i32
    return %c0_i32, %c0_i32_0 : i32, i32
  }
  func.func @transform_1(%arg0: i32) -> (i32, i32) {
    %c0_i32 = arith.constant 0 : i32
    %c0_i32_0 = arith.constant 0 : i32
    %c0_i32_1 = arith.constant 0 : i32
    return %c0_i32, %c0_i32_0 : i32, i32
  }
  func.func @transform_2(%arg0: i32) -> (i32, i32) {
    %c0_i32 = arith.constant 0 : i32
    %c0_i32_0 = arith.constant 0 : i32
    %c0_i32_1 = arith.constant 0 : i32
    return %c0_i32, %c0_i32_0 : i32, i32
  }
  func.func @transform_3(%arg0: i32) -> (i32, i32) {
    %c0_i32 = arith.constant 0 : i32
    %c0_i32_0 = arith.constant 0 : i32
    %c0_i32_1 = arith.constant 0 : i32
    return %c0_i32, %c0_i32_0 : i32, i32
  }
  func.func @transform_4(%arg0: i32) -> (i32, i32) {
    %c0_i32 = arith.constant 0 : i32
    %c0_i32_0 = arith.constant 0 : i32
    %c0_i32_1 = arith.constant 0 : i32
    return %c0_i32, %c0_i32_0 : i32, i32
  }
  func.func @transform_5(%arg0: i32) -> (i32, i32) {
    %c0_i32 = arith.constant 0 : i32
    %c0_i32_0 = arith.constant 0 : i32
    %c0_i32_1 = arith.constant 0 : i32
    return %c0_i32, %c0_i32_0 : i32, i32
  }
  func.func @transform_6(%arg0: i32) -> (i32, i32) {
    %c0_i32 = arith.constant 0 : i32
    %c0_i32_0 = arith.constant 0 : i32
    %c0_i32_1 = arith.constant 0 : i32
    return %c0_i32, %c0_i32_0 : i32, i32
  }
  func.func @transform_7(%arg0: i32) -> (i32, i32) {
    %c0_i32 = arith.constant 0 : i32
    %c0_i32_0 = arith.constant 0 : i32
    %c0_i32_1 = arith.constant 0 : i32
    return %c0_i32, %c0_i32_0 : i32, i32
  }
  func.func @transform_8(%arg0: i32) -> (i32, i32) {
    %c0_i32 = arith.constant 0 : i32
    %c0_i32_0 = arith.constant 0 : i32
    %c0_i32_1 = arith.constant 0 : i32
    return %c0_i32, %c0_i32_0 : i32, i32
  }
  func.func @transform_9(%arg0: i32) -> (i32, i32) {
    %c0_i32 = arith.constant 0 : i32
    %c0_i32_0 = arith.constant 0 : i32
    %c0_i32_1 = arith.constant 0 : i32
    return %c0_i32, %c0_i32_0 : i32, i32
  }
  func.func @transform_10(%arg0: i32) -> (i32, i32) {
    %c0_i32 = arith.constant 0 : i32
    %c0_i32_0 = arith.constant 0 : i32
    %c0_i32_1 = arith.constant 0 : i32
    return %c0_i32, %c0_i32_0 : i32, i32
  }
  func.func @transform_11(%arg0: i32) -> (i32, i32) {
    %c0_i32 = arith.constant 0 : i32
    %c0_i32_0 = arith.constant 0 : i32
    %c0_i32_1 = arith.constant 0 : i32
    return %c0_i32, %c0_i32_0 : i32, i32
  }
  func.func @transform_12(%arg0: i32) -> (i32, i32) {
    %c0_i32 = arith.constant 0 : i32
    %c0_i32_0 = arith.constant 0 : i32
    %c0_i32_1 = arith.constant 0 : i32
    return %c0_i32, %c0_i32_0 : i32, i32
  }
  func.func @transform_13(%arg0: i32) -> (i32, i32) {
    %c0_i32 = arith.constant 0 : i32
    %c0_i32_0 = arith.constant 0 : i32
    %c0_i32_1 = arith.constant 0 : i32
    return %c0_i32, %c0_i32_0 : i32, i32
  }
  func.func @transform_14(%arg0: i32) -> (i32, i32) {
    %c0_i32 = arith.constant 0 : i32
    %c0_i32_0 = arith.constant 0 : i32
    %c0_i32_1 = arith.constant 0 : i32
    return %c0_i32, %c0_i32_0 : i32, i32
  }
  func.func @transform_15(%arg0: i32) -> (i32, i32) {
    %c0_i32 = arith.constant 0 : i32
    %c0_i32_0 = arith.constant 0 : i32
    %c0_i32_1 = arith.constant 0 : i32
    return %c0_i32, %c0_i32_0 : i32, i32
  }
}

module attributes {stable_mosaic.version = 11 : i64} {
  func.func @_matmul_cf_kernel(%arg0: i32, %arg1: memref<128x288xbf16, #tpu.memory_space<vmem>>, %arg2: memref<288x32xbf16, #tpu.memory_space<vmem>>, %arg3: memref<128x1xf32, #tpu.memory_space<vmem>>, %arg4: memref<128x32xf32, #tpu.memory_space<vmem>>) attributes {dimension_semantics = [#tpu.dimension_semantics<parallel>], iteration_bounds = array<i64: 1>, scalar_prefetch = 0 : i64, scratch_operands = 0 : i64, tpu.core_type = #tpu.core_type<tc>, window_params = [{pipeline_mode = #tpu.pipeline_mode<synchronous>, transform_indices = @transform_0, window_bounds = array<i64: 128, 288>}, {transform_indices = @transform_1, window_bounds = array<i64: 288, 32>}, {pipeline_mode = #tpu.pipeline_mode<synchronous>, transform_indices = @transform_2, window_bounds = array<i64: 128, 1>}, {transform_indices = @transform_3, window_bounds = array<i64: 128, 32>}]} {
    %c0 = arith.constant 0 : index
    %c0_0 = arith.constant 0 : index
    %0 = vector.load %arg1[%c0, %c0_0] : memref<128x288xbf16, #tpu.memory_space<vmem>>, vector<128x288xbf16>
    %c0_1 = arith.constant 0 : index
    %c0_2 = arith.constant 0 : index
    %1 = vector.load %arg2[%c0_1, %c0_2] : memref<288x32xbf16, #tpu.memory_space<vmem>>, vector<288x32xbf16>
    %cst = arith.constant dense<0.000000e+00> : vector<128x32xf32>
    %2 = tpu.matmul %0, %1, %cst {dimension_numbers = #tpu.dot_dimension_numbers<[1], [0], [0], [1], [0, 0, 1, 1], [], []>} : vector<128x288xbf16>, vector<288x32xbf16>, vector<128x32xf32> -> vector<128x32xf32>
    %c0_3 = arith.constant 0 : index
    %c0_4 = arith.constant 0 : index
    %3 = vector.load %arg3[%c0_3, %c0_4] : memref<128x1xf32, #tpu.memory_space<vmem>>, vector<128x1xf32>
    %4 = vector.broadcast %3 : vector<128x1xf32> to vector<128x32xf32>
    %5 = arith.addf %2, %4 : vector<128x32xf32>
    %cst_5 = arith.constant 0.000000e+00 : f32
    %6 = vector.broadcast %cst_5 : f32 to vector<128x32xf32>
    %7 = arith.maximumf %5, %6 : vector<128x32xf32>
    %c0_6 = arith.constant 0 : index
    %c0_7 = arith.constant 0 : index
    %8 = vector.load %arg4[%c0_6, %c0_7] : memref<128x32xf32, #tpu.memory_space<vmem>>, vector<128x32xf32>
    tpu.vector_store %arg4[%c0_6, %c0_7], %7 {strides = array<i32>} : memref<128x32xf32, #tpu.memory_space<vmem>>, vector<128x32xf32>,
    return
  }
  func.func @transform_0(%arg0: i32) -> (i32, i32) {
    %c0_i32 = arith.constant 0 : i32
    %c0_i32_0 = arith.constant 0 : i32
    %c0_i32_1 = arith.constant 0 : i32
    return %c0_i32, %c0_i32_0 : i32, i32
  }
  func.func @transform_1(%arg0: i32) -> (i32, i32) {
    %c0_i32 = arith.constant 0 : i32
    %c0_i32_0 = arith.constant 0 : i32
    return %c0_i32, %arg0 : i32, i32
  }
  func.func @transform_2(%arg0: i32) -> (i32, i32) {
    %c0_i32 = arith.constant 0 : i32
    %c0_i32_0 = arith.constant 0 : i32
    %c0_i32_1 = arith.constant 0 : i32
    return %c0_i32, %c0_i32_0 : i32, i32
  }
  func.func @transform_3(%arg0: i32) -> (i32, i32) {
    %c0_i32 = arith.constant 0 : i32
    %c0_i32_0 = arith.constant 0 : i32
    return %c0_i32, %arg0 : i32, i32
  }
}

module attributes {stable_mosaic.version = 11 : i64} {
  func.func @_matmul_cf_kernel(%arg0: i32, %arg1: memref<128x288xbf16, #tpu.memory_space<vmem>>, %arg2: memref<288x128xbf16, #tpu.memory_space<vmem>>, %arg3: memref<128x1xf32, #tpu.memory_space<vmem>>, %arg4: memref<128x128xf32, #tpu.memory_space<vmem>>) attributes {dimension_semantics = [#tpu.dimension_semantics<parallel>], iteration_bounds = array<i64: 1>, scalar_prefetch = 0 : i64, scratch_operands = 0 : i64, tpu.core_type = #tpu.core_type<tc>, window_params = [{pipeline_mode = #tpu.pipeline_mode<synchronous>, transform_indices = @transform_0, window_bounds = array<i64: 128, 288>}, {transform_indices = @transform_1, window_bounds = array<i64: 288, 128>}, {pipeline_mode = #tpu.pipeline_mode<synchronous>, transform_indices = @transform_2, window_bounds = array<i64: 128, 1>}, {transform_indices = @transform_3, window_bounds = array<i64: 128, 128>}]} {
    %c0 = arith.constant 0 : index
    %c0_0 = arith.constant 0 : index
    %0 = vector.load %arg1[%c0, %c0_0] : memref<128x288xbf16, #tpu.memory_space<vmem>>, vector<128x288xbf16>
    %c0_1 = arith.constant 0 : index
    %c0_2 = arith.constant 0 : index
    %1 = vector.load %arg2[%c0_1, %c0_2] : memref<288x128xbf16, #tpu.memory_space<vmem>>, vector<288x128xbf16>
    %cst = arith.constant dense<0.000000e+00> : vector<128x128xf32>
    %2 = tpu.matmul %0, %1, %cst {dimension_numbers = #tpu.dot_dimension_numbers<[1], [0], [0], [1], [0, 0, 1, 1], [], []>} : vector<128x288xbf16>, vector<288x128xbf16>, vector<128x128xf32> -> vector<128x128xf32>
    %c0_3 = arith.constant 0 : index
    %c0_4 = arith.constant 0 : index
    %3 = vector.load %arg3[%c0_3, %c0_4] : memref<128x1xf32, #tpu.memory_space<vmem>>, vector<128x1xf32>
    %4 = vector.broadcast %3 : vector<128x1xf32> to vector<128x128xf32>
    %5 = arith.addf %2, %4 : vector<128x128xf32>
    %cst_5 = arith.constant 0.000000e+00 : f32
    %6 = vector.broadcast %cst_5 : f32 to vector<128x128xf32>
    %7 = arith.maximumf %5, %6 : vector<128x128xf32>
    %c0_6 = arith.constant 0 : index
    %c0_7 = arith.constant 0 : index
    %8 = vector.load %arg4[%c0_6, %c0_7] : memref<128x128xf32, #tpu.memory_space<vmem>>, vector<128x128xf32>
    tpu.vector_store %arg4[%c0_6, %c0_7], %7 {strides = array<i32>} : memref<128x128xf32, #tpu.memory_space<vmem>>, vector<128x128xf32>,
    return
  }
  func.func @transform_0(%arg0: i32) -> (i32, i32) {
    %c0_i32 = arith.constant 0 : i32
    %c0_i32_0 = arith.constant 0 : i32
    %c0_i32_1 = arith.constant 0 : i32
    return %c0_i32, %c0_i32_0 : i32, i32
  }
  func.func @transform_1(%arg0: i32) -> (i32, i32) {
    %c0_i32 = arith.constant 0 : i32
    %c0_i32_0 = arith.constant 0 : i32
    return %c0_i32, %arg0 : i32, i32
  }
  func.func @transform_2(%arg0: i32) -> (i32, i32) {
    %c0_i32 = arith.constant 0 : i32
    %c0_i32_0 = arith.constant 0 : i32
    %c0_i32_1 = arith.constant 0 : i32
    return %c0_i32, %c0_i32_0 : i32, i32
  }
  func.func @transform_3(%arg0: i32) -> (i32, i32) {
    %c0_i32 = arith.constant 0 : i32
    %c0_i32_0 = arith.constant 0 : i32
    return %c0_i32, %arg0 : i32, i32
  }
}

module attributes {stable_mosaic.version = 11 : i64} {
  func.func @_matmul_cf_kernel(%arg0: i32, %arg1: memref<16x288xbf16, #tpu.memory_space<vmem>>, %arg2: memref<288x256xbf16, #tpu.memory_space<vmem>>, %arg3: memref<16x1xf32, #tpu.memory_space<vmem>>, %arg4: memref<16x256xf32, #tpu.memory_space<vmem>>) attributes {dimension_semantics = [#tpu.dimension_semantics<parallel>], iteration_bounds = array<i64: 2>, scalar_prefetch = 0 : i64, scratch_operands = 0 : i64, tpu.core_type = #tpu.core_type<tc>, window_params = [{pipeline_mode = #tpu.pipeline_mode<synchronous>, transform_indices = @transform_0, window_bounds = array<i64: 16, 288>}, {transform_indices = @transform_1, window_bounds = array<i64: 288, 256>}, {pipeline_mode = #tpu.pipeline_mode<synchronous>, transform_indices = @transform_2, window_bounds = array<i64: 16, 1>}, {transform_indices = @transform_3, window_bounds = array<i64: 16, 256>}]} {
    %c0 = arith.constant 0 : index
    %c0_0 = arith.constant 0 : index
    %0 = vector.load %arg1[%c0, %c0_0] : memref<16x288xbf16, #tpu.memory_space<vmem>>, vector<16x288xbf16>
    %c0_1 = arith.constant 0 : index
    %c0_2 = arith.constant 0 : index
    %1 = vector.load %arg2[%c0_1, %c0_2] : memref<288x256xbf16, #tpu.memory_space<vmem>>, vector<288x256xbf16>
    %cst = arith.constant dense<0.000000e+00> : vector<16x256xf32>
    %2 = tpu.matmul %0, %1, %cst {dimension_numbers = #tpu.dot_dimension_numbers<[1], [0], [0], [1], [0, 0, 1, 1], [], []>} : vector<16x288xbf16>, vector<288x256xbf16>, vector<16x256xf32> -> vector<16x256xf32>
    %c0_3 = arith.constant 0 : index
    %c0_4 = arith.constant 0 : index
    %3 = vector.load %arg3[%c0_3, %c0_4] : memref<16x1xf32, #tpu.memory_space<vmem>>, vector<16x1xf32>
    %4 = vector.broadcast %3 : vector<16x1xf32> to vector<16x256xf32>
    %5 = arith.addf %2, %4 : vector<16x256xf32>
    %c0_5 = arith.constant 0 : index
    %c0_6 = arith.constant 0 : index
    %6 = vector.load %arg4[%c0_5, %c0_6] : memref<16x256xf32, #tpu.memory_space<vmem>>, vector<16x256xf32>
    tpu.vector_store %arg4[%c0_5, %c0_6], %5 {strides = array<i32>} : memref<16x256xf32, #tpu.memory_space<vmem>>, vector<16x256xf32>,
    return
  }
  func.func @transform_0(%arg0: i32) -> (i32, i32) {
    %c0_i32 = arith.constant 0 : i32
    %c0_i32_0 = arith.constant 0 : i32
    %c0_i32_1 = arith.constant 0 : i32
    return %c0_i32, %c0_i32_0 : i32, i32
  }
  func.func @transform_1(%arg0: i32) -> (i32, i32) {
    %c0_i32 = arith.constant 0 : i32
    %c0_i32_0 = arith.constant 0 : i32
    return %c0_i32, %arg0 : i32, i32
  }
  func.func @transform_2(%arg0: i32) -> (i32, i32) {
    %c0_i32 = arith.constant 0 : i32
    %c0_i32_0 = arith.constant 0 : i32
    %c0_i32_1 = arith.constant 0 : i32
    return %c0_i32, %c0_i32_0 : i32, i32
  }
  func.func @transform_3(%arg0: i32) -> (i32, i32) {
    %c0_i32 = arith.constant 0 : i32
    %c0_i32_0 = arith.constant 0 : i32
    return %c0_i32, %arg0 : i32, i32
  }
}

</mosaic_0001>

<bundles_post_ra>
// kernel: quadruplet_forward.7
= control target key start
LH: loop header
LB: loop body
LE: loop exit
PB: predicated region body
PF: predicated region fallthrough
CT: control target
= control target key end

     0   :  { %s627_s12 = smov 0   ;;  %s629_s13 = smov 0   ;;  %s745_s0 = inlined_call_operand.vmem [shape: bf16[32,64], index: 0, kind: input, shape index: {}]   ;;  %s746_s1 = inlined_call_operand.vmem [shape: bf16[64,512], index: 1, kind: input, shape index: {}]   ;;  %s747_s2 = inlined_call_operand.vmem [shape: f32[32,1], index: 2, kind: input, shape index: {}]   ;;  %s748_s3 = inlined_call_operand.vmem [shape: f32[32,512], index: 3, kind: output, shape index: {}]  }
   0x1   :  { %s631_s14 = smov 0  }
   0x2 LB: > { %s476_s15 = sadd.s32 4294967295, %s604_s14   ;;  %s644_s16 = sadd.s32 1, %s604_s14   ;;  %s604_s14 = sphi %s631_s14, %s752_s14   ;;  %s600_s13 = sphi %s629_s13, %s751_s13   ;;  %s596_s12 = sphi %s627_s12, %s750_s12  }
   0x3   : > { %s38_s17 = ssub.s32 %s604_s14, %s644_s16  ;;  %s41_s18 = sadd.s32 1, %s600_s13 }
   0x4   : > { %p39_p0 = scmp.eq.s32.totalorder %s38_s17, 0  ;;  %p48_p1 = scmp.ne.s32.totalorder %s600_s13, %s596_s12 }
   0x5   : > { %p49_p2 = scmp.eq.s32.totalorder %s604_s14, 0  ;;  %p99_p3 = scmp.eq.s32.totalorder %s476_s15, 1 }
   0x6   : > { %s655_s19 = scalar_select %p39_p0, %s600_s13, %s41_s18  }
   0x7   : > { %p50_p4 = por %p49_p2, %p48_p1  ;;  %p657_p5 = por %p99_p3, %p48_p1 }
   0x8   : > { %p479_p6 = scmp.ge.s32.totalorder %s604_s14, 2 }
   0xa   : > { %127 = sbr.rel (%p479_p6) target bundleno = 27 (0x1b), region = 24 }
   0xf   : > { %130 = sbr.rel (!%p50_p4) target bundleno = 27 (0x1b), region = 28  ;;  %s132_s21 = sand.u32 (%p50_p4), 1, %s600_s13  }
  0x10   : > { %s535_s22 = sshll.u32 (%p50_p4), %s604_s14, 3  ;;  %s480_s23 = sshll.u32 (%p50_p4), %s132_s21, 6 }
  0x11   : > { %s137_s26 = scalar_lea.vmem (%p50_p4), %s746_s1, %s535_s22  ;;  %s134_s27 = scalar_lea.vmem (%p50_p4), [#allocation2], %s480_s23 }
  0x12   : > { %v180_v0 = vld [vmem:[%s137_s26] sm:$0xff] (%p50_p4)  ;;  %v182_v1 = vld [vmem:[%s137_s26 + $0x10] sm:$0xff] (%p50_p4) }
  0x13   : > { %v184_v2 = vld [vmem:[%s137_s26 + $0x20] sm:$0xff] (%p50_p4)  ;;  %181 = vst [vmem:[%s134_s27] sm:$0xff] (%p50_p4), %v180_v0  ;;  %v186_v3 = vld [vmem:[%s137_s26 + $0x30] sm:$0xff] (%p50_p4) }
  0x14   : > { %183 = vst [vmem:[%s134_s27 + $0x8] sm:$0xff] %v182_v1  ;;  %v188_v4 = vld [vmem:[%s137_s26 + $0x40] sm:$0xff]  ;;  %v190_v5 = vld [vmem:[%s137_s26 + $0x50] sm:$0xff] }
  0x15   : > { %185 = vst [vmem:[%s134_s27 + $0x10] sm:$0xff] %v184_v2  ;;  %v192_v6 = vld [vmem:[%s137_s26 + $0x60] sm:$0xff]  ;;  %v194_v7 = vld [vmem:[%s137_s26 + $0x70] sm:$0xff] }
  0x16   : > { %187 = vst [vmem:[%s134_s27 + $0x18] sm:$0xff] %v186_v3 }
  0x17   : > { %189 = vst [vmem:[%s134_s27 + $0x20] sm:$0xff] %v188_v4 }
  0x18   : > { %191 = vst [vmem:[%s134_s27 + $0x28] sm:$0xff] %v190_v5 }
  0x19   : > { %193 = vst [vmem:[%s134_s27 + $0x30] sm:$0xff] %v192_v6 }
  0x1a   : > { %195 = vst [vmem:[%s134_s27 + $0x38] sm:$0xff] %v194_v7 }
  0x1b PF: > { %p483_p7 = scmp.ge.s32.totalorder %s604_s14, 1  ;;  %p200_p8 = scmp.lt.s32.totalorder %s604_s14, 3 }
  0x1d   : > { %p201_p9 = pnand %p483_p7, %p200_p8 }
  0x1e   : > { %s207_s28 = sand.u32 (!%p201_p9), 1, %s596_s12  }
  0x1f   : > { %204 = sbr.rel (%p201_p9) target bundleno = 209 (0xd1), region = 66  ;;  %s673_s4 = sshll.u32 (!%p201_p9), %s207_s28, 6 }
  0x20   : > { %s679_s7 = scalar_lea.vmem (!%p201_p9), [#allocation2], %s673_s4  ;;  %s710_s22 = scalar_lea.vmem (!%p201_p9), [#allocation3], %s673_s4 }
  0x24   : > { %v246_v8 = vld [vmem:[%s747_s2 + $0x10] sm:$0xff]  ;;  %v606_v9 = vmov 0   ;;  %v244_v10 = vld [vmem:[%s747_s2] sm:$0xff]  ;;  %v545_v12 = vld [vmem:[%s679_s7 + $0x34] sm:$0xf0]  ;;  %vm318_vm0 = vcmask 523264  }
  0x25   : > { %581 = vset.pattern.permute.xlu1 %v606_v9  ;;  %580 = vset.pattern.permute.xlu0 %v606_v9  ;;  %v520_v11 = vld [vmem:[%s679_s7 + $0x30] sm:$0xf]  ;;  %v544_v13 = vld [vmem:[%s679_s7 + $0x34] sm:$0xf]  ;;  %v522_v15 = vld [vmem:[%s679_s7 + $0x38] sm:$0xf0] }
  0x26   : > { %260 = vperm.xlu1 %581, %v246_v8   ;;  %250 = vperm.xlu0 %580, %v244_v10   ;;  %v521_v14 = vor.u32 %v545_v12, %v520_v11  ;;  %v512_v16 = vld [vmem:[%s679_s7 + $0x20] sm:$0xf]  ;;  %v543_v17 = vld [vmem:[%s679_s7 + $0x24] sm:$0xf0]  ;;  %v525_v18 = vor.u32 %v544_v13, %v522_v15  ;;  %v542_v19 = vld [vmem:[%s679_s7 + $0x24] sm:$0xf] }
  0x27   : > { %v514_v20 = vld [vmem:[%s679_s7 + $0x28] sm:$0xf0]  ;;  %v513_v21 = vor.u32 %v543_v17, %v512_v16  ;;  %v504_v23 = vld [vmem:[%s679_s7 + $0x10] sm:$0xf]  ;;  %v541_v24 = vld [vmem:[%s679_s7 + $0x14] sm:$0xf0] }
  0x28   : > { %329 = vmatpush.bf16.msra.mxu0 %v521_v14  ;;  %547 = vmatpush.bf16.msra.mxu2 %v521_v14  ;;  %v517_v22 = vor.u32 %v542_v19, %v514_v20  ;;  %v540_v25 = vld [vmem:[%s679_s7 + $0x14] sm:$0xf]  ;;  %v506_v26 = vld [vmem:[%s679_s7 + $0x18] sm:$0xf0]  ;;  %v245_v28 = vld [vmem:[%s747_s2 + $0x8] sm:$0xff]  ;;  %v505_v29 = vor.u32 %v541_v24, %v504_v23  ;;  %s546_s23 = sshll.u32 (%p657_p5), %s476_s15, 4 }
  0x29   : > { %348 = vmatpush.bf16.msra.mxu1 %v525_v18  ;;  %551 = vmatpush.bf16.msra.mxu3 %v525_v18  ;;  %v247_v27 = vld [vmem:[%s747_s2 + $0x18] sm:$0xff]  ;;  %v509_v30 = vor.u32 %v540_v25, %v506_v26  ;;  %v496_v31 = vld [vmem:[%s679_s7] sm:$0xf]  ;;  %v539_v32 = vld [vmem:[%s679_s7 + $0x4] sm:$0xf0]  ;;  %s388_s26 = scalar_lea.vmem (%p657_p5), %s748_s3, %s546_s23 }
  0x2a   : > { %v538_v33 = vld [vmem:[%s679_s7 + $0x4] sm:$0xf]  ;;  %v498_v34 = vld [vmem:[%s679_s7 + $0x8] sm:$0xf0]  ;;  %v497_v35 = vor.u32 %v539_v32, %v496_v31 }
  0x2b   : > { %v501_v36 = vor.u32 %v538_v33, %v498_v34  ;;  %v536_v37 = vld [vmem:[%s745_s0] sm:$0xff]  ;;  %v537_v38 = vld [vmem:[%s745_s0 + $0x8] sm:$0xff] }
  0x2c   : > { %330 = vmatpush.bf16.msra.mxu0 %v513_v21  ;;  %548 = vmatpush.bf16.msra.mxu2 %v513_v21 }
  0x2d   : > { %349 = vmatpush.bf16.msra.mxu1 %v517_v22  ;;  %552 = vmatpush.bf16.msra.mxu3 %v517_v22 }
  0x2e   : > { %265 = vperm.xlu1 %581, %v247_v27   ;;  %255 = vperm.xlu0 %580, %v245_v28  }
  0x30   : > { %331 = vmatpush.bf16.msra.mxu0 %v505_v29  ;;  %549 = vmatpush.bf16.msra.mxu2 %v505_v29 }
  0x31   : > { %350 = vmatpush.bf16.msra.mxu1 %v509_v30  ;;  %553 = vmatpush.bf16.msra.mxu3 %v509_v30 }
  0x34   : > { %332 = vmatpush.bf16.msra.mxu0 %v497_v35  ;;  %550 = vmatpush.bf16.msra.mxu2 %v497_v35 }
  0x35   : > { %351 = vmatpush.bf16.msra.mxu1 %v501_v36  ;;  %554 = vmatpush.bf16.msra.mxu3 %v501_v36 }
  0x37   : > { %526 = vmatmul.msk.bf16.vlgmr.msra.gmra.mxu0 %vm318_vm0, %v536_v37  ;;  %527 = vmatmul.msk.bf16.vlgmr.msra.gmra.mxu2 %vm318_vm0, %v537_v38 }
  0x38   : > { %528 = vmatmul.msk.bf16.vlgmr.msra.gmra.mxu1 %vm318_vm0, %v536_v37  ;;  %529 = vmatmul.msk.bf16.vlgmr.msra.gmra.mxu3 %vm318_vm0, %v537_v38 }
  0x98   : > { %v251_v39 = vpop.permute.xlu0 %250  ;;  %v261_v45 = vpop.permute.xlu1 %260 }
  0xa0   : > { %v256_v50 = vpop.permute.xlu0 %255  ;;  %v266_v60 = vpop.permute.xlu1 %265 }
  0xb4   : > { %v334_v40 = vpop.f32.mrf.mxu0 }
  0xb5   : > { %v335_v41 = vadd.f32 %v334_v40, %v251_v39  ;;  %v353_v42 = vpop.f32.mrf.mxu1 }
  0xb6   : > { %v354_v43 = vadd.f32 %v353_v42, %v251_v39 }
  0xb7   : > { %v363_v44 = vmax.f32 %v335_v41, 0.0 }
  0xb8   : > { %v364_v46 = vmax.f32 %v354_v43, 0.0 }
  0xb9   : > { %371 = vst [vmem:[%s710_s22] sm:$0xff] %v363_v44 }
  0xba   : > { %372 = vst [vmem:[%s710_s22 + $0x8] sm:$0xff] %v364_v46  ;;  %v339_v47 = vpop.f32.mrf.mxu2 }
  0xbb   : > { %v340_v48 = vadd.f32 %v339_v47, %v261_v45  ;;  %v358_v49 = vpop.f32.mrf.mxu3 }
  0xbc   : > { %v359_v51 = vadd.f32 %v358_v49, %v261_v45  ;;  %v336_v52 = vpop.f32.mrf.mxu0 }
  0xbd   : > { %v367_v53 = vmax.f32 %v340_v48, 0.0  ;;  %v337_v54 = vadd.f32 %v336_v52, %v256_v50  ;;  %v355_v55 = vpop.f32.mrf.mxu1 }
  0xbe   : > { %v368_v56 = vmax.f32 %v359_v51, 0.0  ;;  %v356_v57 = vadd.f32 %v355_v55, %v256_v50 }
  0xbf   : > { %375 = vst [vmem:[%s710_s22 + $0x20] sm:$0xff] %v367_v53  ;;  %v365_v58 = vmax.f32 %v337_v54, 0.0 }
  0xc0   : > { %376 = vst [vmem:[%s710_s22 + $0x28] sm:$0xff] %v368_v56  ;;  %v366_v59 = vmax.f32 %v356_v57, 0.0  ;;  %v401_v3 = vld [vmem:[%s710_s22] sm:$0xff] (%p657_p5) }
  0xc1   : > { %373 = vst [vmem:[%s710_s22 + $0x10] sm:$0xff] %v365_v58  ;;  %v403_v4 = vld [vmem:[%s710_s22 + $0x8] sm:$0xff] (%p657_p5) }
  0xc2   : > { %374 = vst [vmem:[%s710_s22 + $0x18] sm:$0xff] %v366_v59  ;;  %v341_v61 = vpop.f32.mrf.mxu2 }
  0xc3   : > { %v342_v62 = vadd.f32 %v341_v61, %v266_v60  ;;  %v360_v63 = vpop.f32.mrf.mxu3  ;;  %402 = vst [vmem:[%s388_s26] sm:$0xff] (%p657_p5), %v401_v3 }
  0xc4   : > { %v361_v0 = vadd.f32 %v360_v63, %v266_v60  ;;  %385 = sbr.rel (!%p657_p5) target bundleno = 209 (0xd1), region = 74  ;;  %404 = vst [vmem:[%s388_s26 + $0x8] sm:$0xff] (%p657_p5), %v403_v4 }
  0xc5   : > { %v369_v1 = vmax.f32 %v342_v62, 0.0 }
  0xc6   : > { %v370_v2 = vmax.f32 %v361_v0, 0.0  ;;  %v409_v7 = vld [vmem:[%s710_s22 + $0x20] sm:$0xff] (%p657_p5) }
  0xc7   : > { %377 = vst [vmem:[%s710_s22 + $0x30] sm:$0xff] %v369_v1  ;;  %v411_v8 = vld [vmem:[%s710_s22 + $0x28] sm:$0xff] (%p657_p5) }
  0xc8   : > { %378 = vst [vmem:[%s710_s22 + $0x38] sm:$0xff] %v370_v2  ;;  %v405_v5 = vld [vmem:[%s710_s22 + $0x10] sm:$0xff] (%p657_p5) }
  0xc9   : > { %v407_v6 = vld [vmem:[%s710_s22 + $0x18] sm:$0xff]  ;;  %406 = vst [vmem:[%s388_s26 + $0x20] sm:$0xff] %v405_v5 }
  0xca   : > { %408 = vst [vmem:[%s388_s26 + $0x28] sm:$0xff] %v407_v6 }
  0xcb   : > { %410 = vst [vmem:[%s388_s26 + $0x40] sm:$0xff] %v409_v7 }
  0xcc   : > { %412 = vst [vmem:[%s388_s26 + $0x48] sm:$0xff] %v411_v8 }
  0xce   : > { %v413_v9 = vld [vmem:[%s710_s22 + $0x30] sm:$0xff] }
  0xcf   : > { %v415_v10 = vld [vmem:[%s710_s22 + $0x38] sm:$0xff]  ;;  %414 = vst [vmem:[%s388_s26 + $0x60] sm:$0xff] %v413_v9 }
  0xd0   : > { %416 = vst [vmem:[%s388_s26 + $0x68] sm:$0xff] %v415_v10 }
  0xd1 PF: > { %p10_p10 = scmp.ge.s32.totalorder %s644_s16, 4   ;;  %s750_s12 = smov %s600_s13 }
  0xd2   : > { %s751_s13 = smov %s655_s19  ;;  %s752_s14 = smov %s644_s16 }
  0xd3   :  { %12 = sbr.rel (!%p10_p10) target bundleno = 2 (0x2), region = 128 }

// kernel: quadruplet_forward.8
= control target key start
LH: loop header
LB: loop body
LE: loop exit
PB: predicated region body
PF: predicated region fallthrough
CT: control target
= control target key end

     0   :  { %v633_v8 = vmov 0   ;;  %s822_s1 = inlined_call_operand.vmem [shape: bf16[512,128], index: 1, kind: input, shape index: {}]   ;;  %s823_s2 = inlined_call_operand.vmem [shape: f32[32,1], index: 2, kind: input, shape index: {}]   ;;  %s824_s0 = inlined_call_operand.vmem [shape: bf16[32,512], index: 0, kind: input, shape index: {}]   ;;  %s825_s3 = inlined_call_operand.vmem [shape: f32[32,128], index: 3, kind: output, shape index: {}]  }
   0x1   :  { %v605_v0 = vld [vmem:[%s822_s1 + $0x38] sm:$0xff]  ;;  %v604_v4 = vld [vmem:[%s822_s1 + $0x30] sm:$0xff]  ;;  %631 = vset.pattern.permute.xlu0 %v633_v8  ;;  %632 = vset.pattern.permute.xlu1 %v633_v8  ;;  %v603_v9 = vld [vmem:[%s822_s1 + $0x28] sm:$0xff] }
   0x2   :  { %v613_v1 = vld [vmem:[%s822_s1 + $0x78] sm:$0xff]  ;;  %342 = vmatpush.bf16.msra.mxu0 %v605_v0  ;;  %v612_v5 = vld [vmem:[%s822_s1 + $0x70] sm:$0xff]  ;;  %v611_v10 = vld [vmem:[%s822_s1 + $0x68] sm:$0xff] }
   0x3   :  { %v621_v2 = vld [vmem:[%s822_s1 + $0xb8] sm:$0xff]  ;;  %361 = vmatpush.bf16.msra.mxu1 %v613_v1  ;;  %v620_v6 = vld [vmem:[%s822_s1 + $0xb0] sm:$0xff]  ;;  %v619_v11 = vld [vmem:[%s822_s1 + $0xa8] sm:$0xff] }
   0x4   :  { %v629_v3 = vld [vmem:[%s822_s1 + $0xf8] sm:$0xff]  ;;  %380 = vmatpush.bf16.msra.mxu2 %v621_v2  ;;  %v628_v7 = vld [vmem:[%s822_s1 + $0xf0] sm:$0xff]  ;;  %v627_v12 = vld [vmem:[%s822_s1 + $0xe8] sm:$0xff] }
   0x5   :  { %399 = vmatpush.bf16.msra.mxu3 %v629_v3  ;;  %v602_v13 = vld [vmem:[%s822_s1 + $0x20] sm:$0xff]  ;;  %v601_v18 = vld [vmem:[%s822_s1 + $0x18] sm:$0xff]  ;;  %v600_v22 = vld [vmem:[%s822_s1 + $0x10] sm:$0xff] }
   0x6   :  { %343 = vmatpush.bf16.msra.mxu0 %v604_v4  ;;  %v610_v14 = vld [vmem:[%s822_s1 + $0x60] sm:$0xff]  ;;  %v609_v19 = vld [vmem:[%s822_s1 + $0x58] sm:$0xff]  ;;  %v608_v23 = vld [vmem:[%s822_s1 + $0x50] sm:$0xff] }
   0x7   :  { %362 = vmatpush.bf16.msra.mxu1 %v612_v5  ;;  %v618_v15 = vld [vmem:[%s822_s1 + $0xa0] sm:$0xff]  ;;  %v617_v20 = vld [vmem:[%s822_s1 + $0x98] sm:$0xff]  ;;  %v88_v24 = vld [vmem:[%s823_s2 + $0x10] sm:$0xff] }
   0x8   :  { %381 = vmatpush.bf16.msra.mxu2 %v620_v6  ;;  %v626_v16 = vld [vmem:[%s822_s1 + $0xe0] sm:$0xff]  ;;  %v625_v21 = vld [vmem:[%s822_s1 + $0xd8] sm:$0xff]  ;;  %v616_v25 = vld [vmem:[%s822_s1 + $0x90] sm:$0xff]  ;;  %102 = vperm.xlu1 %632, %v88_v24  }
   0x9   :  { %400 = vmatpush.bf16.msra.mxu3 %v628_v7  ;;  %v86_v17 = vld [vmem:[%s823_s2] sm:$0xff]  ;;  %v624_v26 = vld [vmem:[%s822_s1 + $0xd0] sm:$0xff]  ;;  %v87_v27 = vld [vmem:[%s823_s2 + $0x8] sm:$0xff] }
   0xa   :  { %344 = vmatpush.bf16.msra.mxu0 %v603_v9  ;;  %92 = vperm.xlu0 %631, %v86_v17   ;;  %v599_v28 = vld [vmem:[%s822_s1 + $0x8] sm:$0xff]  ;;  %v598_v32 = vld [vmem:[%s822_s1] sm:$0xff]  ;;  %v592_v37 = vld [vmem:[%s824_s0 + $0xc] sm:$0xf0] }
   0xb   :  { %363 = vmatpush.bf16.msra.mxu1 %v611_v10  ;;  %v607_v29 = vld [vmem:[%s822_s1 + $0x48] sm:$0xff]  ;;  %v606_v33 = vld [vmem:[%s822_s1 + $0x40] sm:$0xff]  ;;  %v89_v38 = vld [vmem:[%s823_s2 + $0x18] sm:$0xff] }
   0xc   :  { %382 = vmatpush.bf16.msra.mxu2 %v619_v11  ;;  %v615_v30 = vld [vmem:[%s822_s1 + $0x88] sm:$0xff]  ;;  %v614_v34 = vld [vmem:[%s822_s1 + $0x80] sm:$0xff]  ;;  %v434_v40 = vld [vmem:[%s824_s0 + $0x10] sm:$0xf0] }
   0xd   :  { %401 = vmatpush.bf16.msra.mxu3 %v627_v12  ;;  %v623_v31 = vld [vmem:[%s822_s1 + $0xc8] sm:$0xff]  ;;  %v622_v35 = vld [vmem:[%s822_s1 + $0xc0] sm:$0xff]  ;;  %v593_v42 = vld [vmem:[%s824_s0 + $0x14] sm:$0xf0] }
   0xe   :  { %345 = vmatpush.bf16.msra.mxu0 %v602_v13  ;;  %v432_v36 = vld [vmem:[%s824_s0] sm:$0xf]  ;;  %v590_v39 = vld [vmem:[%s824_s0 + $0x4] sm:$0xf]  ;;  %v440_v41 = vld [vmem:[%s824_s0 + $0x8] sm:$0xf] }
   0xf   :  { %364 = vmatpush.bf16.msra.mxu1 %v610_v14  ;;  %v591_v43 = vld [vmem:[%s824_s0 + $0xc] sm:$0xf]  ;;  %v442_v44 = vld [vmem:[%s824_s0 + $0x18] sm:$0xf0]  ;;  %v433_v45 = vor.u32 %v592_v37, %v432_v36  ;;  %v437_v46 = vor.u32 %v590_v39, %v434_v40  ;;  %v441_v47 = vor.u32 %v593_v42, %v440_v41  ;;  %v448_v49 = vld [vmem:[%s824_s0 + $0x20] sm:$0xf] }
  0x10   :  { %383 = vmatpush.bf16.msra.mxu2 %v618_v15  ;;  %107 = vperm.xlu1 %632, %v89_v38   ;;  %v445_v48 = vor.u32 %v591_v43, %v442_v44  ;;  %v596_v50 = vld [vmem:[%s824_s0 + $0x2c] sm:$0xf0]  ;;  %v594_v51 = vld [vmem:[%s824_s0 + $0x24] sm:$0xf]  ;;  %v450_v52 = vld [vmem:[%s824_s0 + $0x30] sm:$0xf0] }
  0x11   :  { %402 = vmatpush.bf16.msra.mxu3 %v626_v16  ;;  %v456_v53 = vld [vmem:[%s824_s0 + $0x28] sm:$0xf]  ;;  %v597_v54 = vld [vmem:[%s824_s0 + $0x34] sm:$0xf0]  ;;  %v595_v55 = vld [vmem:[%s824_s0 + $0x2c] sm:$0xf]  ;;  %v449_v57 = vor.u32 %v596_v50, %v448_v49  ;;  %v453_v58 = vor.u32 %v594_v51, %v450_v52 }
  0x12   :  { %346 = vmatpush.bf16.msra.mxu0 %v601_v18  ;;  %97 = vperm.xlu0 %631, %v87_v27   ;;  %v458_v56 = vld [vmem:[%s824_s0 + $0x38] sm:$0xf0]  ;;  %v457_v59 = vor.u32 %v597_v54, %v456_v53 }
  0x13   :  { %365 = vmatpush.bf16.msra.mxu1 %v609_v19  ;;  %v461_v60 = vor.u32 %v595_v55, %v458_v56 }
  0x14   :  { %384 = vmatpush.bf16.msra.mxu2 %v617_v20 }
  0x15   :  { %403 = vmatpush.bf16.msra.mxu3 %v625_v21 }
  0x16   :  { %347 = vmatpush.bf16.msra.mxu0 %v600_v22 }
  0x17   :  { %366 = vmatpush.bf16.msra.mxu1 %v608_v23 }
  0x18   :  { %385 = vmatpush.bf16.msra.mxu2 %v616_v25 }
  0x19   :  { %404 = vmatpush.bf16.msra.mxu3 %v624_v26 }
  0x1a   :  { %348 = vmatpush.bf16.msra.mxu0 %v599_v28 }
  0x1b   :  { %367 = vmatpush.bf16.msra.mxu1 %v607_v29 }
  0x1c   :  { %386 = vmatpush.bf16.msra.mxu2 %v615_v30 }
  0x1d   :  { %405 = vmatpush.bf16.msra.mxu3 %v623_v31 }
  0x1e   :  { %349 = vmatpush.bf16.msra.mxu0 %v598_v32 }
  0x1f   :  { %368 = vmatpush.bf16.msra.mxu1 %v606_v33 }
  0x20   :  { %387 = vmatpush.bf16.msra.mxu2 %v614_v34 }
  0x21   :  { %406 = vmatpush.bf16.msra.mxu3 %v622_v35  ;;  %350 = vmatmul.bf16.vlgmr.msra.gmra.mxu0 %v433_v45 }
  0x22   :  { %369 = vmatmul.bf16.vlgmr.msra.gmra.mxu1 %v437_v46 }
  0x23   :  { %388 = vmatmul.bf16.vlgmr.msra.gmra.mxu2 %v441_v47 }
  0x24   :  { %407 = vmatmul.bf16.vlgmr.msra.gmra.mxu3 %v445_v48 }
  0x31   :  { %355 = vmatmul.bf16.gmra.mxu0 %v449_v57 }
  0x32   :  { %374 = vmatmul.bf16.gmra.mxu1 %v453_v58 }
  0x33   :  { %393 = vmatmul.bf16.gmra.mxu2 %v457_v59 }
  0x34   :  { %412 = vmatmul.bf16.gmra.mxu3 %v461_v60 }
  0x7a   :  { %v103_v12 = vpop.permute.xlu1 %102 }
  0x7c   :  { %v93_v61 = vpop.permute.xlu0 %92 }
  0x82   :  { %v108_v26 = vpop.permute.xlu1 %107 }
  0x84   :  { %v98_v2 = vpop.permute.xlu0 %97 }
  0x9e   :  { %v351_v62 = vpop.f32.mrf.mxu0 }
  0x9f   :  { %v370_v63 = vpop.f32.mrf.mxu1  ;;  %v352_v0 = vadd.f32 %v351_v62, %v93_v61 }
  0xa1   :  { %v371_v1 = vadd.f32 %v370_v63, %v352_v0 }
  0xa6   :  { %v389_v3 = vpop.f32.mrf.mxu2  ;;  %v353_v6 = vpop.f32.mrf.mxu0 }
  0xa7   :  { %v408_v4 = vpop.f32.mrf.mxu3  ;;  %v390_v5 = vadd.f32 %v389_v3, %v371_v1  ;;  %v372_v7 = vpop.f32.mrf.mxu1  ;;  %v354_v9 = vadd.f32 %v353_v6, %v98_v2 }
  0xa9   :  { %v409_v8 = vadd.f32 %v408_v4, %v390_v5  ;;  %v373_v11 = vadd.f32 %v372_v7, %v354_v9 }
  0xab   :  { %v418_v10 = vmax.f32 %v409_v8, 0.0 }
  0xad   :  { %422 = vst [vmem:[%s825_s3] sm:$0xff] %v418_v10 }
  0xae   :  { %v391_v13 = vpop.f32.mrf.mxu2  ;;  %v356_v16 = vpop.f32.mrf.mxu0 }
  0xaf   :  { %v410_v14 = vpop.f32.mrf.mxu3  ;;  %v392_v15 = vadd.f32 %v391_v13, %v373_v11  ;;  %v357_v17 = vadd.f32 %v356_v16, %v103_v12  ;;  %v375_v19 = vpop.f32.mrf.mxu1 }
  0xb1   :  { %v411_v18 = vadd.f32 %v410_v14, %v392_v15  ;;  %v376_v21 = vadd.f32 %v375_v19, %v357_v17 }
  0xb3   :  { %v419_v20 = vmax.f32 %v411_v18, 0.0 }
  0xb5   :  { %423 = vst [vmem:[%s825_s3 + $0x8] sm:$0xff] %v419_v20 }
  0xb6   :  { %v394_v22 = vpop.f32.mrf.mxu2  ;;  %v358_v25 = vpop.f32.mrf.mxu0 }
  0xb7   :  { %v413_v23 = vpop.f32.mrf.mxu3  ;;  %v395_v24 = vadd.f32 %v394_v22, %v376_v21  ;;  %v359_v28 = vadd.f32 %v358_v25, %v108_v26  ;;  %v377_v30 = vpop.f32.mrf.mxu1 }
  0xb9   :  { %v414_v27 = vadd.f32 %v413_v23, %v395_v24  ;;  %v378_v31 = vadd.f32 %v377_v30, %v359_v28 }
  0xbb   :  { %v420_v29 = vmax.f32 %v414_v27, 0.0 }
  0xbd   :  { %424 = vst [vmem:[%s825_s3 + $0x10] sm:$0xff] %v420_v29 }
  0xbe   :  { %v396_v32 = vpop.f32.mrf.mxu2 }
  0xbf   :  { %v397_v33 = vadd.f32 %v396_v32, %v378_v31  ;;  %v415_v34 = vpop.f32.mrf.mxu3 }
  0xc1   :  { %v416_v35 = vadd.f32 %v415_v34, %v397_v33 }
  0xc3   :  { %v421_v36 = vmax.f32 %v416_v35, 0.0 }
  0xc5   :  { %425 = vst [vmem:[%s825_s3 + $0x18] sm:$0xff] %v421_v36 }

// kernel: quadruplet_forward.9
= control target key start
LH: loop header
LB: loop body
LE: loop exit
PB: predicated region body
PF: predicated region fallthrough
CT: control target
= control target key end

     0   :  { %v634_v8 = vmov 0   ;;  %vm422_vm0 = vcmask 261120   ;;  %s827_s1 = inlined_call_operand.vmem [shape: bf16[512,32], index: 1, kind: input, shape index: {}]   ;;  %s828_s2 = inlined_call_operand.vmem [shape: f32[32,1], index: 2, kind: input, shape index: {}]   ;;  %s829_s0 = inlined_call_operand.vmem [shape: bf16[32,512], index: 0, kind: input, shape index: {}]   ;;  %s830_s3 = inlined_call_operand.vmem [shape: f32[32,32], index: 3, kind: output, shape index: {}]  }
   0x1   :  { %v606_v0 = vld [vmem:[%s827_s1 + $0x38] sm:$0xff]  ;;  %v605_v4 = vld [vmem:[%s827_s1 + $0x30] sm:$0xff]  ;;  %632 = vset.pattern.permute.xlu0 %v634_v8  ;;  %633 = vset.pattern.permute.xlu1 %v634_v8  ;;  %v604_v9 = vld [vmem:[%s827_s1 + $0x28] sm:$0xff] }
   0x2   :  { %v614_v1 = vld [vmem:[%s827_s1 + $0x78] sm:$0xff]  ;;  %342 = vmatpush.bf16.msra.mxu0 %v606_v0  ;;  %v613_v5 = vld [vmem:[%s827_s1 + $0x70] sm:$0xff]  ;;  %v612_v10 = vld [vmem:[%s827_s1 + $0x68] sm:$0xff] }
   0x3   :  { %v622_v2 = vld [vmem:[%s827_s1 + $0xb8] sm:$0xff]  ;;  %361 = vmatpush.bf16.msra.mxu1 %v614_v1  ;;  %v621_v6 = vld [vmem:[%s827_s1 + $0xb0] sm:$0xff]  ;;  %v620_v11 = vld [vmem:[%s827_s1 + $0xa8] sm:$0xff] }
   0x4   :  { %v630_v3 = vld [vmem:[%s827_s1 + $0xf8] sm:$0xff]  ;;  %380 = vmatpush.bf16.msra.mxu2 %v622_v2  ;;  %v629_v7 = vld [vmem:[%s827_s1 + $0xf0] sm:$0xff]  ;;  %v628_v12 = vld [vmem:[%s827_s1 + $0xe8] sm:$0xff] }
   0x5   :  { %399 = vmatpush.bf16.msra.mxu3 %v630_v3  ;;  %v603_v13 = vld [vmem:[%s827_s1 + $0x20] sm:$0xff]  ;;  %v602_v18 = vld [vmem:[%s827_s1 + $0x18] sm:$0xff]  ;;  %v601_v22 = vld [vmem:[%s827_s1 + $0x10] sm:$0xff] }
   0x6   :  { %343 = vmatpush.bf16.msra.mxu0 %v605_v4  ;;  %v611_v14 = vld [vmem:[%s827_s1 + $0x60] sm:$0xff]  ;;  %v610_v19 = vld [vmem:[%s827_s1 + $0x58] sm:$0xff]  ;;  %v609_v23 = vld [vmem:[%s827_s1 + $0x50] sm:$0xff] }
   0x7   :  { %362 = vmatpush.bf16.msra.mxu1 %v613_v5  ;;  %v619_v15 = vld [vmem:[%s827_s1 + $0xa0] sm:$0xff]  ;;  %v618_v20 = vld [vmem:[%s827_s1 + $0x98] sm:$0xff]  ;;  %v88_v24 = vld [vmem:[%s828_s2 + $0x10] sm:$0xff] }
   0x8   :  { %381 = vmatpush.bf16.msra.mxu2 %v621_v6  ;;  %v627_v16 = vld [vmem:[%s827_s1 + $0xe0] sm:$0xff]  ;;  %v626_v21 = vld [vmem:[%s827_s1 + $0xd8] sm:$0xff]  ;;  %v617_v25 = vld [vmem:[%s827_s1 + $0x90] sm:$0xff]  ;;  %102 = vperm.xlu1 %633, %v88_v24  }
   0x9   :  { %400 = vmatpush.bf16.msra.mxu3 %v629_v7  ;;  %v86_v17 = vld [vmem:[%s828_s2] sm:$0xff]  ;;  %v625_v26 = vld [vmem:[%s827_s1 + $0xd0] sm:$0xff]  ;;  %v87_v27 = vld [vmem:[%s828_s2 + $0x8] sm:$0xff] }
   0xa   :  { %344 = vmatpush.bf16.msra.mxu0 %v604_v9  ;;  %92 = vperm.xlu0 %632, %v86_v17   ;;  %v600_v28 = vld [vmem:[%s827_s1 + $0x8] sm:$0xff]  ;;  %v599_v32 = vld [vmem:[%s827_s1] sm:$0xff]  ;;  %v593_v37 = vld [vmem:[%s829_s0 + $0xc] sm:$0xf0] }
   0xb   :  { %363 = vmatpush.bf16.msra.mxu1 %v612_v10  ;;  %v608_v29 = vld [vmem:[%s827_s1 + $0x48] sm:$0xff]  ;;  %v607_v33 = vld [vmem:[%s827_s1 + $0x40] sm:$0xff]  ;;  %v89_v38 = vld [vmem:[%s828_s2 + $0x18] sm:$0xff] }
   0xc   :  { %382 = vmatpush.bf16.msra.mxu2 %v620_v11  ;;  %v616_v30 = vld [vmem:[%s827_s1 + $0x88] sm:$0xff]  ;;  %v615_v34 = vld [vmem:[%s827_s1 + $0x80] sm:$0xff]  ;;  %v435_v40 = vld [vmem:[%s829_s0 + $0x10] sm:$0xf0] }
   0xd   :  { %401 = vmatpush.bf16.msra.mxu3 %v628_v12  ;;  %v624_v31 = vld [vmem:[%s827_s1 + $0xc8] sm:$0xff]  ;;  %v623_v35 = vld [vmem:[%s827_s1 + $0xc0] sm:$0xff]  ;;  %v594_v42 = vld [vmem:[%s829_s0 + $0x14] sm:$0xf0] }
   0xe   :  { %345 = vmatpush.bf16.msra.mxu0 %v603_v13  ;;  %v433_v36 = vld [vmem:[%s829_s0] sm:$0xf]  ;;  %v591_v39 = vld [vmem:[%s829_s0 + $0x4] sm:$0xf]  ;;  %v441_v41 = vld [vmem:[%s829_s0 + $0x8] sm:$0xf] }
   0xf   :  { %364 = vmatpush.bf16.msra.mxu1 %v611_v14  ;;  %v592_v43 = vld [vmem:[%s829_s0 + $0xc] sm:$0xf]  ;;  %v443_v44 = vld [vmem:[%s829_s0 + $0x18] sm:$0xf0]  ;;  %v434_v45 = vor.u32 %v593_v37, %v433_v36  ;;  %v438_v46 = vor.u32 %v591_v39, %v435_v40  ;;  %v442_v47 = vor.u32 %v594_v42, %v441_v41  ;;  %v449_v49 = vld [vmem:[%s829_s0 + $0x20] sm:$0xf] }
  0x10   :  { %383 = vmatpush.bf16.msra.mxu2 %v619_v15  ;;  %107 = vperm.xlu1 %633, %v89_v38   ;;  %v446_v48 = vor.u32 %v592_v43, %v443_v44  ;;  %v597_v50 = vld [vmem:[%s829_s0 + $0x2c] sm:$0xf0]  ;;  %v595_v51 = vld [vmem:[%s829_s0 + $0x24] sm:$0xf]  ;;  %v451_v52 = vld [vmem:[%s829_s0 + $0x30] sm:$0xf0] }
  0x11   :  { %402 = vmatpush.bf16.msra.mxu3 %v627_v16  ;;  %v457_v53 = vld [vmem:[%s829_s0 + $0x28] sm:$0xf]  ;;  %v598_v54 = vld [vmem:[%s829_s0 + $0x34] sm:$0xf0]  ;;  %v596_v55 = vld [vmem:[%s829_s0 + $0x2c] sm:$0xf]  ;;  %v450_v57 = vor.u32 %v597_v50, %v449_v49  ;;  %v454_v58 = vor.u32 %v595_v51, %v451_v52 }
  0x12   :  { %346 = vmatpush.bf16.msra.mxu0 %v602_v18  ;;  %97 = vperm.xlu0 %632, %v87_v27   ;;  %v459_v56 = vld [vmem:[%s829_s0 + $0x38] sm:$0xf0]  ;;  %v458_v59 = vor.u32 %v598_v54, %v457_v53 }
  0x13   :  { %365 = vmatpush.bf16.msra.mxu1 %v610_v19  ;;  %v462_v60 = vor.u32 %v596_v55, %v459_v56 }
  0x14   :  { %384 = vmatpush.bf16.msra.mxu2 %v618_v20 }
  0x15   :  { %403 = vmatpush.bf16.msra.mxu3 %v626_v21 }
  0x16   :  { %347 = vmatpush.bf16.msra.mxu0 %v601_v22 }
  0x17   :  { %366 = vmatpush.bf16.msra.mxu1 %v609_v23 }
  0x18   :  { %385 = vmatpush.bf16.msra.mxu2 %v617_v25 }
  0x19   :  { %404 = vmatpush.bf16.msra.mxu3 %v625_v26 }
  0x1a   :  { %348 = vmatpush.bf16.msra.mxu0 %v600_v28 }
  0x1b   :  { %367 = vmatpush.bf16.msra.mxu1 %v608_v29 }
  0x1c   :  { %386 = vmatpush.bf16.msra.mxu2 %v616_v30 }
  0x1d   :  { %405 = vmatpush.bf16.msra.mxu3 %v624_v31 }
  0x1e   :  { %349 = vmatpush.bf16.msra.mxu0 %v599_v32 }
  0x1f   :  { %368 = vmatpush.bf16.msra.mxu1 %v607_v33 }
  0x20   :  { %387 = vmatpush.bf16.msra.mxu2 %v615_v34 }
  0x21   :  { %406 = vmatpush.bf16.msra.mxu3 %v623_v35  ;;  %350 = vmatmul.bf16.vlgmr.msra.gmra.mxu0 %v434_v45 }
  0x22   :  { %369 = vmatmul.bf16.vlgmr.msra.gmra.mxu1 %v438_v46 }
  0x23   :  { %388 = vmatmul.bf16.vlgmr.msra.gmra.mxu2 %v442_v47 }
  0x24   :  { %407 = vmatmul.bf16.vlgmr.msra.gmra.mxu3 %v446_v48 }
  0x31   :  { %355 = vmatmul.bf16.gmra.mxu0 %v450_v57 }
  0x32   :  { %374 = vmatmul.bf16.gmra.mxu1 %v454_v58 }
  0x33   :  { %393 = vmatmul.bf16.gmra.mxu2 %v458_v59 }
  0x34   :  { %412 = vmatmul.bf16.gmra.mxu3 %v462_v60 }
  0x7a   :  { %v103_v12 = vpop.permute.xlu1 %102 }
  0x7c   :  { %v93_v61 = vpop.permute.xlu0 %92 }
  0x82   :  { %v108_v26 = vpop.permute.xlu1 %107 }
  0x84   :  { %v98_v2 = vpop.permute.xlu0 %97 }
  0x9e   :  { %v351_v62 = vpop.f32.mrf.mxu0 }
  0x9f   :  { %v370_v63 = vpop.f32.mrf.mxu1  ;;  %v352_v0 = vadd.f32 %v351_v62, %v93_v61 }
  0xa1   :  { %v371_v1 = vadd.f32 %v370_v63, %v352_v0 }
  0xa6   :  { %v389_v3 = vpop.f32.mrf.mxu2  ;;  %v353_v6 = vpop.f32.mrf.mxu0 }
  0xa7   :  { %v408_v4 = vpop.f32.mrf.mxu3  ;;  %v390_v5 = vadd.f32 %v389_v3, %v371_v1  ;;  %v372_v7 = vpop.f32.mrf.mxu1  ;;  %v354_v9 = vadd.f32 %v353_v6, %v98_v2 }
  0xa9   :  { %v409_v8 = vadd.f32 %v408_v4, %v390_v5  ;;  %v373_v11 = vadd.f32 %v372_v7, %v354_v9 }
  0xab   :  { %v418_v10 = vmax.f32 %v409_v8, 0.0 }
  0xad   :  { %423 = vst.msk [vmem:[%s830_s3] sm:$0xff] %vm422_vm0, %v418_v10 }
  0xae   :  { %v391_v13 = vpop.f32.mrf.mxu2  ;;  %v356_v16 = vpop.f32.mrf.mxu0 }
  0xaf   :  { %v410_v14 = vpop.f32.mrf.mxu3  ;;  %v392_v15 = vadd.f32 %v391_v13, %v373_v11  ;;  %v357_v17 = vadd.f32 %v356_v16, %v103_v12  ;;  %v375_v19 = vpop.f32.mrf.mxu1 }
  0xb1   :  { %v411_v18 = vadd.f32 %v410_v14, %v392_v15  ;;  %v376_v21 = vadd.f32 %v375_v19, %v357_v17 }
  0xb3   :  { %v419_v20 = vmax.f32 %v411_v18, 0.0 }
  0xb5   :  { %424 = vst.msk [vmem:[%s830_s3 + $0x8] sm:$0xff] %vm422_vm0, %v419_v20 }
  0xb6   :  { %v394_v22 = vpop.f32.mrf.mxu2  ;;  %v358_v25 = vpop.f32.mrf.mxu0 }
  0xb7   :  { %v413_v23 = vpop.f32.mrf.mxu3  ;;  %v395_v24 = vadd.f32 %v394_v22, %v376_v21  ;;  %v359_v28 = vadd.f32 %v358_v25, %v108_v26  ;;  %v377_v30 = vpop.f32.mrf.mxu1 }
  0xb9   :  { %v414_v27 = vadd.f32 %v413_v23, %v395_v24  ;;  %v378_v31 = vadd.f32 %v377_v30, %v359_v28 }
  0xbb   :  { %v420_v29 = vmax.f32 %v414_v27, 0.0 }
  0xbd   :  { %425 = vst.msk [vmem:[%s830_s3 + $0x10] sm:$0xff] %vm422_vm0, %v420_v29 }
  0xbe   :  { %v396_v32 = vpop.f32.mrf.mxu2 }
  0xbf   :  { %v397_v33 = vadd.f32 %v396_v32, %v378_v31  ;;  %v415_v34 = vpop.f32.mrf.mxu3 }
  0xc1   :  { %v416_v35 = vadd.f32 %v415_v34, %v397_v33 }
  0xc3   :  { %v421_v36 = vmax.f32 %v416_v35, 0.0 }
  0xc5   :  { %426 = vst.msk [vmem:[%s830_s3 + $0x18] sm:$0xff] %vm422_vm0, %v421_v36 }

// kernel: quadruplet_forward.10
= control target key start
LH: loop header
LB: loop body
LE: loop exit
PB: predicated region body
PF: predicated region fallthrough
CT: control target
= control target key end

     0   :  { %vm292_vm0 = vcmask 64512   ;;  %s950_s1 = inlined_call_operand.vmem [shape: f32[128,256], index: 1, kind: input, shape index: {}]   ;;  %s951_s3 = inlined_call_operand.vmem [shape: f32[256,8], index: 3, kind: input, shape index: {}]   ;;  %s952_s0 = inlined_call_operand.vmem [shape: f32[8,128], index: 0, kind: input, shape index: {}]   ;;  %s953_s5 = inlined_call_operand.vmem [shape: f32[256,8], index: 5, kind: input, shape index: {}]   ;;  %s954_s6 = inlined_call_operand.vmem [shape: f32[1,8], index: 6, kind: input, shape index: {}]   ;;  %s955_s2 = inlined_call_operand.vmem [shape: f32[1,256], index: 2, kind: input, shape index: {}]   ;;  %s956_s4 = inlined_call_operand.vmem [shape: f32[1,8], index: 4, kind: input, shape index: {}]   ;;  %s957_s8 = inlined_call_operand.vmem [shape: f32[8,256], index: 8, kind: input, shape index: {}]   ;;  %s958_s10 = inlined_call_operand.vmem [shape: f32[256,128], index: 10, kind: input, shape index: {}]   ;;  %s959_s13 = inlined_call_operand.vmem [shape: f32[8,8], index: 13, kind: output, shape index: {1}]   ;;  %s960_s12 = inlined_call_operand.vmem [shape: f32[8,8], index: 12, kind: output, shape index: {0}]   ;;  %s961_s7 = inlined_call_operand.vmem [shape: f32[8,8], index: 7, kind: input, shape index: {}]   ;;  %s962_s14 = inlined_call_operand.vmem [shape: f32[8,8], index: 14, kind: output, shape index: {2}]   ;;  %s963_s11 = inlined_call_operand.vmem [shape: f32[1,128], index: 11, kind: input, shape index: {}]   ;;  %s964_s9 = inlined_call_operand.vmem [shape: f32[1,256], index: 9, kind: input, shape index: {}]   ;;  %s965_s15 = inlined_call_operand.vmem [shape: f32[8,128], index: 15, kind: output, shape index: {3}]  }
   0x1   :  { %v76_v0 = vld [vmem:[%s950_s1 + $0xf0] sm:$0xff]  ;;  %v74_v1 = vld [vmem:[%s950_s1 + $0xe0] sm:$0xff]  ;;  %v77_v2 = vld [vmem:[%s950_s1 + $0xf8] sm:$0xff] }
   0x2   :  { %84 = vmatpush.msra.mxu0 %v76_v0  ;;  %104 = vmatpush.msra.mxu1 %v77_v2  ;;  %v75_v3 = vld [vmem:[%s950_s1 + $0xe8] sm:$0xff]  ;;  %v72_v4 = vld [vmem:[%s950_s1 + $0xd0] sm:$0xff]  ;;  %v73_v5 = vld [vmem:[%s950_s1 + $0xd8] sm:$0xff] }
   0x3   :  { %v70_v6 = vld [vmem:[%s950_s1 + $0xc0] sm:$0xff]  ;;  %v71_v7 = vld [vmem:[%s950_s1 + $0xc8] sm:$0xff]  ;;  %v68_v8 = vld [vmem:[%s950_s1 + $0xb0] sm:$0xff] }
   0x4   :  { %85 = vmatpush.msra.mxu0 %v74_v1  ;;  %105 = vmatpush.msra.mxu1 %v75_v3  ;;  %v69_v9 = vld [vmem:[%s950_s1 + $0xb8] sm:$0xff]  ;;  %v66_v10 = vld [vmem:[%s950_s1 + $0xa0] sm:$0xff]  ;;  %v67_v11 = vld [vmem:[%s950_s1 + $0xa8] sm:$0xff] }
   0x5   :  { %v64_v12 = vld [vmem:[%s950_s1 + $0x90] sm:$0xff]  ;;  %v65_v13 = vld [vmem:[%s950_s1 + $0x98] sm:$0xff]  ;;  %v62_v16 = vld [vmem:[%s950_s1 + $0x80] sm:$0xff] }
   0x6   :  { %86 = vmatpush.msra.mxu0 %v72_v4  ;;  %106 = vmatpush.msra.mxu1 %v73_v5  ;;  %v141_v14 = vld [vmem:[%s951_s3 + $0x78] sm:$0xff]  ;;  %v140_v15 = vld [vmem:[%s951_s3 + $0x70] sm:$0xff]  ;;  %v63_v17 = vld [vmem:[%s950_s1 + $0x88] sm:$0xff] }
   0x7   :  { %162 = vmatpush.msra.mxu2 %v141_v14  ;;  %v157_v18 = vld [vmem:[%s951_s3 + $0xf8] sm:$0xff]  ;;  %v139_v19 = vld [vmem:[%s951_s3 + $0x68] sm:$0xff]  ;;  %v156_v20 = vld [vmem:[%s951_s3 + $0xf0] sm:$0xff] }
   0x8   :  { %87 = vmatpush.msra.mxu0 %v70_v6  ;;  %107 = vmatpush.msra.mxu1 %v71_v7  ;;  %v60_v21 = vld [vmem:[%s950_s1 + $0x70] sm:$0xff]  ;;  %v61_v22 = vld [vmem:[%s950_s1 + $0x78] sm:$0xff]  ;;  %v138_v23 = vld [vmem:[%s951_s3 + $0x60] sm:$0xff] }
   0x9   :  { %163 = vmatpush.msra.mxu2 %v140_v15  ;;  %182 = vmatpush.msra.mxu3 %v157_v18  ;;  %v155_v24 = vld [vmem:[%s951_s3 + $0xe8] sm:$0xff]  ;;  %v58_v25 = vld [vmem:[%s950_s1 + $0x60] sm:$0xff]  ;;  %v137_v27 = vld [vmem:[%s951_s3 + $0x58] sm:$0xff] }
   0xa   :  { %88 = vmatpush.msra.mxu0 %v68_v8  ;;  %108 = vmatpush.msra.mxu1 %v69_v9  ;;  %v59_v26 = vld [vmem:[%s950_s1 + $0x68] sm:$0xff]  ;;  %v154_v28 = vld [vmem:[%s951_s3 + $0xe0] sm:$0xff]  ;;  %v56_v29 = vld [vmem:[%s950_s1 + $0x50] sm:$0xff] }
   0xb   :  { %164 = vmatpush.msra.mxu2 %v139_v19  ;;  %183 = vmatpush.msra.mxu3 %v156_v20  ;;  %v57_v30 = vld [vmem:[%s950_s1 + $0x58] sm:$0xff]  ;;  %v136_v31 = vld [vmem:[%s951_s3 + $0x50] sm:$0xff]  ;;  %v54_v33 = vld [vmem:[%s950_s1 + $0x40] sm:$0xff] }
   0xc   :  { %89 = vmatpush.msra.mxu0 %v66_v10  ;;  %109 = vmatpush.msra.mxu1 %v67_v11  ;;  %v153_v32 = vld [vmem:[%s951_s3 + $0xd8] sm:$0xff]  ;;  %v55_v34 = vld [vmem:[%s950_s1 + $0x48] sm:$0xff]  ;;  %v152_v36 = vld [vmem:[%s951_s3 + $0xd0] sm:$0xff] }
   0xd   :  { %165 = vmatpush.msra.mxu2 %v138_v23  ;;  %184 = vmatpush.msra.mxu3 %v155_v24  ;;  %v135_v35 = vld [vmem:[%s951_s3 + $0x48] sm:$0xff]  ;;  %v52_v37 = vld [vmem:[%s950_s1 + $0x30] sm:$0xff]  ;;  %v53_v38 = vld [vmem:[%s950_s1 + $0x38] sm:$0xff] }
   0xe   :  { %90 = vmatpush.msra.mxu0 %v64_v12  ;;  %110 = vmatpush.msra.mxu1 %v65_v13  ;;  %v134_v39 = vld [vmem:[%s951_s3 + $0x40] sm:$0xff]  ;;  %v151_v40 = vld [vmem:[%s951_s3 + $0xc8] sm:$0xff]  ;;  %v133_v43 = vld [vmem:[%s951_s3 + $0x38] sm:$0xff] }
   0xf   :  { %166 = vmatpush.msra.mxu2 %v137_v27  ;;  %185 = vmatpush.msra.mxu3 %v154_v28  ;;  %v50_v41 = vld [vmem:[%s950_s1 + $0x20] sm:$0xff]  ;;  %v51_v42 = vld [vmem:[%s950_s1 + $0x28] sm:$0xff]  ;;  %v48_v45 = vld [vmem:[%s950_s1 + $0x10] sm:$0xff] }
  0x10   :  { %91 = vmatpush.msra.mxu0 %v62_v16  ;;  %111 = vmatpush.msra.mxu1 %v63_v17  ;;  %v150_v44 = vld [vmem:[%s951_s3 + $0xc0] sm:$0xff]  ;;  %v49_v46 = vld [vmem:[%s950_s1 + $0x18] sm:$0xff]  ;;  %v132_v47 = vld [vmem:[%s951_s3 + $0x30] sm:$0xff] }
  0x11   :  { %167 = vmatpush.msra.mxu2 %v136_v31  ;;  %186 = vmatpush.msra.mxu3 %v153_v32  ;;  %v149_v48 = vld [vmem:[%s951_s3 + $0xb8] sm:$0xff]  ;;  %v46_v49 = vld [vmem:[%s950_s1] sm:$0xff]  ;;  %v47_v50 = vld [vmem:[%s950_s1 + $0x8] sm:$0xff] }
  0x12   :  { %92 = vmatpush.msra.mxu0 %v60_v21  ;;  %112 = vmatpush.msra.mxu1 %v61_v22  ;;  %v45_v51 = vld [vmem:[%s952_s0] sm:$0xff]  ;;  %v217_v52 = vld [vmem:[%s953_s5 + $0x78] sm:$0xff]  ;;  %v131_v54 = vld [vmem:[%s951_s3 + $0x28] sm:$0xff] }
  0x13   :  { %168 = vmatpush.msra.mxu2 %v135_v35  ;;  %187 = vmatpush.msra.mxu3 %v152_v36  ;;  %v233_v53 = vld [vmem:[%s953_s5 + $0xf8] sm:$0xff]  ;;  %v148_v55 = vld [vmem:[%s951_s3 + $0xb0] sm:$0xff]  ;;  %v130_v58 = vld [vmem:[%s951_s3 + $0x20] sm:$0xff] }
  0x14   :  { %93 = vmatpush.msra.mxu0 %v58_v25  ;;  %113 = vmatpush.msra.mxu1 %v59_v26  ;;  %v216_v56 = vld [vmem:[%s953_s5 + $0x70] sm:$0xff]  ;;  %v147_v59 = vld [vmem:[%s951_s3 + $0xa8] sm:$0xff]  ;;  %v129_v62 = vld [vmem:[%s951_s3 + $0x18] sm:$0xff] }
  0x15   :  { %169 = vmatpush.msra.mxu2 %v134_v39  ;;  %188 = vmatpush.msra.mxu3 %v151_v40  ;;  %v232_v57 = vld [vmem:[%s953_s5 + $0xf0] sm:$0xff]  ;;  %v215_v60 = vld [vmem:[%s953_s5 + $0x68] sm:$0xff]  ;;  %v146_v63 = vld [vmem:[%s951_s3 + $0xa0] sm:$0xff] }
  0x16   :  { %94 = vmatpush.msra.mxu0 %v56_v29  ;;  %114 = vmatpush.msra.mxu1 %v57_v30  ;;  %v231_v61 = vld [vmem:[%s953_s5 + $0xe8] sm:$0xff]  ;;  %v214_v0 = vld [vmem:[%s953_s5 + $0x60] sm:$0xff]  ;;  %v213_v2 = vld [vmem:[%s953_s5 + $0x58] sm:$0xff] }
  0x17   :  { %170 = vmatpush.msra.mxu2 %v133_v43  ;;  %189 = vmatpush.msra.mxu3 %v150_v44  ;;  %v230_v1 = vld [vmem:[%s953_s5 + $0xe0] sm:$0xff]  ;;  %v229_v3 = vld [vmem:[%s953_s5 + $0xd8] sm:$0xff]  ;;  %v212_v4 = vld [vmem:[%s953_s5 + $0x50] sm:$0xff] }
  0x18   :  { %95 = vmatpush.msra.mxu0 %v54_v33  ;;  %115 = vmatpush.msra.mxu1 %v55_v34  ;;  %v228_v5 = vld [vmem:[%s953_s5 + $0xd0] sm:$0xff]  ;;  %v211_v6 = vld [vmem:[%s953_s5 + $0x48] sm:$0xff]  ;;  %v210_v8 = vld [vmem:[%s953_s5 + $0x40] sm:$0xff] }
  0x19   :  { %171 = vmatpush.msra.mxu2 %v132_v47  ;;  %190 = vmatpush.msra.mxu3 %v149_v48  ;;  %v227_v7 = vld [vmem:[%s953_s5 + $0xc8] sm:$0xff]  ;;  %v226_v9 = vld [vmem:[%s953_s5 + $0xc0] sm:$0xff]  ;;  %v209_v10 = vld [vmem:[%s953_s5 + $0x38] sm:$0xff] }
  0x1a   :  { %96 = vmatpush.msra.mxu0 %v52_v37  ;;  %116 = vmatpush.msra.mxu1 %v53_v38  ;;  %v225_v11 = vld [vmem:[%s953_s5 + $0xb8] sm:$0xff]  ;;  %v208_v12 = vld [vmem:[%s953_s5 + $0x30] sm:$0xff]  ;;  %v207_v14 = vld [vmem:[%s953_s5 + $0x28] sm:$0xff] }
  0x1b   :  { %172 = vmatpush.msra.mxu2 %v131_v54  ;;  %191 = vmatpush.msra.mxu3 %v148_v55  ;;  %v224_v13 = vld [vmem:[%s953_s5 + $0xb0] sm:$0xff]  ;;  %v223_v15 = vld [vmem:[%s953_s5 + $0xa8] sm:$0xff]  ;;  %v206_v16 = vld [vmem:[%s953_s5 + $0x20] sm:$0xff] }
  0x1c   :  { %97 = vmatpush.msra.mxu0 %v50_v41  ;;  %117 = vmatpush.msra.mxu1 %v51_v42  ;;  %v222_v17 = vld [vmem:[%s953_s5 + $0xa0] sm:$0xff]  ;;  %v205_v18 = vld [vmem:[%s953_s5 + $0x18] sm:$0xff]  ;;  %v128_v19 = vld [vmem:[%s951_s3 + $0x10] sm:$0xff] }
  0x1d   :  { %173 = vmatpush.msra.mxu2 %v130_v58  ;;  %192 = vmatpush.msra.mxu3 %v147_v59  ;;  %v145_v20 = vld [vmem:[%s951_s3 + $0x98] sm:$0xff]  ;;  %v204_v21 = vld [vmem:[%s953_s5 + $0x10] sm:$0xff]  ;;  %v127_v23 = vld [vmem:[%s951_s3 + $0x8] sm:$0xff] }
  0x1e   :  { %98 = vmatpush.msra.mxu0 %v48_v45  ;;  %118 = vmatpush.msra.mxu1 %v49_v46  ;;  %v221_v22 = vld [vmem:[%s953_s5 + $0x98] sm:$0xff]  ;;  %v144_v24 = vld [vmem:[%s951_s3 + $0x90] sm:$0xff]  ;;  %v203_v25 = vld [vmem:[%s953_s5 + $0x8] sm:$0xff] }
  0x1f   :  { %174 = vmatpush.msra.mxu2 %v129_v62  ;;  %193 = vmatpush.msra.mxu3 %v146_v63  ;;  %v220_v26 = vld [vmem:[%s953_s5 + $0x90] sm:$0xff]  ;;  %v126_v27 = vld [vmem:[%s951_s3] sm:$0xff]  ;;  %v143_v28 = vld [vmem:[%s951_s3 + $0x88] sm:$0xff] }
  0x20   :  { %99 = vmatpush.msra.mxu0 %v46_v49  ;;  %119 = vmatpush.msra.mxu1 %v47_v50  ;;  %v202_v29 = vld [vmem:[%s953_s5] sm:$0xff]  ;;  %v219_v30 = vld [vmem:[%s953_s5 + $0x88] sm:$0xff]  ;;  %v353_v44 = vld [vmem:[%s958_s10 + $0x78] sm:$0xff] }
  0x21   :  { %100 = vmatmul.f32.vlgmr.msra.gmra.mxu0 %v45_v51  ;;  %120 = vmatmul.f32.vlgmr.msra.gmra.mxu1 %v45_v51  ;;  %v142_v31 = vld [vmem:[%s951_s3 + $0x80] sm:$0xff]  ;;  %v285_v43 = vld [vmem:[%s957_s8 + $0x8] sm:$0xff]  ;;  %v369_v45 = vld [vmem:[%s958_s10 + $0xf8] sm:$0xff] }
  0x22   :  { %238 = vmatpush.msrb.mxu0 %v217_v52  ;;  %258 = vmatpush.msrb.mxu1 %v233_v53  ;;  %v218_v32 = vld [vmem:[%s953_s5 + $0x80] sm:$0xff]  ;;  %v352_v46 = vld [vmem:[%s958_s10 + $0x70] sm:$0xff]  ;;  %v351_v48 = vld [vmem:[%s958_s10 + $0x68] sm:$0xff] }
  0x23   :  { %175 = vmatpush.msra.mxu2 %v128_v19  ;;  %194 = vmatpush.msra.mxu3 %v145_v20  ;;  %v78_v33 = vld [vmem:[%s955_s2] sm:$0x3]  ;;  %v368_v47 = vld [vmem:[%s958_s10 + $0xf0] sm:$0xff]  ;;  %v367_v49 = vld [vmem:[%s958_s10 + $0xe8] sm:$0xff] }
  0x24   :  { %239 = vmatpush.msrb.mxu0 %v216_v56  ;;  %259 = vmatpush.msrb.mxu1 %v232_v57  ;;  %v80_v34 = vperm.slane %v78_v33, 0  ;;  %v81_v35 = vperm.slane %v78_v33, 1  ;;  %v284_v42 = vld [vmem:[%s957_s8] sm:$0xff]  ;;  %v349_v52 = vld [vmem:[%s958_s10 + $0x58] sm:$0xff]  ;;  %v348_v54 = vld [vmem:[%s958_s10 + $0x50] sm:$0xff] }
  0x25   :  { %176 = vmatpush.msra.mxu2 %v127_v23  ;;  %195 = vmatpush.msra.mxu3 %v144_v24  ;;  %v350_v50 = vld [vmem:[%s958_s10 + $0x60] sm:$0xff]  ;;  %v365_v53 = vld [vmem:[%s958_s10 + $0xd8] sm:$0xff]  ;;  %v364_v55 = vld [vmem:[%s958_s10 + $0xd0] sm:$0xff] }
  0x26   :  { %240 = vmatpush.msrb.mxu0 %v215_v60  ;;  %260 = vmatpush.msrb.mxu1 %v231_v61  ;;  %v366_v51 = vld [vmem:[%s958_s10 + $0xe0] sm:$0xff]  ;;  %v347_v57 = vld [vmem:[%s958_s10 + $0x48] sm:$0xff]  ;;  %v356_v23 = vld [vmem:[%s958_s10 + $0x90] sm:$0xff] }
  0x27   :  { %177 = vmatpush.msra.mxu2 %v126_v27  ;;  %196 = vmatpush.msra.mxu3 %v143_v28  ;;  %v437_v56 = vld [vmem:[%s954_s6] ss:$0 sm:$0xff]  ;;  %v363_v58 = vld [vmem:[%s958_s10 + $0xc8] sm:$0xff] }
  0x28   :  { %241 = vmatpush.msrb.mxu0 %v214_v0  ;;  %261 = vmatpush.msrb.mxu1 %v230_v1  ;;  %v346_v60 = vld [vmem:[%s958_s10 + $0x40] sm:$0xff]  ;;  %v345_v0 = vld [vmem:[%s958_s10 + $0x38] sm:$0xff]  ;;  %v339_v24 = vld [vmem:[%s958_s10 + $0x8] sm:$0xff] }
  0x29   :  { %197 = vmatpush.msra.mxu3 %v142_v31  ;;  %311 = vmatpush.msrb.mxu2 %v284_v42  ;;  %v362_v61 = vld [vmem:[%s958_s10 + $0xc0] sm:$0xff]  ;;  %v361_v1 = vld [vmem:[%s958_s10 + $0xb8] sm:$0xff] }
  0x2a   :  { %242 = vmatpush.msrb.mxu0 %v213_v2  ;;  %262 = vmatpush.msrb.mxu1 %v229_v3  ;;  %v438_v3 = vld [vmem:[%s956_s4] ss:$0 sm:$0xff] }
  0x2b   :  { %331 = vmatpush.msrb.mxu3 %v285_v43  ;;  %v354_v27 = vld [vmem:[%s958_s10 + $0x80] sm:$0xff] }
  0x2c   :  { %243 = vmatpush.msrb.mxu0 %v212_v4  ;;  %263 = vmatpush.msrb.mxu1 %v228_v5  ;;  %v344_v4 = vld [vmem:[%s958_s10 + $0x30] sm:$0xff]  ;;  %v286_v28 = vld [vmem:[%s964_s9] sm:$0x3] }
  0x2d   :  { %v360_v5 = vld [vmem:[%s958_s10 + $0xb0] sm:$0xff] }
  0x2e   :  { %244 = vmatpush.msrb.mxu0 %v211_v6  ;;  %264 = vmatpush.msrb.mxu1 %v227_v7 }
  0x30   :  { %245 = vmatpush.msrb.mxu0 %v210_v8  ;;  %265 = vmatpush.msrb.mxu1 %v226_v9  ;;  %v343_v8 = vld [vmem:[%s958_s10 + $0x28] sm:$0xff] }
  0x31   :  { %v359_v9 = vld [vmem:[%s958_s10 + $0xa8] sm:$0xff] }
  0x32   :  { %246 = vmatpush.msrb.mxu0 %v209_v10  ;;  %266 = vmatpush.msrb.mxu1 %v225_v11 }
  0x34   :  { %247 = vmatpush.msrb.mxu0 %v208_v12  ;;  %267 = vmatpush.msrb.mxu1 %v224_v13  ;;  %v342_v13 = vld [vmem:[%s958_s10 + $0x20] sm:$0xff] }
  0x36   :  { %248 = vmatpush.msrb.mxu0 %v207_v14  ;;  %268 = vmatpush.msrb.mxu1 %v223_v15  ;;  %v358_v14 = vld [vmem:[%s958_s10 + $0xa0] sm:$0xff] }
  0x38   :  { %249 = vmatpush.msrb.mxu0 %v206_v16  ;;  %269 = vmatpush.msrb.mxu1 %v222_v17  ;;  %v341_v16 = vld [vmem:[%s958_s10 + $0x18] sm:$0xff] }
  0x39   :  { %v357_v17 = vld [vmem:[%s958_s10 + $0x98] sm:$0xff] }
  0x3a   :  { %250 = vmatpush.msrb.mxu0 %v205_v18  ;;  %270 = vmatpush.msrb.mxu1 %v221_v22  ;;  %v281_v18 = vld [vmem:[%s961_s7] sm:$0xff]  ;;  %v340_v22 = vld [vmem:[%s958_s10 + $0x10] sm:$0xff] }
  0x3c   :  { %251 = vmatpush.msrb.mxu0 %v204_v21  ;;  %271 = vmatpush.msrb.mxu1 %v220_v26  ;;  %v338_v26 = vld [vmem:[%s958_s10] sm:$0xff] }
  0x3e   :  { %252 = vmatpush.msrb.mxu0 %v203_v25  ;;  %272 = vmatpush.msrb.mxu1 %v219_v30  ;;  %v355_v25 = vld [vmem:[%s958_s10 + $0x88] sm:$0xff]  ;;  %v289_v30 = vperm.slane %v286_v28, 1 }
  0x40   :  { %253 = vmatpush.msrb.mxu0 %v202_v29  ;;  %273 = vmatpush.msrb.mxu1 %v218_v32  ;;  %v288_v29 = vperm.slane %v286_v28, 0 }
  0x9e   :  { %v101_v36 = vpop.f32.mrf.mxu0  ;;  %v121_v37 = vpop.f32.mrf.mxu1 }
  0x9f   :  { %v102_v38 = vadd.f32 %v101_v36, %v80_v34  ;;  %v122_v39 = vadd.f32 %v121_v37, %v81_v35  ;;  %v439_v37 = vld [vmem:[%s963_s11] ss:$0 sm:$0xff] }
  0xa1   :  { %v124_v40 = vmax.f32 %v102_v38, 0.0  ;;  %v125_v41 = vmax.f32 %v122_v39, 0.0 }
  0xa3   :  { %178 = vmatmul.f32.vlgmr.msra.gmra.mxu2 %v124_v40  ;;  %254 = vmatmul.f32.vlgmr.msrb.gmra.mxu0 %v124_v40 }
  0xa4   :  { %198 = vmatmul.f32.vlgmr.msra.gmra.mxu3 %v125_v41  ;;  %274 = vmatmul.f32.vlgmr.msrb.gmra.mxu1 %v125_v41 }
  0xa5   :  { %374 = vmatpush.msra.mxu2 %v353_v44  ;;  %394 = vmatpush.msra.mxu3 %v369_v45 }
  0xa7   :  { %375 = vmatpush.msra.mxu2 %v352_v46  ;;  %395 = vmatpush.msra.mxu3 %v368_v47 }
  0xa9   :  { %376 = vmatpush.msra.mxu2 %v351_v48  ;;  %396 = vmatpush.msra.mxu3 %v367_v49 }
  0xab   :  { %377 = vmatpush.msra.mxu2 %v350_v50  ;;  %397 = vmatpush.msra.mxu3 %v366_v51 }
  0xad   :  { %378 = vmatpush.msra.mxu2 %v349_v52  ;;  %398 = vmatpush.msra.mxu3 %v365_v53 }
  0xaf   :  { %379 = vmatpush.msra.mxu2 %v348_v54  ;;  %399 = vmatpush.msra.mxu3 %v364_v55 }
  0xb1   :  { %380 = vmatpush.msra.mxu2 %v347_v57  ;;  %400 = vmatpush.msra.mxu3 %v363_v58 }
  0xb3   :  { %381 = vmatpush.msra.mxu2 %v346_v60  ;;  %401 = vmatpush.msra.mxu3 %v362_v61 }
  0xb5   :  { %382 = vmatpush.msra.mxu2 %v345_v0  ;;  %402 = vmatpush.msra.mxu3 %v361_v1 }
  0xb7   :  { %383 = vmatpush.msra.mxu2 %v344_v4  ;;  %403 = vmatpush.msra.mxu3 %v360_v5 }
  0xb9   :  { %384 = vmatpush.msra.mxu2 %v343_v8  ;;  %404 = vmatpush.msra.mxu3 %v359_v9 }
  0xbb   :  { %385 = vmatpush.msra.mxu2 %v342_v13  ;;  %405 = vmatpush.msra.mxu3 %v358_v14 }
  0xbd   :  { %386 = vmatpush.msra.mxu2 %v341_v16  ;;  %406 = vmatpush.msra.mxu3 %v357_v17 }
  0xbf   :  { %387 = vmatpush.msra.mxu2 %v340_v22  ;;  %407 = vmatpush.msra.mxu3 %v356_v23 }
  0xc1   :  { %388 = vmatpush.msra.mxu2 %v339_v24  ;;  %408 = vmatpush.msra.mxu3 %v355_v25 }
  0xc3   :  { %389 = vmatpush.msra.mxu2 %v338_v26  ;;  %409 = vmatpush.msra.mxu3 %v354_v27 }
 0x120   :  { %v255_v59 = vpop.f32.mrf.mxu0 }
 0x121   :  { %v256_v62 = vadd.f32 %v437_v56, %v255_v59  ;;  %v275_v63 = vpop.f32.mrf.mxu1 }
 0x123   :  { %v276_v2 = vadd.f32 %v275_v63, %v256_v62 }
 0x125   :  { %v278_v6 = vmul.f32 0.5, %v276_v2  ;;  %416 = vst.msk [vmem:[%s959_s13] sm:$0xff] %vm292_vm0, %v276_v2 }
 0x126   :  { %v179_v7 = vpop.f32.mrf.mxu2 }
 0x127   :  { %v279_v10 = vmul.f32 1.442695, %v278_v6  ;;  %v180_v11 = vadd.f32 %v438_v3, %v179_v7  ;;  %v199_v12 = vpop.f32.mrf.mxu3 }
 0x129   :  { %440 = vpow2.f32 %v279_v10  ;;  %v200_v15 = vadd.f32 %v199_v12, %v180_v11 }
 0x12b   :  { %415 = vst.msk [vmem:[%s960_s12] sm:$0xff] %vm292_vm0, %v200_v15 }
 0x12f   :  { %v441_v19 = vpop.eup %440 }
 0x130   :  { %v282_v20 = vmul.f32 %v441_v19, %v281_v18 }
 0x132   :  { %v283_v21 = vadd.f32 %v282_v20, %v200_v15 }
 0x134   :  { %417 = vst.msk [vmem:[%s962_s14] sm:$0xff] %vm292_vm0, %v283_v21  ;;  %435 = vmatmul.msk.f32.vlgmr.msrb.gmra.mxu2 %vm292_vm0, %v283_v21  ;;  %436 = vmatmul.msk.f32.vlgmr.msrb.gmra.mxu3 %vm292_vm0, %v283_v21 }
 0x1b7   :  { %v313_v31 = vpop.f32.mrf.mxu2  ;;  %v333_v32 = vpop.f32.mrf.mxu3 }
 0x1b8   :  { %v314_v33 = vadd.f32 %v313_v31, %v288_v29  ;;  %v334_v34 = vadd.f32 %v333_v32, %v289_v30 }
 0x1ba   :  { %v336_v35 = vmax.f32 %v314_v33, 0.0  ;;  %v337_v36 = vmax.f32 %v334_v34, 0.0 }
 0x1bc   :  { %390 = vmatmul.f32.vlgmr.msra.gmra.mxu2 %v336_v35  ;;  %410 = vmatmul.f32.vlgmr.msra.gmra.mxu3 %v337_v36 }
 0x23f   :  { %v391_v38 = vpop.f32.mrf.mxu2  ;;  %v411_v40 = vpop.f32.mrf.mxu3 }
 0x240   :  { %v392_v39 = vadd.f32 %v439_v37, %v391_v38 }
 0x242   :  { %v412_v41 = vadd.f32 %v411_v40, %v392_v39 }
 0x244   :  { %v414_v42 = vmax.f32 %v412_v41, 0.0 }
 0x246   :  { %418 = vst [vmem:[%s965_s15] sm:$0xff] %v414_v42 }

// kernel: quadruplet_forward.11
= control target key start
LH: loop header
LB: loop body
LE: loop exit
PB: predicated region body
PF: predicated region fallthrough
CT: control target
= control target key end

     0   :  { %vm407_vm0 = vcmask 261120   ;;  %v853_v14 = vmov 0   ;;  %s1229_s1 = inlined_call_operand.vmem [shape: bf16[288,32], index: 1, kind: input, shape index: {}]   ;;  %s1230_s0 = inlined_call_operand.vmem [shape: bf16[128,288], index: 0, kind: input, shape index: {}]   ;;  %s1231_s2 = inlined_call_operand.vmem [shape: f32[128,1], index: 2, kind: input, shape index: {}]   ;;  %s1232_s3 = inlined_call_operand.vmem [shape: f32[128,32], index: 3, kind: output, shape index: {}]  }
   0x1   :  { %v822_v0 = vld [vmem:[%s1229_s1 + $0x38] sm:$0xff]  ;;  %v832_v1 = vld [vmem:[%s1229_s1 + $0x88] sm:$0xff]  ;;  %v821_v3 = vld [vmem:[%s1229_s1 + $0x30] sm:$0xff]  ;;  %850 = vset.pattern.permute.xlu0 %v853_v14  ;;  %851 = vset.pattern.permute.xlu1 %v853_v14 }
   0x2   :  { %v883_v2 = vld [vmem:[%s1229_s1 + $0x78] sm:$0xff]  ;;  %432 = vmatpush.bf16.msra.mxu0 %v822_v0  ;;  %833 = vmatpush.bf16.msra.mxu3 %v822_v0  ;;  %v831_v4 = vld [vmem:[%s1229_s1 + $0x80] sm:$0xff]  ;;  %v895_v5 = vld [vmem:[%s1229_s1 + $0x70] sm:$0xff] }
   0x3   :  { %536 = vmatpush.bf16.msra.mxu2 %v832_v1  ;;  %481 = vmatpush.bf16.msra.mxu1 %v883_v2  ;;  %v625_v6 = vld [vmem:[%s1230_s0 + $0x8] sm:$0xf]  ;;  %v793_v7 = vld [vmem:[%s1230_s0 + $0x10] sm:$0xf0]  ;;  %v819_v11 = vld [vmem:[%s1229_s1 + $0x20] sm:$0xff] }
   0x4   :  { %v626_v8 = vor.u32 %v793_v7, %v625_v6  ;;  %v820_v9 = vld [vmem:[%s1229_s1 + $0x28] sm:$0xff]  ;;  %v83_v12 = vld [vmem:[%s1231_s2] sm:$0xff]  ;;  %852 = vset.pattern.permute.xlu2 %v853_v14  ;;  %v818_v15 = vld [vmem:[%s1229_s1 + $0x18] sm:$0xff] }
   0x5   :  { %v910_v10 = vld [vmem:[%s1229_s1 + $0x68] sm:$0xff]  ;;  %v923_v13 = vld [vmem:[%s1229_s1 + $0x60] sm:$0xff]  ;;  %101 = vperm.xlu0 %850, %v83_v12   ;;  %v932_v16 = vld [vmem:[%s1229_s1 + $0x58] sm:$0xff] }
   0x6   :  { %433 = vmatpush.bf16.msra.mxu0 %v821_v3  ;;  %834 = vmatpush.bf16.msra.mxu3 %v821_v3  ;;  %v817_v17 = vld [vmem:[%s1229_s1 + $0x10] sm:$0xff]  ;;  %v84_v18 = vld [vmem:[%s1231_s2 + $0x8] sm:$0xff]  ;;  %v637_v20 = vld [vmem:[%s1230_s0 + $0x20] sm:$0xf] }
   0x7   :  { %537 = vmatpush.bf16.msra.mxu2 %v831_v4  ;;  %482 = vmatpush.bf16.msra.mxu1 %v895_v5  ;;  %v944_v19 = vld [vmem:[%s1229_s1 + $0x50] sm:$0xff]  ;;  %v796_v21 = vld [vmem:[%s1230_s0 + $0x28] sm:$0xf0]  ;;  %v815_v26 = vld [vmem:[%s1229_s1] sm:$0xff] }
   0x8   :  { %v85_v22 = vld [vmem:[%s1231_s2 + $0x10] sm:$0xff]  ;;  %v638_v23 = vor.u32 %v796_v21, %v637_v20  ;;  %v816_v24 = vld [vmem:[%s1229_s1 + $0x8] sm:$0xff]  ;;  %v968_v27 = vld [vmem:[%s1229_s1 + $0x40] sm:$0xff] }
   0x9   :  { %111 = vperm.xlu1 %851, %v85_v22   ;;  %v824_v25 = vld [vmem:[%s1229_s1 + $0x48] sm:$0xff]  ;;  %v617_v28 = vld [vmem:[%s1230_s0] sm:$0xf]  ;;  %v689_v30 = vld [vmem:[%s1230_s0 + $0x90] sm:$0xf] }
   0xa   :  { %783 = vmatmul.msk.bf16.vlgmr.msra.gmra.mxu2 %vm407_vm0, %v626_v8  ;;  %434 = vmatpush.bf16.msra.mxu0 %v820_v9  ;;  %v792_v29 = vld [vmem:[%s1230_s0 + $0x8] sm:$0xf0]  ;;  %v810_v31 = vld [vmem:[%s1230_s0 + $0x98] sm:$0xf0]  ;;  %v791_v32 = vld [vmem:[%s1230_s0 + $0x4] sm:$0xf] }
   0xb   :  { %835 = vmatpush.bf16.msra.mxu3 %v820_v9  ;;  %483 = vmatpush.bf16.msra.mxu1 %v910_v10  ;;  %v619_v33 = vld [vmem:[%s1230_s0 + $0xc] sm:$0xf0]  ;;  %v86_v34 = vld [vmem:[%s1231_s2 + $0x18] sm:$0xff]  ;;  %v618_v35 = vor.u32 %v792_v29, %v617_v28  ;;  %v690_v36 = vor.u32 %v810_v31, %v689_v30  ;;  %v799_v41 = vld [vmem:[%s1230_s0 + $0x40] sm:$0xf0] }
   0xc   :  { %v622_v37 = vor.u32 %v791_v32, %v619_v33  ;;  %v90_v38 = vld [vmem:[%s1231_s2 + $0x38] sm:$0xff]  ;;  %v89_v39 = vld [vmem:[%s1231_s2 + $0x30] sm:$0xff]  ;;  %v795_v44 = vld [vmem:[%s1230_s0 + $0x20] sm:$0xf0] }
   0xd   :  { %106 = vperm.xlu0 %850, %v84_v18   ;;  %v649_v40 = vld [vmem:[%s1230_s0 + $0x38] sm:$0xf]  ;;  %v701_v45 = vld [vmem:[%s1230_s0 + $0xa8] sm:$0xf]  ;;  %v93_v46 = vld [vmem:[%s1231_s2 + $0x50] sm:$0xff] }
   0xe   :  { %435 = vmatpush.bf16.msra.mxu0 %v819_v11  ;;  %v650_v42 = vor.u32 %v799_v41, %v649_v40  ;;  %v629_v43 = vld [vmem:[%s1230_s0 + $0x18] sm:$0xf]  ;;  %v92_v47 = vld [vmem:[%s1231_s2 + $0x48] sm:$0xff]  ;;  %v813_v48 = vld [vmem:[%s1230_s0 + $0xb0] sm:$0xf0] }
   0xf   :  { %836 = vmatpush.bf16.msra.mxu3 %v819_v11  ;;  %484 = vmatpush.bf16.msra.mxu1 %v923_v13  ;;  %v794_v49 = vld [vmem:[%s1230_s0 + $0x1c] sm:$0xf]  ;;  %v631_v50 = vld [vmem:[%s1230_s0 + $0x24] sm:$0xf0]  ;;  %v630_v51 = vor.u32 %v795_v44, %v629_v43  ;;  %v702_v52 = vor.u32 %v813_v48, %v701_v45  ;;  %v95_v55 = vld [vmem:[%s1231_s2 + $0x60] sm:$0xff] }
  0x10   :  { %v634_v53 = vor.u32 %v794_v49, %v631_v50  ;;  %v96_v54 = vld [vmem:[%s1231_s2 + $0x68] sm:$0xff]  ;;  %v661_v56 = vld [vmem:[%s1230_s0 + $0x50] sm:$0xf]  ;;  %v802_v57 = vld [vmem:[%s1230_s0 + $0x58] sm:$0xf0] }
  0x11   :  { %116 = vperm.xlu1 %851, %v86_v34   ;;  %v662_v58 = vor.u32 %v802_v57, %v661_v56  ;;  %v641_v59 = vld [vmem:[%s1230_s0 + $0x30] sm:$0xf]  ;;  %v798_v60 = vld [vmem:[%s1230_s0 + $0x38] sm:$0xf0]  ;;  %v809_v61 = vld [vmem:[%s1230_s0 + $0x94] sm:$0xf] }
  0x12   :  { %436 = vmatpush.bf16.msra.mxu0 %v818_v15  ;;  %v87_v62 = vld [vmem:[%s1231_s2 + $0x20] sm:$0xff]  ;;  %v797_v0 = vld [vmem:[%s1230_s0 + $0x34] sm:$0xf]  ;;  %v88_v6 = vld [vmem:[%s1231_s2 + $0x28] sm:$0xff] }
  0x13   :  { %837 = vmatpush.bf16.msra.mxu3 %v818_v15  ;;  %485 = vmatpush.bf16.msra.mxu1 %v932_v16  ;;  %v691_v63 = vld [vmem:[%s1230_s0 + $0x9c] sm:$0xf0]  ;;  %v673_v7 = vld [vmem:[%s1230_s0 + $0x68] sm:$0xf]  ;;  %v805_v8 = vld [vmem:[%s1230_s0 + $0x70] sm:$0xf0] }
  0x14   :  { %v643_v1 = vld [vmem:[%s1230_s0 + $0x3c] sm:$0xf0]  ;;  %121 = vperm.xlu2 %852, %v87_v62   ;;  %v694_v3 = vor.u32 %v809_v61, %v691_v63  ;;  %v674_v9 = vor.u32 %v805_v8, %v673_v7  ;;  %v801_v11 = vld [vmem:[%s1230_s0 + $0x50] sm:$0xf0]  ;;  %v812_v12 = vld [vmem:[%s1230_s0 + $0xac] sm:$0xf] }
  0x15   :  { %131 = vperm.xlu0 %850, %v89_v39   ;;  %v646_v4 = vor.u32 %v797_v0, %v643_v1  ;;  %v703_v14 = vld [vmem:[%s1230_s0 + $0xb4] sm:$0xf0]  ;;  %v800_v15 = vld [vmem:[%s1230_s0 + $0x4c] sm:$0xf]  ;;  %v685_v21 = vld [vmem:[%s1230_s0 + $0x80] sm:$0xf] }
  0x16   :  { %437 = vmatpush.bf16.msra.mxu0 %v817_v17  ;;  %v706_v18 = vor.u32 %v812_v12, %v703_v14  ;;  %v94_v20 = vld [vmem:[%s1231_s2 + $0x58] sm:$0xff]  ;;  %v808_v22 = vld [vmem:[%s1230_s0 + $0x88] sm:$0xf0]  ;;  %v667_v28 = vld [vmem:[%s1230_s0 + $0x6c] sm:$0xf0] }
  0x17   :  { %838 = vmatpush.bf16.msra.mxu3 %v817_v17  ;;  %486 = vmatpush.bf16.msra.mxu1 %v944_v19  ;;  %v697_v31 = vld [vmem:[%s1230_s0 + $0x98] sm:$0xf]  ;;  %v811_v32 = vld [vmem:[%s1230_s0 + $0xa0] sm:$0xf0]  ;;  %v709_v40 = vld [vmem:[%s1230_s0 + $0xb0] sm:$0xf] }
  0x18   :  { %v698_v33 = vor.u32 %v811_v32, %v697_v31  ;;  %v677_v34 = vld [vmem:[%s1230_s0 + $0x78] sm:$0xf]  ;;  %v814_v41 = vld [vmem:[%s1230_s0 + $0xb8] sm:$0xf0] }
  0x19   :  { %136 = vperm.xlu1 %851, %v90_v38  }
  0x1a   :  { %784 = vmatmul.msk.bf16.gmra.mxu2 %vm407_vm0, %v638_v23  ;;  %438 = vmatpush.bf16.msra.mxu0 %v816_v24  ;;  %v686_v23 = vor.u32 %v808_v22, %v685_v21 }
  0x1b   :  { %839 = vmatpush.bf16.msra.mxu3 %v816_v24  ;;  %487 = vmatpush.bf16.msra.mxu1 %v824_v25  ;;  %v665_v24 = vld [vmem:[%s1230_s0 + $0x60] sm:$0xf] }
  0x1c   :  { %126 = vperm.xlu2 %852, %v88_v6  }
  0x1d   :  { %146 = vperm.xlu0 %850, %v92_v47  }
  0x1e   :  { %439 = vmatpush.bf16.msra.mxu0 %v815_v26 }
  0x1f   :  { %840 = vmatpush.bf16.msra.mxu3 %v815_v26  ;;  %488 = vmatpush.bf16.msra.mxu1 %v968_v27  ;;  %v97_v26 = vld [vmem:[%s1231_s2 + $0x70] sm:$0xff] }
  0x21   :  { %440 = vmatmul.bf16.vlgmr.msra.gmra.mxu0 %v618_v35  ;;  %151 = vperm.xlu1 %851, %v93_v46   ;;  %v807_v35 = vld [vmem:[%s1230_s0 + $0x80] sm:$0xf0] }
  0x22   :  { %470 = vmatmul.bf16.vlgmr.msra.gmra.mxu3 %v690_v36  ;;  %489 = vmatmul.bf16.vlgmr.msra.gmra.mxu1 %v622_v37  ;;  %v806_v36 = vld [vmem:[%s1230_s0 + $0x7c] sm:$0xf]  ;;  %v679_v37 = vld [vmem:[%s1230_s0 + $0x84] sm:$0xf0]  ;;  %v678_v38 = vor.u32 %v807_v35, %v677_v34 }
  0x23   :  { %841 = vmatpush.bf16.msrb.mxu3 %v883_v2  ;;  %v642_v2 = vor.u32 %v798_v60, %v641_v59  ;;  %v682_v39 = vor.u32 %v806_v36, %v679_v37 }
  0x25   :  { %161 = vperm.xlu0 %850, %v95_v55  }
  0x27   :  { %842 = vmatpush.bf16.msrb.mxu3 %v895_v5  ;;  %v98_v5 = vld [vmem:[%s1231_s2 + $0x78] sm:$0xff] }
  0x29   :  { %166 = vperm.xlu1 %851, %v96_v54  }
  0x2a   :  { %785 = vmatmul.msk.bf16.gmra.mxu2 %vm407_vm0, %v650_v42  ;;  %v710_v42 = vor.u32 %v814_v41, %v709_v40 }
  0x2b   :  { %843 = vmatpush.bf16.msrb.mxu3 %v910_v10  ;;  %v653_v10 = vld [vmem:[%s1230_s0 + $0x48] sm:$0xf] }
  0x2c   :  { %v654_v17 = vor.u32 %v801_v11, %v653_v10 }
  0x2d   :  { %176 = vperm.xlu0 %850, %v98_v5  }
  0x2f   :  { %844 = vmatpush.bf16.msrb.mxu3 %v923_v13  ;;  %v91_v13 = vld [vmem:[%s1231_s2 + $0x40] sm:$0xff] }
  0x30   :  { %141 = vperm.xlu2 %852, %v91_v13  }
  0x31   :  { %445 = vmatmul.bf16.gmra.mxu0 %v630_v51 }
  0x32   :  { %475 = vmatmul.bf16.gmra.mxu3 %v702_v52  ;;  %494 = vmatmul.bf16.gmra.mxu1 %v634_v53 }
  0x33   :  { %845 = vmatpush.bf16.msrb.mxu3 %v932_v16  ;;  %v655_v16 = vld [vmem:[%s1230_s0 + $0x54] sm:$0xf0] }
  0x37   :  { %846 = vmatpush.bf16.msrb.mxu3 %v944_v19  ;;  %v658_v19 = vor.u32 %v800_v15, %v655_v16 }
  0x38   :  { %156 = vperm.xlu2 %852, %v94_v20  }
  0x3a   :  { %786 = vmatmul.msk.bf16.gmra.mxu2 %vm407_vm0, %v662_v58 }
  0x3b   :  { %847 = vmatpush.bf16.msrb.mxu3 %v824_v25  ;;  %v804_v25 = vld [vmem:[%s1230_s0 + $0x68] sm:$0xf0] }
  0x3c   :  { %v666_v29 = vor.u32 %v804_v25, %v665_v24 }
  0x3f   :  { %848 = vmatpush.bf16.msrb.mxu3 %v968_v27  ;;  %v803_v27 = vld [vmem:[%s1230_s0 + $0x64] sm:$0xf] }
  0x40   :  { %171 = vperm.xlu2 %852, %v97_v26   ;;  %v670_v30 = vor.u32 %v803_v27, %v667_v28 }
  0x41   :  { %450 = vmatmul.bf16.gmra.mxu0 %v642_v2 }
  0x42   :  { %519 = vmatmul.bf16.vlgmr.msrb.gmra.mxu3 %v694_v3  ;;  %499 = vmatmul.bf16.gmra.mxu1 %v646_v4 }
  0x4a   :  { %787 = vmatmul.msk.bf16.gmra.mxu2 %vm407_vm0, %v674_v9 }
  0x51   :  { %455 = vmatmul.bf16.gmra.mxu0 %v654_v17 }
  0x52   :  { %524 = vmatmul.bf16.gmra.mxu3 %v706_v18  ;;  %504 = vmatmul.bf16.gmra.mxu1 %v658_v19 }
  0x5a   :  { %788 = vmatmul.msk.bf16.gmra.mxu2 %vm407_vm0, %v686_v23 }
  0x61   :  { %460 = vmatmul.bf16.gmra.mxu0 %v666_v29 }
  0x62   :  { %509 = vmatmul.bf16.gmra.mxu1 %v670_v30 }
  0x6a   :  { %789 = vmatmul.msk.bf16.gmra.mxu2 %vm407_vm0, %v698_v33 }
  0x6e   :  { %v122_v13 = vpop.permute.xlu2 %121 }
  0x71   :  { %465 = vmatmul.bf16.gmra.mxu0 %v678_v38 }
  0x72   :  { %514 = vmatmul.bf16.gmra.mxu1 %v682_v39 }
  0x76   :  { %v127_v24 = vpop.permute.xlu2 %126 }
  0x77   :  { %v102_v45 = vpop.permute.xlu0 %101 }
  0x7a   :  { %790 = vmatmul.msk.bf16.gmra.mxu2 %vm407_vm0, %v710_v42 }
  0x7b   :  { %v112_v60 = vpop.permute.xlu1 %111 }
  0x7f   :  { %v107_v52 = vpop.permute.xlu0 %106 }
  0x83   :  { %v117_v6 = vpop.permute.xlu1 %116 }
  0x87   :  { %v132_v32 = vpop.permute.xlu0 %131 }
  0x8b   :  { %v137_v41 = vpop.permute.xlu1 %136 }
  0x8d   :  { %v539_v43 = vpop.f32.mrf.mxu2 }
  0x95   :  { %v541_v44 = vpop.f32.mrf.mxu2 }
  0x9d   :  { %v544_v46 = vpop.f32.mrf.mxu2 }
  0x9e   :  { %v441_v47 = vpop.f32.mrf.mxu0 }
  0x9f   :  { %v442_v48 = vadd.f32 %v441_v47, %v102_v45  ;;  %v490_v49 = vpop.f32.mrf.mxu1  ;;  %v147_v47 = vpop.permute.xlu0 %146 }
  0xa1   :  { %v491_v50 = vadd.f32 %v490_v49, %v442_v48 }
  0xa3   :  { %v540_v51 = vadd.f32 %v539_v43, %v491_v50 }
  0xa5   :  { %v579_v53 = vmax.f32 %v540_v51, 0.0  ;;  %v546_v54 = vpop.f32.mrf.mxu2  ;;  %v471_v11 = vpop.f32.mrf.mxu3 }
  0xa6   :  { %v443_v55 = vpop.f32.mrf.mxu0  ;;  %v142_v51 = vpop.permute.xlu2 %141 }
  0xa7   :  { %595 = vst.msk [vmem:[%s1232_s3] sm:$0xff] %vm407_vm0, %v579_v53  ;;  %v444_v56 = vadd.f32 %v443_v55, %v107_v52  ;;  %v492_v57 = vpop.f32.mrf.mxu1 }
  0xa9   :  { %v493_v58 = vadd.f32 %v492_v57, %v444_v56  ;;  %v152_v56 = vpop.permute.xlu1 %151 }
  0xab   :  { %v542_v59 = vadd.f32 %v541_v44, %v493_v58 }
  0xad   :  { %v580_v61 = vmax.f32 %v542_v59, 0.0  ;;  %v549_v62 = vpop.f32.mrf.mxu2  ;;  %v1172_v21 = vpop.f32.mrf.mxu3 }
  0xae   :  { %v446_v63 = vpop.f32.mrf.mxu0  ;;  %v162_v59 = vpop.permute.xlu0 %161 }
  0xaf   :  { %596 = vst.msk [vmem:[%s1232_s3 + $0x8] sm:$0xff] %vm407_vm0, %v580_v61  ;;  %v447_v0 = vadd.f32 %v446_v63, %v112_v60  ;;  %v495_v1 = vpop.f32.mrf.mxu1 }
  0xb1   :  { %v496_v2 = vadd.f32 %v495_v1, %v447_v0  ;;  %v472_v1 = vadd.f32 %v471_v11, %v162_v59 }
  0xb3   :  { %v545_v3 = vadd.f32 %v544_v46, %v496_v2 }
  0xb5   :  { %v581_v4 = vmax.f32 %v545_v3, 0.0  ;;  %v551_v5 = vpop.f32.mrf.mxu2  ;;  %v1178_v34 = vpop.f32.mrf.mxu3 }
  0xb6   :  { %v448_v7 = vpop.f32.mrf.mxu0  ;;  %v157_v3 = vpop.permute.xlu2 %156 }
  0xb7   :  { %597 = vst.msk [vmem:[%s1232_s3 + $0x10] sm:$0xff] %vm407_vm0, %v581_v4  ;;  %v449_v8 = vadd.f32 %v448_v7, %v117_v6  ;;  %v497_v9 = vpop.f32.mrf.mxu1 }
  0xb9   :  { %v498_v10 = vadd.f32 %v497_v9, %v449_v8 }
  0xbb   :  { %v547_v12 = vadd.f32 %v546_v54, %v498_v10 }
  0xbd   :  { %v582_v14 = vmax.f32 %v547_v12, 0.0  ;;  %v554_v15 = vpop.f32.mrf.mxu2  ;;  %v1188_v45 = vpop.f32.mrf.mxu3 }
  0xbe   :  { %v451_v16 = vpop.f32.mrf.mxu0 }
  0xbf   :  { %598 = vst.msk [vmem:[%s1232_s3 + $0x18] sm:$0xff] %vm407_vm0, %v582_v14  ;;  %v452_v17 = vadd.f32 %v451_v16, %v122_v13  ;;  %v500_v18 = vpop.f32.mrf.mxu1 }
  0xc1   :  { %v501_v19 = vadd.f32 %v500_v18, %v452_v17 }
  0xc3   :  { %v550_v20 = vadd.f32 %v549_v62, %v501_v19  ;;  %v172_v19 = vpop.permute.xlu2 %171 }
  0xc5   :  { %v583_v22 = vmax.f32 %v550_v20, 0.0  ;;  %v556_v23 = vpop.f32.mrf.mxu2  ;;  %v520_v57 = vpop.f32.mrf.mxu3 }
  0xc6   :  { %v453_v25 = vpop.f32.mrf.mxu0  ;;  %v521_v6 = vadd.f32 %v520_v57, %v472_v1 }
  0xc7   :  { %599 = vst.msk [vmem:[%s1232_s3 + $0x20] sm:$0xff] %vm407_vm0, %v583_v22  ;;  %v454_v26 = vadd.f32 %v453_v25, %v127_v24  ;;  %v502_v27 = vpop.f32.mrf.mxu1 }
  0xc9   :  { %v503_v28 = vadd.f32 %v502_v27, %v454_v26  ;;  %v477_v27 = vadd.f32 %v1178_v34, %v172_v19 }
  0xcb   :  { %v552_v29 = vadd.f32 %v551_v5, %v503_v28  ;;  %v167_v5 = vpop.permute.xlu1 %166 }
  0xcd   :  { %v584_v30 = vmax.f32 %v552_v29, 0.0  ;;  %v559_v31 = vpop.f32.mrf.mxu2  ;;  %v522_v7 = vpop.f32.mrf.mxu3 }
  0xce   :  { %v456_v33 = vpop.f32.mrf.mxu0 }
  0xcf   :  { %600 = vst.msk [vmem:[%s1232_s3 + $0x28] sm:$0xff] %vm407_vm0, %v584_v30  ;;  %v457_v35 = vadd.f32 %v456_v33, %v132_v32  ;;  %v505_v36 = vpop.f32.mrf.mxu1 }
  0xd1   :  { %v506_v37 = vadd.f32 %v505_v36, %v457_v35  ;;  %v177_v36 = vpop.permute.xlu0 %176 }
  0xd3   :  { %v555_v38 = vadd.f32 %v554_v15, %v506_v37  ;;  %v474_v15 = vadd.f32 %v1172_v21, %v167_v5 }
  0xd5   :  { %v585_v39 = vmax.f32 %v555_v38, 0.0  ;;  %v561_v40 = vpop.f32.mrf.mxu2  ;;  %v523_v18 = vadd.f32 %v522_v7, %v474_v15  ;;  %v525_v25 = vpop.f32.mrf.mxu3  ;;  %v479_v38 = vadd.f32 %v1188_v45, %v177_v36 }
  0xd6   :  { %v458_v42 = vpop.f32.mrf.mxu0 }
  0xd7   :  { %601 = vst.msk [vmem:[%s1232_s3 + $0x30] sm:$0xff] %vm407_vm0, %v585_v39  ;;  %v459_v43 = vadd.f32 %v458_v42, %v137_v41  ;;  %v507_v44 = vpop.f32.mrf.mxu1 }
  0xd9   :  { %v508_v46 = vadd.f32 %v507_v44, %v459_v43 }
  0xdb   :  { %v557_v48 = vadd.f32 %v556_v23, %v508_v46 }
  0xdd   :  { %v586_v49 = vmax.f32 %v557_v48, 0.0  ;;  %v564_v50 = vpop.f32.mrf.mxu2  ;;  %v527_v34 = vpop.f32.mrf.mxu3 }
  0xde   :  { %v461_v52 = vpop.f32.mrf.mxu0  ;;  %v528_v39 = vadd.f32 %v527_v34, %v479_v38 }
  0xdf   :  { %602 = vst.msk [vmem:[%s1232_s3 + $0x38] sm:$0xff] %vm407_vm0, %v586_v49  ;;  %v462_v53 = vadd.f32 %v461_v52, %v142_v51  ;;  %v510_v54 = vpop.f32.mrf.mxu1 }
  0xe1   :  { %v511_v55 = vadd.f32 %v510_v54, %v462_v53 }
  0xe3   :  { %v560_v58 = vadd.f32 %v559_v31, %v511_v55  ;;  %v526_v31 = vadd.f32 %v525_v25, %v477_v27 }
  0xe5   :  { %v587_v60 = vmax.f32 %v560_v58, 0.0  ;;  %v566_v61 = vpop.f32.mrf.mxu2 }
  0xe6   :  { %v463_v62 = vpop.f32.mrf.mxu0 }
  0xe7   :  { %603 = vst.msk [vmem:[%s1232_s3 + $0x40] sm:$0xff] %vm407_vm0, %v587_v60  ;;  %v464_v63 = vadd.f32 %v463_v62, %v147_v47  ;;  %v512_v0 = vpop.f32.mrf.mxu1 }
  0xe9   :  { %v513_v2 = vadd.f32 %v512_v0, %v464_v63 }
  0xeb   :  { %v562_v4 = vadd.f32 %v561_v40, %v513_v2 }
  0xed   :  { %v588_v8 = vmax.f32 %v562_v4, 0.0  ;;  %v569_v9 = vpop.f32.mrf.mxu2 }
  0xee   :  { %v570_v10 = vadd.f32 %v569_v9, %v521_v6  ;;  %v466_v12 = vpop.f32.mrf.mxu0 }
  0xef   :  { %604 = vst.msk [vmem:[%s1232_s3 + $0x48] sm:$0xff] %vm407_vm0, %v588_v8  ;;  %v467_v13 = vadd.f32 %v466_v12, %v152_v56  ;;  %v515_v14 = vpop.f32.mrf.mxu1 }
  0xf0   :  { %v591_v11 = vmax.f32 %v570_v10, 0.0 }
  0xf1   :  { %v516_v16 = vadd.f32 %v515_v14, %v467_v13 }
  0xf2   :  { %607 = vst.msk [vmem:[%s1232_s3 + $0x60] sm:$0xff] %vm407_vm0, %v591_v11 }
  0xf3   :  { %v565_v17 = vadd.f32 %v564_v50, %v516_v16 }
  0xf5   :  { %v589_v20 = vmax.f32 %v565_v17, 0.0  ;;  %v571_v22 = vpop.f32.mrf.mxu2 }
  0xf6   :  { %v572_v23 = vadd.f32 %v571_v22, %v523_v18  ;;  %v468_v24 = vpop.f32.mrf.mxu0 }
  0xf7   :  { %605 = vst.msk [vmem:[%s1232_s3 + $0x50] sm:$0xff] %vm407_vm0, %v589_v20  ;;  %v469_v21 = vadd.f32 %v468_v24, %v157_v3  ;;  %v517_v26 = vpop.f32.mrf.mxu1 }
  0xf8   :  { %v592_v28 = vmax.f32 %v572_v23, 0.0 }
  0xf9   :  { %v518_v29 = vadd.f32 %v517_v26, %v469_v21 }
  0xfa   :  { %608 = vst.msk [vmem:[%s1232_s3 + $0x68] sm:$0xff] %vm407_vm0, %v592_v28 }
  0xfb   :  { %v567_v30 = vadd.f32 %v566_v61, %v518_v29 }
  0xfd   :  { %v590_v32 = vmax.f32 %v567_v30, 0.0  ;;  %v574_v33 = vpop.f32.mrf.mxu2 }
  0xfe   :  { %v575_v35 = vadd.f32 %v574_v33, %v526_v31 }
  0xff   :  { %606 = vst.msk [vmem:[%s1232_s3 + $0x58] sm:$0xff] %vm407_vm0, %v590_v32 }
 0x100   :  { %v593_v37 = vmax.f32 %v575_v35, 0.0 }
 0x102   :  { %609 = vst.msk [vmem:[%s1232_s3 + $0x70] sm:$0xff] %vm407_vm0, %v593_v37 }
 0x105   :  { %v576_v40 = vpop.f32.mrf.mxu2 }
 0x106   :  { %v577_v41 = vadd.f32 %v576_v40, %v528_v39 }
 0x108   :  { %v594_v42 = vmax.f32 %v577_v41, 0.0 }
 0x10a   :  { %610 = vst.msk [vmem:[%s1232_s3 + $0x78] sm:$0xff] %vm407_vm0, %v594_v42 }

// kernel: quadruplet_forward.12
= control target key start
LH: loop header
LB: loop body
LE: loop exit
PB: predicated region body
PF: predicated region fallthrough
CT: control target
= control target key end

     0   :  { %vm407_vm0 = vcmask 261120   ;;  %v853_v14 = vmov 0   ;;  %s1213_s1 = inlined_call_operand.vmem [shape: bf16[288,128], index: 1, kind: input, shape index: {}]   ;;  %s1214_s0 = inlined_call_operand.vmem [shape: bf16[128,288], index: 0, kind: input, shape index: {}]   ;;  %s1215_s2 = inlined_call_operand.vmem [shape: f32[128,1], index: 2, kind: input, shape index: {}]   ;;  %s1216_s3 = inlined_call_operand.vmem [shape: f32[128,128], index: 3, kind: output, shape index: {}]  }
   0x1   :  { %v822_v0 = vld [vmem:[%s1213_s1 + $0x38] sm:$0xff]  ;;  %v832_v1 = vld [vmem:[%s1213_s1 + $0x88] sm:$0xff]  ;;  %v821_v3 = vld [vmem:[%s1213_s1 + $0x30] sm:$0xff]  ;;  %850 = vset.pattern.permute.xlu0 %v853_v14  ;;  %851 = vset.pattern.permute.xlu1 %v853_v14 }
   0x2   :  { %v883_v2 = vld [vmem:[%s1213_s1 + $0x78] sm:$0xff]  ;;  %432 = vmatpush.bf16.msra.mxu0 %v822_v0  ;;  %833 = vmatpush.bf16.msra.mxu3 %v822_v0  ;;  %v831_v4 = vld [vmem:[%s1213_s1 + $0x80] sm:$0xff]  ;;  %v895_v5 = vld [vmem:[%s1213_s1 + $0x70] sm:$0xff] }
   0x3   :  { %536 = vmatpush.bf16.msra.mxu2 %v832_v1  ;;  %481 = vmatpush.bf16.msra.mxu1 %v883_v2  ;;  %v625_v6 = vld [vmem:[%s1214_s0 + $0x8] sm:$0xf]  ;;  %v793_v7 = vld [vmem:[%s1214_s0 + $0x10] sm:$0xf0]  ;;  %v819_v11 = vld [vmem:[%s1213_s1 + $0x20] sm:$0xff] }
   0x4   :  { %v626_v8 = vor.u32 %v793_v7, %v625_v6  ;;  %v820_v9 = vld [vmem:[%s1213_s1 + $0x28] sm:$0xff]  ;;  %v83_v12 = vld [vmem:[%s1215_s2] sm:$0xff]  ;;  %852 = vset.pattern.permute.xlu2 %v853_v14  ;;  %v818_v15 = vld [vmem:[%s1213_s1 + $0x18] sm:$0xff] }
   0x5   :  { %v910_v10 = vld [vmem:[%s1213_s1 + $0x68] sm:$0xff]  ;;  %v923_v13 = vld [vmem:[%s1213_s1 + $0x60] sm:$0xff]  ;;  %101 = vperm.xlu0 %850, %v83_v12   ;;  %v932_v16 = vld [vmem:[%s1213_s1 + $0x58] sm:$0xff] }
   0x6   :  { %433 = vmatpush.bf16.msra.mxu0 %v821_v3  ;;  %834 = vmatpush.bf16.msra.mxu3 %v821_v3  ;;  %v817_v17 = vld [vmem:[%s1213_s1 + $0x10] sm:$0xff]  ;;  %v84_v18 = vld [vmem:[%s1215_s2 + $0x8] sm:$0xff]  ;;  %v637_v20 = vld [vmem:[%s1214_s0 + $0x20] sm:$0xf] }
   0x7   :  { %537 = vmatpush.bf16.msra.mxu2 %v831_v4  ;;  %482 = vmatpush.bf16.msra.mxu1 %v895_v5  ;;  %v944_v19 = vld [vmem:[%s1213_s1 + $0x50] sm:$0xff]  ;;  %v796_v21 = vld [vmem:[%s1214_s0 + $0x28] sm:$0xf0]  ;;  %v815_v26 = vld [vmem:[%s1213_s1] sm:$0xff] }
   0x8   :  { %v85_v22 = vld [vmem:[%s1215_s2 + $0x10] sm:$0xff]  ;;  %v638_v23 = vor.u32 %v796_v21, %v637_v20  ;;  %v816_v24 = vld [vmem:[%s1213_s1 + $0x8] sm:$0xff]  ;;  %v968_v27 = vld [vmem:[%s1213_s1 + $0x40] sm:$0xff] }
   0x9   :  { %111 = vperm.xlu1 %851, %v85_v22   ;;  %v824_v25 = vld [vmem:[%s1213_s1 + $0x48] sm:$0xff]  ;;  %v617_v28 = vld [vmem:[%s1214_s0] sm:$0xf]  ;;  %v689_v30 = vld [vmem:[%s1214_s0 + $0x90] sm:$0xf] }
   0xa   :  { %783 = vmatmul.msk.bf16.vlgmr.msra.gmra.mxu2 %vm407_vm0, %v626_v8  ;;  %434 = vmatpush.bf16.msra.mxu0 %v820_v9  ;;  %v792_v29 = vld [vmem:[%s1214_s0 + $0x8] sm:$0xf0]  ;;  %v810_v31 = vld [vmem:[%s1214_s0 + $0x98] sm:$0xf0]  ;;  %v791_v32 = vld [vmem:[%s1214_s0 + $0x4] sm:$0xf] }
   0xb   :  { %835 = vmatpush.bf16.msra.mxu3 %v820_v9  ;;  %483 = vmatpush.bf16.msra.mxu1 %v910_v10  ;;  %v619_v33 = vld [vmem:[%s1214_s0 + $0xc] sm:$0xf0]  ;;  %v86_v34 = vld [vmem:[%s1215_s2 + $0x18] sm:$0xff]  ;;  %v618_v35 = vor.u32 %v792_v29, %v617_v28  ;;  %v690_v36 = vor.u32 %v810_v31, %v689_v30  ;;  %v799_v41 = vld [vmem:[%s1214_s0 + $0x40] sm:$0xf0] }
   0xc   :  { %v622_v37 = vor.u32 %v791_v32, %v619_v33  ;;  %v90_v38 = vld [vmem:[%s1215_s2 + $0x38] sm:$0xff]  ;;  %v89_v39 = vld [vmem:[%s1215_s2 + $0x30] sm:$0xff]  ;;  %v795_v44 = vld [vmem:[%s1214_s0 + $0x20] sm:$0xf0] }
   0xd   :  { %106 = vperm.xlu0 %850, %v84_v18   ;;  %v649_v40 = vld [vmem:[%s1214_s0 + $0x38] sm:$0xf]  ;;  %v701_v45 = vld [vmem:[%s1214_s0 + $0xa8] sm:$0xf]  ;;  %v93_v46 = vld [vmem:[%s1215_s2 + $0x50] sm:$0xff] }
   0xe   :  { %435 = vmatpush.bf16.msra.mxu0 %v819_v11  ;;  %v650_v42 = vor.u32 %v799_v41, %v649_v40  ;;  %v629_v43 = vld [vmem:[%s1214_s0 + $0x18] sm:$0xf]  ;;  %v92_v47 = vld [vmem:[%s1215_s2 + $0x48] sm:$0xff]  ;;  %v813_v48 = vld [vmem:[%s1214_s0 + $0xb0] sm:$0xf0] }
   0xf   :  { %836 = vmatpush.bf16.msra.mxu3 %v819_v11  ;;  %484 = vmatpush.bf16.msra.mxu1 %v923_v13  ;;  %v794_v49 = vld [vmem:[%s1214_s0 + $0x1c] sm:$0xf]  ;;  %v631_v50 = vld [vmem:[%s1214_s0 + $0x24] sm:$0xf0]  ;;  %v630_v51 = vor.u32 %v795_v44, %v629_v43  ;;  %v702_v52 = vor.u32 %v813_v48, %v701_v45  ;;  %v95_v55 = vld [vmem:[%s1215_s2 + $0x60] sm:$0xff] }
  0x10   :  { %v634_v53 = vor.u32 %v794_v49, %v631_v50  ;;  %v96_v54 = vld [vmem:[%s1215_s2 + $0x68] sm:$0xff]  ;;  %v661_v56 = vld [vmem:[%s1214_s0 + $0x50] sm:$0xf]  ;;  %v802_v57 = vld [vmem:[%s1214_s0 + $0x58] sm:$0xf0] }
  0x11   :  { %116 = vperm.xlu1 %851, %v86_v34   ;;  %v662_v58 = vor.u32 %v802_v57, %v661_v56  ;;  %v641_v59 = vld [vmem:[%s1214_s0 + $0x30] sm:$0xf]  ;;  %v798_v60 = vld [vmem:[%s1214_s0 + $0x38] sm:$0xf0]  ;;  %v809_v61 = vld [vmem:[%s1214_s0 + $0x94] sm:$0xf] }
  0x12   :  { %436 = vmatpush.bf16.msra.mxu0 %v818_v15  ;;  %v87_v62 = vld [vmem:[%s1215_s2 + $0x20] sm:$0xff]  ;;  %v797_v0 = vld [vmem:[%s1214_s0 + $0x34] sm:$0xf]  ;;  %v88_v6 = vld [vmem:[%s1215_s2 + $0x28] sm:$0xff] }
  0x13   :  { %837 = vmatpush.bf16.msra.mxu3 %v818_v15  ;;  %485 = vmatpush.bf16.msra.mxu1 %v932_v16  ;;  %v691_v63 = vld [vmem:[%s1214_s0 + $0x9c] sm:$0xf0]  ;;  %v673_v7 = vld [vmem:[%s1214_s0 + $0x68] sm:$0xf]  ;;  %v805_v8 = vld [vmem:[%s1214_s0 + $0x70] sm:$0xf0] }
  0x14   :  { %v643_v1 = vld [vmem:[%s1214_s0 + $0x3c] sm:$0xf0]  ;;  %121 = vperm.xlu2 %852, %v87_v62   ;;  %v694_v3 = vor.u32 %v809_v61, %v691_v63  ;;  %v674_v9 = vor.u32 %v805_v8, %v673_v7  ;;  %v801_v11 = vld [vmem:[%s1214_s0 + $0x50] sm:$0xf0]  ;;  %v812_v12 = vld [vmem:[%s1214_s0 + $0xac] sm:$0xf] }
  0x15   :  { %131 = vperm.xlu0 %850, %v89_v39   ;;  %v646_v4 = vor.u32 %v797_v0, %v643_v1  ;;  %v703_v14 = vld [vmem:[%s1214_s0 + $0xb4] sm:$0xf0]  ;;  %v800_v15 = vld [vmem:[%s1214_s0 + $0x4c] sm:$0xf]  ;;  %v685_v21 = vld [vmem:[%s1214_s0 + $0x80] sm:$0xf] }
  0x16   :  { %437 = vmatpush.bf16.msra.mxu0 %v817_v17  ;;  %v706_v18 = vor.u32 %v812_v12, %v703_v14  ;;  %v94_v20 = vld [vmem:[%s1215_s2 + $0x58] sm:$0xff]  ;;  %v808_v22 = vld [vmem:[%s1214_s0 + $0x88] sm:$0xf0]  ;;  %v667_v28 = vld [vmem:[%s1214_s0 + $0x6c] sm:$0xf0] }
  0x17   :  { %838 = vmatpush.bf16.msra.mxu3 %v817_v17  ;;  %486 = vmatpush.bf16.msra.mxu1 %v944_v19  ;;  %v697_v31 = vld [vmem:[%s1214_s0 + $0x98] sm:$0xf]  ;;  %v811_v32 = vld [vmem:[%s1214_s0 + $0xa0] sm:$0xf0]  ;;  %v709_v40 = vld [vmem:[%s1214_s0 + $0xb0] sm:$0xf] }
  0x18   :  { %v698_v33 = vor.u32 %v811_v32, %v697_v31  ;;  %v677_v34 = vld [vmem:[%s1214_s0 + $0x78] sm:$0xf]  ;;  %v814_v41 = vld [vmem:[%s1214_s0 + $0xb8] sm:$0xf0] }
  0x19   :  { %136 = vperm.xlu1 %851, %v90_v38  }
  0x1a   :  { %784 = vmatmul.msk.bf16.gmra.mxu2 %vm407_vm0, %v638_v23  ;;  %438 = vmatpush.bf16.msra.mxu0 %v816_v24  ;;  %v686_v23 = vor.u32 %v808_v22, %v685_v21 }
  0x1b   :  { %839 = vmatpush.bf16.msra.mxu3 %v816_v24  ;;  %487 = vmatpush.bf16.msra.mxu1 %v824_v25  ;;  %v665_v24 = vld [vmem:[%s1214_s0 + $0x60] sm:$0xf] }
  0x1c   :  { %126 = vperm.xlu2 %852, %v88_v6  }
  0x1d   :  { %146 = vperm.xlu0 %850, %v92_v47  }
  0x1e   :  { %439 = vmatpush.bf16.msra.mxu0 %v815_v26 }
  0x1f   :  { %840 = vmatpush.bf16.msra.mxu3 %v815_v26  ;;  %488 = vmatpush.bf16.msra.mxu1 %v968_v27  ;;  %v97_v26 = vld [vmem:[%s1215_s2 + $0x70] sm:$0xff] }
  0x21   :  { %440 = vmatmul.bf16.vlgmr.msra.gmra.mxu0 %v618_v35  ;;  %151 = vperm.xlu1 %851, %v93_v46   ;;  %v807_v35 = vld [vmem:[%s1214_s0 + $0x80] sm:$0xf0] }
  0x22   :  { %470 = vmatmul.bf16.vlgmr.msra.gmra.mxu3 %v690_v36  ;;  %489 = vmatmul.bf16.vlgmr.msra.gmra.mxu1 %v622_v37  ;;  %v806_v36 = vld [vmem:[%s1214_s0 + $0x7c] sm:$0xf]  ;;  %v679_v37 = vld [vmem:[%s1214_s0 + $0x84] sm:$0xf0]  ;;  %v678_v38 = vor.u32 %v807_v35, %v677_v34 }
  0x23   :  { %841 = vmatpush.bf16.msrb.mxu3 %v883_v2  ;;  %v642_v2 = vor.u32 %v798_v60, %v641_v59  ;;  %v682_v39 = vor.u32 %v806_v36, %v679_v37 }
  0x25   :  { %161 = vperm.xlu0 %850, %v95_v55  }
  0x27   :  { %842 = vmatpush.bf16.msrb.mxu3 %v895_v5  ;;  %v98_v5 = vld [vmem:[%s1215_s2 + $0x78] sm:$0xff] }
  0x29   :  { %166 = vperm.xlu1 %851, %v96_v54  }
  0x2a   :  { %785 = vmatmul.msk.bf16.gmra.mxu2 %vm407_vm0, %v650_v42  ;;  %v710_v42 = vor.u32 %v814_v41, %v709_v40 }
  0x2b   :  { %843 = vmatpush.bf16.msrb.mxu3 %v910_v10  ;;  %v653_v10 = vld [vmem:[%s1214_s0 + $0x48] sm:$0xf] }
  0x2c   :  { %v654_v17 = vor.u32 %v801_v11, %v653_v10 }
  0x2d   :  { %176 = vperm.xlu0 %850, %v98_v5  }
  0x2f   :  { %844 = vmatpush.bf16.msrb.mxu3 %v923_v13  ;;  %v91_v13 = vld [vmem:[%s1215_s2 + $0x40] sm:$0xff] }
  0x30   :  { %141 = vperm.xlu2 %852, %v91_v13  }
  0x31   :  { %445 = vmatmul.bf16.gmra.mxu0 %v630_v51 }
  0x32   :  { %475 = vmatmul.bf16.gmra.mxu3 %v702_v52  ;;  %494 = vmatmul.bf16.gmra.mxu1 %v634_v53 }
  0x33   :  { %845 = vmatpush.bf16.msrb.mxu3 %v932_v16  ;;  %v655_v16 = vld [vmem:[%s1214_s0 + $0x54] sm:$0xf0] }
  0x37   :  { %846 = vmatpush.bf16.msrb.mxu3 %v944_v19  ;;  %v658_v19 = vor.u32 %v800_v15, %v655_v16 }
  0x38   :  { %156 = vperm.xlu2 %852, %v94_v20  }
  0x3a   :  { %786 = vmatmul.msk.bf16.gmra.mxu2 %vm407_vm0, %v662_v58 }
  0x3b   :  { %847 = vmatpush.bf16.msrb.mxu3 %v824_v25  ;;  %v804_v25 = vld [vmem:[%s1214_s0 + $0x68] sm:$0xf0] }
  0x3c   :  { %v666_v29 = vor.u32 %v804_v25, %v665_v24 }
  0x3f   :  { %848 = vmatpush.bf16.msrb.mxu3 %v968_v27  ;;  %v803_v27 = vld [vmem:[%s1214_s0 + $0x64] sm:$0xf] }
  0x40   :  { %171 = vperm.xlu2 %852, %v97_v26   ;;  %v670_v30 = vor.u32 %v803_v27, %v667_v28 }
  0x41   :  { %450 = vmatmul.bf16.gmra.mxu0 %v642_v2 }
  0x42   :  { %519 = vmatmul.bf16.vlgmr.msrb.gmra.mxu3 %v694_v3  ;;  %499 = vmatmul.bf16.gmra.mxu1 %v646_v4 }
  0x4a   :  { %787 = vmatmul.msk.bf16.gmra.mxu2 %vm407_vm0, %v674_v9 }
  0x51   :  { %455 = vmatmul.bf16.gmra.mxu0 %v654_v17 }
  0x52   :  { %524 = vmatmul.bf16.gmra.mxu3 %v706_v18  ;;  %504 = vmatmul.bf16.gmra.mxu1 %v658_v19 }
  0x5a   :  { %788 = vmatmul.msk.bf16.gmra.mxu2 %vm407_vm0, %v686_v23 }
  0x61   :  { %460 = vmatmul.bf16.gmra.mxu0 %v666_v29 }
  0x62   :  { %509 = vmatmul.bf16.gmra.mxu1 %v670_v30 }
  0x6a   :  { %789 = vmatmul.msk.bf16.gmra.mxu2 %vm407_vm0, %v698_v33 }
  0x6e   :  { %v122_v13 = vpop.permute.xlu2 %121 }
  0x71   :  { %465 = vmatmul.bf16.gmra.mxu0 %v678_v38 }
  0x72   :  { %514 = vmatmul.bf16.gmra.mxu1 %v682_v39 }
  0x76   :  { %v127_v24 = vpop.permute.xlu2 %126 }
  0x77   :  { %v102_v45 = vpop.permute.xlu0 %101 }
  0x7a   :  { %790 = vmatmul.msk.bf16.gmra.mxu2 %vm407_vm0, %v710_v42 }
  0x7b   :  { %v112_v60 = vpop.permute.xlu1 %111 }
  0x7f   :  { %v107_v52 = vpop.permute.xlu0 %106 }
  0x83   :  { %v117_v6 = vpop.permute.xlu1 %116 }
  0x87   :  { %v132_v32 = vpop.permute.xlu0 %131 }
  0x8b   :  { %v137_v41 = vpop.permute.xlu1 %136 }
  0x8d   :  { %v539_v43 = vpop.f32.mrf.mxu2 }
  0x95   :  { %v541_v44 = vpop.f32.mrf.mxu2 }
  0x9d   :  { %v544_v46 = vpop.f32.mrf.mxu2 }
  0x9e   :  { %v441_v47 = vpop.f32.mrf.mxu0 }
  0x9f   :  { %v442_v48 = vadd.f32 %v441_v47, %v102_v45  ;;  %v490_v49 = vpop.f32.mrf.mxu1  ;;  %v147_v47 = vpop.permute.xlu0 %146 }
  0xa1   :  { %v491_v50 = vadd.f32 %v490_v49, %v442_v48 }
  0xa3   :  { %v540_v51 = vadd.f32 %v539_v43, %v491_v50 }
  0xa5   :  { %v579_v53 = vmax.f32 %v540_v51, 0.0  ;;  %v546_v54 = vpop.f32.mrf.mxu2  ;;  %v471_v11 = vpop.f32.mrf.mxu3 }
  0xa6   :  { %v443_v55 = vpop.f32.mrf.mxu0  ;;  %v142_v51 = vpop.permute.xlu2 %141 }
  0xa7   :  { %595 = vst [vmem:[%s1216_s3] sm:$0xff] %v579_v53  ;;  %v444_v56 = vadd.f32 %v443_v55, %v107_v52  ;;  %v492_v57 = vpop.f32.mrf.mxu1 }
  0xa9   :  { %v493_v58 = vadd.f32 %v492_v57, %v444_v56  ;;  %v152_v56 = vpop.permute.xlu1 %151 }
  0xab   :  { %v542_v59 = vadd.f32 %v541_v44, %v493_v58 }
  0xad   :  { %v580_v61 = vmax.f32 %v542_v59, 0.0  ;;  %v549_v62 = vpop.f32.mrf.mxu2  ;;  %v1168_v21 = vpop.f32.mrf.mxu3 }
  0xae   :  { %v446_v63 = vpop.f32.mrf.mxu0  ;;  %v162_v59 = vpop.permute.xlu0 %161 }
  0xaf   :  { %596 = vst [vmem:[%s1216_s3 + $0x8] sm:$0xff] %v580_v61  ;;  %v447_v0 = vadd.f32 %v446_v63, %v112_v60  ;;  %v495_v1 = vpop.f32.mrf.mxu1 }
  0xb1   :  { %v496_v2 = vadd.f32 %v495_v1, %v447_v0  ;;  %v472_v1 = vadd.f32 %v471_v11, %v162_v59 }
  0xb3   :  { %v545_v3 = vadd.f32 %v544_v46, %v496_v2 }
  0xb5   :  { %v581_v4 = vmax.f32 %v545_v3, 0.0  ;;  %v551_v5 = vpop.f32.mrf.mxu2  ;;  %v1173_v34 = vpop.f32.mrf.mxu3 }
  0xb6   :  { %v448_v7 = vpop.f32.mrf.mxu0  ;;  %v157_v3 = vpop.permute.xlu2 %156 }
  0xb7   :  { %597 = vst [vmem:[%s1216_s3 + $0x10] sm:$0xff] %v581_v4  ;;  %v449_v8 = vadd.f32 %v448_v7, %v117_v6  ;;  %v497_v9 = vpop.f32.mrf.mxu1 }
  0xb9   :  { %v498_v10 = vadd.f32 %v497_v9, %v449_v8 }
  0xbb   :  { %v547_v12 = vadd.f32 %v546_v54, %v498_v10 }
  0xbd   :  { %v582_v14 = vmax.f32 %v547_v12, 0.0  ;;  %v554_v15 = vpop.f32.mrf.mxu2  ;;  %v1181_v45 = vpop.f32.mrf.mxu3 }
  0xbe   :  { %v451_v16 = vpop.f32.mrf.mxu0 }
  0xbf   :  { %598 = vst [vmem:[%s1216_s3 + $0x18] sm:$0xff] %v582_v14  ;;  %v452_v17 = vadd.f32 %v451_v16, %v122_v13  ;;  %v500_v18 = vpop.f32.mrf.mxu1 }
  0xc1   :  { %v501_v19 = vadd.f32 %v500_v18, %v452_v17 }
  0xc3   :  { %v550_v20 = vadd.f32 %v549_v62, %v501_v19  ;;  %v172_v19 = vpop.permute.xlu2 %171 }
  0xc5   :  { %v583_v22 = vmax.f32 %v550_v20, 0.0  ;;  %v556_v23 = vpop.f32.mrf.mxu2  ;;  %v520_v57 = vpop.f32.mrf.mxu3 }
  0xc6   :  { %v453_v25 = vpop.f32.mrf.mxu0  ;;  %v521_v6 = vadd.f32 %v520_v57, %v472_v1 }
  0xc7   :  { %599 = vst [vmem:[%s1216_s3 + $0x20] sm:$0xff] %v583_v22  ;;  %v454_v26 = vadd.f32 %v453_v25, %v127_v24  ;;  %v502_v27 = vpop.f32.mrf.mxu1 }
  0xc9   :  { %v503_v28 = vadd.f32 %v502_v27, %v454_v26  ;;  %v477_v27 = vadd.f32 %v1173_v34, %v172_v19 }
  0xcb   :  { %v552_v29 = vadd.f32 %v551_v5, %v503_v28  ;;  %v167_v5 = vpop.permute.xlu1 %166 }
  0xcd   :  { %v584_v30 = vmax.f32 %v552_v29, 0.0  ;;  %v559_v31 = vpop.f32.mrf.mxu2  ;;  %v522_v7 = vpop.f32.mrf.mxu3 }
  0xce   :  { %v456_v33 = vpop.f32.mrf.mxu0 }
  0xcf   :  { %600 = vst [vmem:[%s1216_s3 + $0x28] sm:$0xff] %v584_v30  ;;  %v457_v35 = vadd.f32 %v456_v33, %v132_v32  ;;  %v505_v36 = vpop.f32.mrf.mxu1 }
  0xd1   :  { %v506_v37 = vadd.f32 %v505_v36, %v457_v35  ;;  %v177_v36 = vpop.permute.xlu0 %176 }
  0xd2   :  { %v479_v34 = vadd.f32 %v1181_v45, %v177_v36 }
  0xd3   :  { %v555_v38 = vadd.f32 %v554_v15, %v506_v37  ;;  %v474_v15 = vadd.f32 %v1168_v21, %v167_v5 }
  0xd5   :  { %v585_v39 = vmax.f32 %v555_v38, 0.0  ;;  %v561_v40 = vpop.f32.mrf.mxu2  ;;  %v523_v18 = vadd.f32 %v522_v7, %v474_v15  ;;  %v525_v25 = vpop.f32.mrf.mxu3 }
  0xd6   :  { %v458_v42 = vpop.f32.mrf.mxu0 }
  0xd7   :  { %601 = vst [vmem:[%s1216_s3 + $0x30] sm:$0xff] %v585_v39  ;;  %v459_v43 = vadd.f32 %v458_v42, %v137_v41  ;;  %v507_v44 = vpop.f32.mrf.mxu1 }
  0xd9   :  { %v508_v46 = vadd.f32 %v507_v44, %v459_v43 }
  0xdb   :  { %v557_v48 = vadd.f32 %v556_v23, %v508_v46 }
  0xdd   :  { %v586_v49 = vmax.f32 %v557_v48, 0.0  ;;  %v564_v50 = vpop.f32.mrf.mxu2  ;;  %v527_v38 = vpop.f32.mrf.mxu3 }
  0xde   :  { %v461_v52 = vpop.f32.mrf.mxu0  ;;  %v528_v39 = vadd.f32 %v527_v38, %v479_v34 }
  0xdf   :  { %602 = vst [vmem:[%s1216_s3 + $0x38] sm:$0xff] %v586_v49  ;;  %v462_v53 = vadd.f32 %v461_v52, %v142_v51  ;;  %v510_v54 = vpop.f32.mrf.mxu1 }
  0xe1   :  { %v511_v55 = vadd.f32 %v510_v54, %v462_v53 }
  0xe3   :  { %v560_v58 = vadd.f32 %v559_v31, %v511_v55  ;;  %v526_v31 = vadd.f32 %v525_v25, %v477_v27 }
  0xe5   :  { %v587_v60 = vmax.f32 %v560_v58, 0.0  ;;  %v566_v61 = vpop.f32.mrf.mxu2 }
  0xe6   :  { %v463_v62 = vpop.f32.mrf.mxu0 }
  0xe7   :  { %603 = vst [vmem:[%s1216_s3 + $0x40] sm:$0xff] %v587_v60  ;;  %v464_v63 = vadd.f32 %v463_v62, %v147_v47  ;;  %v512_v0 = vpop.f32.mrf.mxu1 }
  0xe9   :  { %v513_v2 = vadd.f32 %v512_v0, %v464_v63 }
  0xeb   :  { %v562_v4 = vadd.f32 %v561_v40, %v513_v2 }
  0xed   :  { %v588_v8 = vmax.f32 %v562_v4, 0.0  ;;  %v569_v9 = vpop.f32.mrf.mxu2 }
  0xee   :  { %v570_v10 = vadd.f32 %v569_v9, %v521_v6  ;;  %v466_v12 = vpop.f32.mrf.mxu0 }
  0xef   :  { %604 = vst [vmem:[%s1216_s3 + $0x48] sm:$0xff] %v588_v8  ;;  %v467_v13 = vadd.f32 %v466_v12, %v152_v56  ;;  %v515_v14 = vpop.f32.mrf.mxu1 }
  0xf0   :  { %v591_v16 = vmax.f32 %v570_v10, 0.0 }
  0xf1   :  { %v516_v11 = vadd.f32 %v515_v14, %v467_v13 }
  0xf2   :  { %607 = vst [vmem:[%s1216_s3 + $0x60] sm:$0xff] %v591_v16 }
  0xf3   :  { %v565_v17 = vadd.f32 %v564_v50, %v516_v11 }
  0xf5   :  { %v589_v20 = vmax.f32 %v565_v17, 0.0  ;;  %v571_v22 = vpop.f32.mrf.mxu2 }
  0xf6   :  { %v572_v23 = vadd.f32 %v571_v22, %v523_v18  ;;  %v468_v24 = vpop.f32.mrf.mxu0 }
  0xf7   :  { %605 = vst [vmem:[%s1216_s3 + $0x50] sm:$0xff] %v589_v20  ;;  %v469_v26 = vadd.f32 %v468_v24, %v157_v3  ;;  %v517_v21 = vpop.f32.mrf.mxu1 }
  0xf8   :  { %v592_v28 = vmax.f32 %v572_v23, 0.0 }
  0xf9   :  { %v518_v29 = vadd.f32 %v517_v21, %v469_v26 }
  0xfa   :  { %608 = vst [vmem:[%s1216_s3 + $0x68] sm:$0xff] %v592_v28 }
  0xfb   :  { %v567_v30 = vadd.f32 %v566_v61, %v518_v29 }
  0xfd   :  { %v590_v32 = vmax.f32 %v567_v30, 0.0  ;;  %v574_v33 = vpop.f32.mrf.mxu2 }
  0xfe   :  { %v575_v35 = vadd.f32 %v574_v33, %v526_v31 }
  0xff   :  { %606 = vst [vmem:[%s1216_s3 + $0x58] sm:$0xff] %v590_v32 }
 0x100   :  { %v593_v37 = vmax.f32 %v575_v35, 0.0 }
 0x102   :  { %609 = vst [vmem:[%s1216_s3 + $0x70] sm:$0xff] %v593_v37 }
 0x105   :  { %v576_v40 = vpop.f32.mrf.mxu2 }
 0x106   :  { %v577_v41 = vadd.f32 %v576_v40, %v528_v39 }
 0x108   :  { %v594_v42 = vmax.f32 %v577_v41, 0.0 }
 0x10a   :  { %610 = vst [vmem:[%s1216_s3 + $0x78] sm:$0xff] %v594_v42 }

// kernel: quadruplet_forward.13
= control target key start
LH: loop header
LB: loop body
LE: loop exit
PB: predicated region body
PF: predicated region fallthrough
CT: control target
= control target key end

     0   :  { %s1057_s12 = smov 0   ;;  %s1059_s13 = smov 0   ;;  %s1301_s0 = inlined_call_operand.vmem [shape: bf16[16,288], index: 0, kind: input, shape index: {}]   ;;  %s1302_s1 = inlined_call_operand.vmem [shape: bf16[288,512], index: 1, kind: input, shape index: {}]   ;;  %s1303_s2 = inlined_call_operand.vmem [shape: f32[16,1], index: 2, kind: input, shape index: {}]   ;;  %s1304_s3 = inlined_call_operand.vmem [shape: f32[16,512], index: 3, kind: output, shape index: {}]  }
   0x1   :  { %s1061_s14 = smov 0  }
   0x2 LB: > { %s772_s15 = sadd.s32 4294967295, %s1034_s14   ;;  %s1074_s16 = sadd.s32 1, %s1034_s14   ;;  %s1034_s14 = sphi %s1061_s14, %s1308_s14   ;;  %s1030_s13 = sphi %s1059_s13, %s1307_s13   ;;  %s1026_s12 = sphi %s1057_s12, %s1306_s12  }
   0x3   : > { %s38_s17 = ssub.s32 %s1034_s14, %s1074_s16  ;;  %s41_s18 = sadd.s32 1, %s1030_s13 }
   0x4   : > { %p39_p0 = scmp.eq.s32.totalorder %s38_s17, 0  ;;  %p48_p1 = scmp.ne.s32.totalorder %s1030_s13, %s1026_s12 }
   0x5   : > { %p49_p2 = scmp.eq.s32.totalorder %s1034_s14, 0  ;;  %p99_p3 = scmp.eq.s32.totalorder %s772_s15, 1 }
   0x6   : > { %s1085_s19 = scalar_select %p39_p0, %s1030_s13, %s41_s18  }
   0x7   : > { %p50_p4 = por %p49_p2, %p48_p1  ;;  %p1087_p5 = por %p99_p3, %p48_p1 }
   0x8   : > { %p775_p6 = scmp.ge.s32.totalorder %s1034_s14, 2 }
   0xa   : > { %127 = sbr.rel (%p775_p6) target bundleno = 55 (0x37), region = 24 }
   0xf   : > { %130 = sbr.rel (!%p50_p4) target bundleno = 55 (0x37), region = 28  ;;  %s132_s21 = sand.u32 (%p50_p4), 1, %s1030_s13  }
  0x10   : > { %s943_s22 = sshll.u32 (%p50_p4), %s1034_s14, 3  ;;  %s984_s23 = smul.u32 (%p50_p4), 288, %s132_s21 }
  0x11   : > { %s1097_s26 = scalar_lea.vmem (%p50_p4), %s1302_s1, %s943_s22 }
  0x12   : > { %v236_v0 = vld [vmem:[%s1097_s26] sm:$0xff] (%p50_p4)  ;;  %v238_v1 = vld [vmem:[%s1097_s26 + $0x10] sm:$0xff] (%p50_p4)  ;;  %s1102_s27 = scalar_lea.vmem (%p50_p4), [#allocation2], %s984_s23 }
  0x13   : > { %v240_v2 = vld [vmem:[%s1097_s26 + $0x20] sm:$0xff] (%p50_p4)  ;;  %237 = vst [vmem:[%s1102_s27] sm:$0xff] (%p50_p4), %v236_v0  ;;  %v242_v3 = vld [vmem:[%s1097_s26 + $0x30] sm:$0xff] (%p50_p4) }
  0x14   : > { %239 = vst [vmem:[%s1102_s27 + $0x8] sm:$0xff] %v238_v1  ;;  %v244_v4 = vld [vmem:[%s1097_s26 + $0x40] sm:$0xff]  ;;  %v246_v5 = vld [vmem:[%s1097_s26 + $0x50] sm:$0xff] }
  0x15   : > { %241 = vst [vmem:[%s1102_s27 + $0x10] sm:$0xff] %v240_v2  ;;  %v248_v6 = vld [vmem:[%s1097_s26 + $0x60] sm:$0xff]  ;;  %v250_v7 = vld [vmem:[%s1097_s26 + $0x70] sm:$0xff] }
  0x16   : > { %243 = vst [vmem:[%s1102_s27 + $0x18] sm:$0xff] %v242_v3  ;;  %v252_v8 = vld [vmem:[%s1097_s26 + $0x80] sm:$0xff]  ;;  %v254_v9 = vld [vmem:[%s1097_s26 + $0x90] sm:$0xff] }
  0x17   : > { %245 = vst [vmem:[%s1102_s27 + $0x20] sm:$0xff] %v244_v4  ;;  %v256_v10 = vld [vmem:[%s1097_s26 + $0xa0] sm:$0xff]  ;;  %v258_v11 = vld [vmem:[%s1097_s26 + $0xb0] sm:$0xff] }
  0x18   : > { %247 = vst [vmem:[%s1102_s27 + $0x28] sm:$0xff] %v246_v5  ;;  %v260_v12 = vld [vmem:[%s1097_s26 + $0xc0] sm:$0xff]  ;;  %v262_v13 = vld [vmem:[%s1097_s26 + $0xd0] sm:$0xff] }
  0x19   : > { %249 = vst [vmem:[%s1102_s27 + $0x30] sm:$0xff] %v248_v6  ;;  %v264_v14 = vld [vmem:[%s1097_s26 + $0xe0] sm:$0xff]  ;;  %v266_v15 = vld [vmem:[%s1097_s26 + $0xf0] sm:$0xff] }
  0x1a   : > { %251 = vst [vmem:[%s1102_s27 + $0x38] sm:$0xff] %v250_v7  ;;  %v268_v16 = vld [vmem:[%s1097_s26 + $0x100] sm:$0xff]  ;;  %v270_v17 = vld [vmem:[%s1097_s26 + $0x110] sm:$0xff] }
  0x1b   : > { %253 = vst [vmem:[%s1102_s27 + $0x40] sm:$0xff] %v252_v8  ;;  %v272_v18 = vld [vmem:[%s1097_s26 + $0x120] sm:$0xff]  ;;  %v274_v19 = vld [vmem:[%s1097_s26 + $0x130] sm:$0xff] }
  0x1c   : > { %255 = vst [vmem:[%s1102_s27 + $0x48] sm:$0xff] %v254_v9  ;;  %v276_v20 = vld [vmem:[%s1097_s26 + $0x140] sm:$0xff]  ;;  %v278_v21 = vld [vmem:[%s1097_s26 + $0x150] sm:$0xff] }
  0x1d   : > { %257 = vst [vmem:[%s1102_s27 + $0x50] sm:$0xff] %v256_v10  ;;  %v280_v22 = vld [vmem:[%s1097_s26 + $0x160] sm:$0xff]  ;;  %v282_v23 = vld [vmem:[%s1097_s26 + $0x170] sm:$0xff] }
  0x1e   : > { %259 = vst [vmem:[%s1102_s27 + $0x58] sm:$0xff] %v258_v11  ;;  %v284_v24 = vld [vmem:[%s1097_s26 + $0x180] sm:$0xff]  ;;  %v286_v25 = vld [vmem:[%s1097_s26 + $0x190] sm:$0xff] }
  0x1f   : > { %261 = vst [vmem:[%s1102_s27 + $0x60] sm:$0xff] %v260_v12  ;;  %v288_v26 = vld [vmem:[%s1097_s26 + $0x1a0] sm:$0xff]  ;;  %v290_v27 = vld [vmem:[%s1097_s26 + $0x1b0] sm:$0xff] }
  0x20   : > { %263 = vst [vmem:[%s1102_s27 + $0x68] sm:$0xff] %v262_v13  ;;  %v292_v28 = vld [vmem:[%s1097_s26 + $0x1c0] sm:$0xff]  ;;  %v294_v29 = vld [vmem:[%s1097_s26 + $0x1d0] sm:$0xff] }
  0x21   : > { %265 = vst [vmem:[%s1102_s27 + $0x70] sm:$0xff] %v264_v14  ;;  %v296_v30 = vld [vmem:[%s1097_s26 + $0x1e0] sm:$0xff]  ;;  %v298_v31 = vld [vmem:[%s1097_s26 + $0x1f0] sm:$0xff] }
  0x22   : > { %267 = vst [vmem:[%s1102_s27 + $0x78] sm:$0xff] %v266_v15  ;;  %v300_v32 = vld [vmem:[%s1097_s26 + $0x200] sm:$0xff]  ;;  %v302_v33 = vld [vmem:[%s1097_s26 + $0x210] sm:$0xff] }
  0x23   : > { %269 = vst [vmem:[%s1102_s27 + $0x80] sm:$0xff] %v268_v16  ;;  %v304_v34 = vld [vmem:[%s1097_s26 + $0x220] sm:$0xff]  ;;  %v306_v35 = vld [vmem:[%s1097_s26 + $0x230] sm:$0xff] }
  0x24   : > { %271 = vst [vmem:[%s1102_s27 + $0x88] sm:$0xff] %v270_v17 }
  0x25   : > { %273 = vst [vmem:[%s1102_s27 + $0x90] sm:$0xff] %v272_v18 }
  0x26   : > { %275 = vst [vmem:[%s1102_s27 + $0x98] sm:$0xff] %v274_v19 }
  0x27   : > { %277 = vst [vmem:[%s1102_s27 + $0xa0] sm:$0xff] %v276_v20 }
  0x28   : > { %279 = vst [vmem:[%s1102_s27 + $0xa8] sm:$0xff] %v278_v21 }
  0x29   : > { %281 = vst [vmem:[%s1102_s27 + $0xb0] sm:$0xff] %v280_v22 }
  0x2a   : > { %283 = vst [vmem:[%s1102_s27 + $0xb8] sm:$0xff] %v282_v23 }
  0x2b   : > { %285 = vst [vmem:[%s1102_s27 + $0xc0] sm:$0xff] %v284_v24 }
  0x2c   : > { %287 = vst [vmem:[%s1102_s27 + $0xc8] sm:$0xff] %v286_v25 }
  0x2d   : > { %289 = vst [vmem:[%s1102_s27 + $0xd0] sm:$0xff] %v288_v26 }
  0x2e   : > { %291 = vst [vmem:[%s1102_s27 + $0xd8] sm:$0xff] %v290_v27 }
  0x2f   : > { %293 = vst [vmem:[%s1102_s27 + $0xe0] sm:$0xff] %v292_v28 }
  0x30   : > { %295 = vst [vmem:[%s1102_s27 + $0xe8] sm:$0xff] %v294_v29 }
  0x31   : > { %297 = vst [vmem:[%s1102_s27 + $0xf0] sm:$0xff] %v296_v30 }
  0x32   : > { %299 = vst [vmem:[%s1102_s27 + $0xf8] sm:$0xff] %v298_v31 }
  0x33   : > { %301 = vst [vmem:[%s1102_s27 + $0x100] sm:$0xff] %v300_v32 }
  0x34   : > { %303 = vst [vmem:[%s1102_s27 + $0x108] sm:$0xff] %v302_v33 }
  0x35   : > { %305 = vst [vmem:[%s1102_s27 + $0x110] sm:$0xff] %v304_v34 }
  0x36   : > { %307 = vst [vmem:[%s1102_s27 + $0x118] sm:$0xff] %v306_v35 }
  0x37 PF: > { %p778_p7 = scmp.ge.s32.totalorder %s1034_s14, 1  ;;  %p312_p8 = scmp.lt.s32.totalorder %s1034_s14, 3 }
  0x39   : > { %p313_p9 = pnand %p778_p7, %p312_p8 }
  0x3a   : > { %s319_s28 = sand.u32 (!%p313_p9), 1, %s1026_s12  }
  0x3b   : > { %316 = sbr.rel (%p313_p9) target bundleno = 260 (0x104), region = 66  ;;  %s779_s27 = sshll.u32 (!%p313_p9), %s319_s28, 5 }
  0x3c   : > { %s985_s29 = smul.u32 (!%p313_p9), 288, %s319_s28 }
  0x3e   : > { %s1178_s30 = scalar_lea.vmem (!%p313_p9), [#allocation2], %s985_s29  ;;  %s340_s29 = scalar_lea.vmem (!%p313_p9), [#allocation3], %s779_s27 }
  0x40   : > { %v850_v36 = vld [vmem:[%s1178_s30 + $0x70] sm:$0xf]  ;;  %v962_v37 = vld [vmem:[%s1178_s30 + $0x74] sm:$0xf0]  ;;  %vm591_vm0 = vcmask 261120   ;;  %s983_s12 = sshll.u32 (%p1087_p5), %s772_s15, 4 }
  0x41   : > { %v930_v38 = vld [vmem:[%s1178_s30 + $0x110] sm:$0xf]  ;;  %v851_v39 = vor.u32 %v962_v37, %v850_v36  ;;  %v982_v40 = vld [vmem:[%s1178_s30 + $0x114] sm:$0xf0]  ;;  %v961_v41 = vld [vmem:[%s1178_s30 + $0x74] sm:$0xf]  ;;  %s692_s4 = scalar_lea.vmem (%p1087_p5), %s1304_s3, %s983_s12 }
  0x42   : > { %v852_v42 = vld [vmem:[%s1178_s30 + $0x78] sm:$0xf0]  ;;  %v931_v43 = vor.u32 %v982_v40, %v930_v38  ;;  %v914_v45 = vld [vmem:[%s1178_s30 + $0xf0] sm:$0xf]  ;;  %v978_v46 = vld [vmem:[%s1178_s30 + $0xf4] sm:$0xf0] }
  0x43   : > { %v855_v44 = vor.u32 %v961_v41, %v852_v42  ;;  %v842_v47 = vld [vmem:[%s1178_s30 + $0x60] sm:$0xf]  ;;  %v790_v48 = vld [vmem:[%s1301_s0 + $0x8] sm:$0xf]  ;;  %v946_v49 = vld [vmem:[%s1301_s0 + $0x10] sm:$0xf0]  ;;  %595 = vmatpush.bf16.msra.mxu0 %v851_v39  ;;  %v915_v50 = vor.u32 %v978_v46, %v914_v45 }
  0x44   : > { %v960_v51 = vld [vmem:[%s1178_s30 + $0x64] sm:$0xf0]  ;;  %v922_v52 = vld [vmem:[%s1178_s30 + $0x100] sm:$0xf]  ;;  %629 = vmatpush.bf16.msra.mxu2 %v931_v43  ;;  %v959_v56 = vld [vmem:[%s1178_s30 + $0x64] sm:$0xf]  ;;  %v1210_v8 = vor.u32 %v946_v49, %v790_v48 }
  0x45   : > { %v980_v53 = vld [vmem:[%s1178_s30 + $0x104] sm:$0xf0]  ;;  %637 = vmatpush.bf16.msra.mxu3 %v855_v44  ;;  %v843_v54 = vor.u32 %v960_v51, %v842_v47  ;;  %v844_v57 = vld [vmem:[%s1178_s30 + $0x68] sm:$0xf0]  ;;  %v977_v58 = vld [vmem:[%s1178_s30 + $0xf4] sm:$0xf]  ;;  %609 = vmatpush.bf16.msra.mxu1 %v915_v50 }
  0x46   : > { %v923_v55 = vor.u32 %v980_v53, %v922_v52  ;;  %v847_v59 = vor.u32 %v959_v56, %v844_v57  ;;  %v916_v60 = vld [vmem:[%s1178_s30 + $0xf8] sm:$0xf0]  ;;  %v906_v61 = vld [vmem:[%s1178_s30 + $0xe0] sm:$0xf]  ;;  %v976_v62 = vld [vmem:[%s1178_s30 + $0xe4] sm:$0xf0] }
  0x47   : > { %v919_v63 = vor.u32 %v977_v58, %v916_v60  ;;  %v907_v0 = vor.u32 %v976_v62, %v906_v61  ;;  %v834_v1 = vld [vmem:[%s1178_s30 + $0x50] sm:$0xf]  ;;  %v958_v2 = vld [vmem:[%s1178_s30 + $0x54] sm:$0xf0]  ;;  %v957_v3 = vld [vmem:[%s1178_s30 + $0x54] sm:$0xf]  ;;  %596 = vmatpush.bf16.msra.mxu0 %v843_v54 }
  0x48   : > { %v835_v4 = vor.u32 %v958_v2, %v834_v1  ;;  %v836_v5 = vld [vmem:[%s1178_s30 + $0x58] sm:$0xf0]  ;;  %v975_v6 = vld [vmem:[%s1178_s30 + $0xe4] sm:$0xf]  ;;  %v908_v7 = vld [vmem:[%s1178_s30 + $0xe8] sm:$0xf0]  ;;  %630 = vmatpush.bf16.msra.mxu2 %v923_v55 }
  0x49   : > { %638 = vmatpush.bf16.msra.mxu3 %v847_v59  ;;  %v839_v9 = vor.u32 %v957_v3, %v836_v5  ;;  %v898_v10 = vld [vmem:[%s1178_s30 + $0xd0] sm:$0xf]  ;;  %v974_v11 = vld [vmem:[%s1178_s30 + $0xd4] sm:$0xf0]  ;;  %v826_v12 = vld [vmem:[%s1178_s30 + $0x40] sm:$0xf]  ;;  %610 = vmatpush.bf16.msra.mxu1 %v907_v0  ;;  %v911_v13 = vor.u32 %v975_v6, %v908_v7 }
  0x4a   : > { %v899_v14 = vor.u32 %v974_v11, %v898_v10  ;;  %v956_v15 = vld [vmem:[%s1178_s30 + $0x44] sm:$0xf0]  ;;  %v955_v16 = vld [vmem:[%s1178_s30 + $0x44] sm:$0xf]  ;;  %v828_v17 = vld [vmem:[%s1178_s30 + $0x48] sm:$0xf0] }
  0x4b   : > { %v973_v18 = vld [vmem:[%s1178_s30 + $0xd4] sm:$0xf]  ;;  %v900_v19 = vld [vmem:[%s1178_s30 + $0xd8] sm:$0xf0]  ;;  %v890_v20 = vld [vmem:[%s1178_s30 + $0xc0] sm:$0xf]  ;;  %597 = vmatpush.bf16.msra.mxu0 %v835_v4  ;;  %v827_v21 = vor.u32 %v956_v15, %v826_v12  ;;  %936 = vmatmul.msk.bf16.vlgmr.msra.gmra.mxu2 %vm591_vm0, %v1210_v8  ;;  %v831_v23 = vor.u32 %v955_v16, %v828_v17 }
  0x4c   : > { %651 = vmatpush.bf16.msrb.mxu2 %v919_v63  ;;  %v972_v22 = vld [vmem:[%s1178_s30 + $0xc4] sm:$0xf0]  ;;  %v818_v24 = vld [vmem:[%s1178_s30 + $0x30] sm:$0xf]  ;;  %v954_v25 = vld [vmem:[%s1178_s30 + $0x34] sm:$0xf0]  ;;  %v903_v26 = vor.u32 %v973_v18, %v900_v19 }
  0x4d   : > { %639 = vmatpush.bf16.msra.mxu3 %v839_v9  ;;  %611 = vmatpush.bf16.msra.mxu1 %v899_v14  ;;  %v891_v27 = vor.u32 %v972_v22, %v890_v20  ;;  %v953_v28 = vld [vmem:[%s1178_s30 + $0x34] sm:$0xf]  ;;  %v820_v29 = vld [vmem:[%s1178_s30 + $0x38] sm:$0xf0]  ;;  %v971_v30 = vld [vmem:[%s1178_s30 + $0xc4] sm:$0xf]  ;;  %v819_v34 = vor.u32 %v954_v25, %v818_v24 }
  0x4e   : > { %v892_v31 = vld [vmem:[%s1178_s30 + $0xc8] sm:$0xf0]  ;;  %v882_v32 = vld [vmem:[%s1178_s30 + $0xb0] sm:$0xf]  ;;  %v970_v33 = vld [vmem:[%s1178_s30 + $0xb4] sm:$0xf0]  ;;  %v823_v35 = vor.u32 %v953_v28, %v820_v29 }
  0x4f   : > { %598 = vmatpush.bf16.msra.mxu0 %v827_v21  ;;  %v810_v36 = vld [vmem:[%s1178_s30 + $0x20] sm:$0xf]  ;;  %v952_v37 = vld [vmem:[%s1178_s30 + $0x24] sm:$0xf0]  ;;  %v895_v38 = vor.u32 %v971_v30, %v892_v31  ;;  %v883_v39 = vor.u32 %v970_v33, %v882_v32  ;;  %v951_v40 = vld [vmem:[%s1178_s30 + $0x24] sm:$0xf] }
  0x50   : > { %652 = vmatpush.bf16.msrb.mxu2 %v911_v13  ;;  %v812_v41 = vld [vmem:[%s1178_s30 + $0x28] sm:$0xf0]  ;;  %v969_v42 = vld [vmem:[%s1178_s30 + $0xb4] sm:$0xf]  ;;  %v884_v43 = vld [vmem:[%s1178_s30 + $0xb8] sm:$0xf0]  ;;  %v811_v46 = vor.u32 %v952_v37, %v810_v36 }
  0x51   : > { %640 = vmatpush.bf16.msra.mxu3 %v831_v23  ;;  %612 = vmatpush.bf16.msra.mxu1 %v891_v27  ;;  %v874_v44 = vld [vmem:[%s1178_s30 + $0xa0] sm:$0xf]  ;;  %v968_v45 = vld [vmem:[%s1178_s30 + $0xa4] sm:$0xf0]  ;;  %v815_v47 = vor.u32 %v951_v40, %v812_v41  ;;  %v802_v48 = vld [vmem:[%s1178_s30 + $0x10] sm:$0xf]  ;;  %v887_v50 = vor.u32 %v969_v42, %v884_v43 }
  0x52   : > { %v950_v49 = vld [vmem:[%s1178_s30 + $0x14] sm:$0xf0]  ;;  %v875_v51 = vor.u32 %v968_v45, %v874_v44  ;;  %v949_v52 = vld [vmem:[%s1178_s30 + $0x14] sm:$0xf]  ;;  %v804_v53 = vld [vmem:[%s1178_s30 + $0x18] sm:$0xf0] }
  0x53   : > { %599 = vmatpush.bf16.msra.mxu0 %v819_v34  ;;  %v967_v54 = vld [vmem:[%s1178_s30 + $0xa4] sm:$0xf]  ;;  %v876_v55 = vld [vmem:[%s1178_s30 + $0xa8] sm:$0xf0]  ;;  %v866_v56 = vld [vmem:[%s1178_s30 + $0x90] sm:$0xf]  ;;  %v803_v58 = vor.u32 %v950_v49, %v802_v48  ;;  %v807_v61 = vor.u32 %v949_v52, %v804_v53 }
  0x54   : > { %653 = vmatpush.bf16.msrb.mxu2 %v903_v26  ;;  %v966_v57 = vld [vmem:[%s1178_s30 + $0x94] sm:$0xf0]  ;;  %v794_v59 = vld [vmem:[%s1178_s30] sm:$0xf]  ;;  %v948_v60 = vld [vmem:[%s1178_s30 + $0x4] sm:$0xf0]  ;;  %v879_v1 = vor.u32 %v967_v54, %v876_v55 }
  0x55   : > { %641 = vmatpush.bf16.msra.mxu3 %v823_v35  ;;  %613 = vmatpush.bf16.msra.mxu1 %v883_v39  ;;  %v947_v62 = vld [vmem:[%s1178_s30 + $0x4] sm:$0xf]  ;;  %v796_v63 = vld [vmem:[%s1178_s30 + $0x8] sm:$0xf0]  ;;  %v965_v0 = vld [vmem:[%s1178_s30 + $0x94] sm:$0xf]  ;;  %v867_v2 = vor.u32 %v966_v57, %v866_v56  ;;  %v795_v11 = vor.u32 %v948_v60, %v794_v59 }
  0x56   : > { %v981_v3 = vld [vmem:[%s1178_s30 + $0x114] sm:$0xf]  ;;  %v932_v4 = vld [vmem:[%s1178_s30 + $0x118] sm:$0xf0]  ;;  %v384_v5 = vld [vmem:[%s1303_s2] sm:$0xff]  ;;  %v1036_v10 = vmov 0   ;;  %v799_v14 = vor.u32 %v947_v62, %v796_v63 }
  0x57   : > { %600 = vmatpush.bf16.msra.mxu0 %v811_v46  ;;  %v868_v6 = vld [vmem:[%s1178_s30 + $0x98] sm:$0xf0]  ;;  %v858_v7 = vld [vmem:[%s1178_s30 + $0x80] sm:$0xf]  ;;  %v964_v9 = vld [vmem:[%s1178_s30 + $0x84] sm:$0xf0]  ;;  %1011 = vset.pattern.permute.xlu0 %v1036_v10  ;;  %v935_v15 = vor.u32 %v981_v3, %v932_v4 }
  0x58   : > { %654 = vmatpush.bf16.msrb.mxu2 %v895_v38  ;;  %v782_v12 = vld [vmem:[%s1301_s0] sm:$0xf]  ;;  %v945_v13 = vld [vmem:[%s1301_s0 + $0x8] sm:$0xf0]  ;;  %388 = vperm.xlu0 %1011, %v384_v5   ;;  %v944_v16 = vld [vmem:[%s1301_s0 + $0x4] sm:$0xf]  ;;  %v871_v17 = vor.u32 %v965_v0, %v868_v6  ;;  %v859_v18 = vor.u32 %v964_v9, %v858_v7 }
  0x59   : > { %642 = vmatpush.bf16.msra.mxu3 %v815_v47  ;;  %614 = vmatpush.bf16.msra.mxu1 %v875_v51  ;;  %v784_v19 = vld [vmem:[%s1301_s0 + $0xc] sm:$0xf0]  ;;  %v979_v20 = vld [vmem:[%s1178_s30 + $0x104] sm:$0xf]  ;;  %v924_v21 = vld [vmem:[%s1178_s30 + $0x108] sm:$0xf0]  ;;  %v783_v22 = vor.u32 %v945_v13, %v782_v12 }
  0x5a   : > { %v963_v23 = vld [vmem:[%s1178_s30 + $0x84] sm:$0xf]  ;;  %v860_v24 = vld [vmem:[%s1178_s30 + $0x88] sm:$0xf0]  ;;  %v787_v25 = vor.u32 %v944_v16, %v784_v19  ;;  %v927_v26 = vor.u32 %v979_v20, %v924_v21 }
  0x5b   : > { %601 = vmatpush.bf16.msra.mxu0 %v803_v58  ;;  %v385_v27 = vld [vmem:[%s1303_s2 + $0x8] sm:$0xff]  ;;  %v863_v28 = vor.u32 %v963_v23, %v860_v24 }
  0x5c   : > { %655 = vmatpush.bf16.msrb.mxu2 %v887_v50 }
  0x5d   : > { %643 = vmatpush.bf16.msra.mxu3 %v807_v61  ;;  %615 = vmatpush.bf16.msra.mxu1 %v867_v2 }
  0x5f   : > { %602 = vmatpush.bf16.msra.mxu0 %v795_v11 }
  0x60   : > { %656 = vmatpush.bf16.msrb.mxu2 %v879_v1  ;;  %393 = vperm.xlu0 %1011, %v385_v27  }
  0x61   : > { %644 = vmatpush.bf16.msra.mxu3 %v799_v14  ;;  %616 = vmatpush.bf16.msra.mxu1 %v859_v18 }
  0x62   : > { %603 = vmatmul.bf16.vlgmr.msra.gmra.mxu0 %v783_v22 }
  0x63   : > { %671 = vmatpush.bf16.msrb.mxu0 %v935_v15 }
  0x64   : > { %657 = vmatpush.bf16.msrb.mxu2 %v871_v17  ;;  %645 = vmatmul.bf16.vlgmr.msra.gmra.mxu3 %v783_v22 }
  0x65   : > { %617 = vmatmul.bf16.vlgmr.msra.gmra.mxu1 %v787_v25 }
  0x67   : > { %672 = vmatpush.bf16.msrb.mxu0 %v927_v26 }
  0x68   : > { %658 = vmatpush.bf16.msrb.mxu2 %v863_v28 }
  0x6b   : > { %659 = vmatmul.bf16.vlgmr.msrb.gmra.mxu2 %v787_v25 }
  0x72   : > { %937 = vmatmul.msk.bf16.vlgmr.msrb.gmra.mxu0 %vm591_vm0, %v1210_v8 }
  0xca   : > { %v389_v30 = vpop.permute.xlu0 %388 }
  0xce   : > { %v632_v29 = vpop.f32.mrf.mxu2 }
  0xd2   : > { %v394_v37 = vpop.permute.xlu0 %393 }
  0xd6   : > { %v634_v35 = vpop.f32.mrf.mxu2 }
  0xdf   : > { %v604_v31 = vpop.f32.mrf.mxu0 }
  0xe0   : > { %v605_v32 = vadd.f32 %v604_v31, %v389_v30 }
  0xe2   : > { %v618_v33 = vpop.f32.mrf.mxu1 }
  0xe3   : > { %v619_v34 = vadd.f32 %v618_v33, %v605_v32 }
  0xe5   : > { %v633_v36 = vadd.f32 %v632_v29, %v619_v34 }
  0xe7   : > { %679 = vst [vmem:[%s340_s29] sm:$0xff] %v633_v36  ;;  %v646_v38 = vpop.f32.mrf.mxu3  ;;  %v606_v39 = vpop.f32.mrf.mxu0 }
  0xe8   : > { %v647_v40 = vadd.f32 %v646_v38, %v389_v30  ;;  %v607_v41 = vadd.f32 %v606_v39, %v394_v37 }
  0xea   : > { %v620_v42 = vpop.f32.mrf.mxu1 }
  0xeb   : > { %v621_v43 = vadd.f32 %v620_v42, %v607_v41 }
  0xed   : > { %v635_v44 = vadd.f32 %v634_v35, %v621_v43 }
  0xee   : > { %v660_v8 = vpop.f32.mrf.mxu2  ;;  %v705_v54 = vld [vmem:[%s340_s29] sm:$0xff] (%p1087_p5) }
  0xef   : > { %v661_v45 = vadd.f32 %v660_v8, %v647_v40  ;;  %681 = vst [vmem:[%s340_s29 + $0x10] sm:$0xff] %v635_v44  ;;  %v674_v46 = vpop.f32.mrf.mxu0  ;;  %v648_v48 = vpop.f32.mrf.mxu3 }
  0xf0   : > { %v649_v50 = vadd.f32 %v648_v48, %v394_v37  ;;  %706 = vst [vmem:[%s692_s4] sm:$0xff] (%p1087_p5), %v705_v54 }
  0xf1   : > { %v675_v47 = vadd.f32 %v674_v46, %v661_v45 }
  0xf3   : > { %680 = vst [vmem:[%s340_s29 + $0x8] sm:$0xff] %v675_v47 }
  0xf6   : > { %v662_v49 = vpop.f32.mrf.mxu2  ;;  %v709_v56 = vld [vmem:[%s340_s29 + $0x10] sm:$0xff] (%p1087_p5) }
  0xf7   : > { %v663_v51 = vadd.f32 %v662_v49, %v649_v50  ;;  %v676_v52 = vpop.f32.mrf.mxu0  ;;  %689 = sbr.rel (!%p1087_p5) target bundleno = 260 (0x104), region = 74  ;;  %710 = vst [vmem:[%s692_s4 + $0x20] sm:$0xff] (%p1087_p5), %v709_v56 }
  0xf9   : > { %v677_v53 = vadd.f32 %v676_v52, %v663_v51 }
  0xfa   : > { %v707_v55 = vld [vmem:[%s340_s29 + $0x8] sm:$0xff] (%p1087_p5) }
  0xfb   : > { %682 = vst [vmem:[%s340_s29 + $0x18] sm:$0xff] %v677_v53 }
  0xfc   : > { %708 = vst [vmem:[%s692_s4 + $0x8] sm:$0xff] %v707_v55 }
 0x102   : > { %v711_v57 = vld [vmem:[%s340_s29 + $0x18] sm:$0xff] }
 0x103   : > { %712 = vst [vmem:[%s692_s4 + $0x28] sm:$0xff] %v711_v57 }
 0x104 PF: > { %p10_p10 = scmp.ge.s32.totalorder %s1074_s16, 4   ;;  %s1306_s12 = smov %s1030_s13 }
 0x105   : > { %s1307_s13 = smov %s1085_s19  ;;  %s1308_s14 = smov %s1074_s16 }
 0x106   :  { %12 = sbr.rel (!%p10_p10) target bundleno = 2 (0x2), region = 128 }

</bundles_post_ra>
